<compile_context>
chip_gen: v6e
topology: v6e:2x2x1
jax: 0.10.0
libtpu: 0.0.40
codegen_flags: <defaults>
</compile_context>

<pallas_src>
import jax
import jax.numpy as jnp
from jax.experimental import pallas as pl
from jax.experimental.pallas import tpu as pltpu

INPUT_SIZE = 200
HIDDEN_SIZE = 1056
OUTPUT_SIZE = 10          # N

HIDDEN_PAD = 1152         # next multiple of 128 above 1056
OUTPUT_PAD = 128          # lane-dense output block
BATCH_TILE = 256          # rows per grid step (multiple of 256 -> full MXU rows)


def ar_net_kernel(x_ref, w1_ref, b1_ref, w2_ref, b2_ref, o_ref):
    # x tile: [TB, IN] f32 -> bf16 (activations intentionally quantized too).
    x = x_ref[...].astype(jnp.bfloat16)
    h = jnp.dot(x, w1_ref[...],
                preferred_element_type=jnp.float32)      # [TB, HIDDEN_PAD] f32
    h = jnp.maximum(h + b1_ref[...], 0.0)                # bias + ReLU (f32)
    out = jnp.dot(h.astype(jnp.bfloat16), w2_ref[...],
                  preferred_element_type=jnp.float32)    # [TB, OUTPUT_PAD] f32
    o_ref[...] = (out + b2_ref[...]).astype(o_ref.dtype)


def prepare_params(w1, b1, w2, b2):
    """Pad to lane-aligned shapes and quantize weights to bf16 (done once)."""
    w1p = jnp.zeros((INPUT_SIZE, HIDDEN_PAD), jnp.bfloat16)
    w1p = w1p.at[:, :HIDDEN_SIZE].set(w1.astype(jnp.bfloat16))
    b1p = jnp.zeros((1, HIDDEN_PAD), jnp.float32)
    b1p = b1p.at[:, :HIDDEN_SIZE].set(b1)
    w2p = jnp.zeros((HIDDEN_PAD, OUTPUT_PAD), jnp.bfloat16)
    w2p = w2p.at[:HIDDEN_SIZE, :OUTPUT_SIZE].set(w2.astype(jnp.bfloat16))
    b2p = jnp.zeros((1, OUTPUT_PAD), jnp.float32)
    b2p = b2p.at[:, :OUTPUT_SIZE].set(b2)
    return w1p, b1p, w2p, b2p


def ar_net_forward(x, w1p, b1p, w2p, b2p):
    B = x.shape[0]
    num_tiles = pl.cdiv(B, BATCH_TILE)
    b_pad = num_tiles * BATCH_TILE
    if b_pad != B:
        # Pad rows with zeros; padded rows produce bias-only junk that is
        # sliced off below.
        x = jnp.zeros((b_pad, INPUT_SIZE), x.dtype).at[:B].set(x)

    out_pad = pl.pallas_call(
        ar_net_kernel,
        out_shape=jax.ShapeDtypeStruct((b_pad, OUTPUT_PAD), jnp.float32),
        grid=(num_tiles,),
        in_specs=[
            # x: streams one row tile per grid step.
            pl.BlockSpec((BATCH_TILE, INPUT_SIZE), lambda i: (i, 0)),
            # Weights / biases: constant block index -> DMA'd once, resident
            # in VMEM across all grid steps.
            pl.BlockSpec((INPUT_SIZE, HIDDEN_PAD), lambda i: (0, 0)),
            pl.BlockSpec((1, HIDDEN_PAD), lambda i: (0, 0)),
            pl.BlockSpec((HIDDEN_PAD, OUTPUT_PAD), lambda i: (0, 0)),
            pl.BlockSpec((1, OUTPUT_PAD), lambda i: (0, 0)),
        ],
        out_specs=pl.BlockSpec((BATCH_TILE, OUTPUT_PAD), lambda i: (i, 0)),
        compiler_params=pltpu.CompilerParams(
            dimension_semantics=("parallel",)),   # v7x: shard tiles over 2 TCs
    )(x, w1p, b1p, w2p, b2p)
    return out_pad[:B, :OUTPUT_SIZE]


def init_params(key):
    # nn.Linear-style init; weights stored transposed ([in, out]) for x @ W.
    k1, k2, k3, k4 = jax.random.split(key, 4)
    bound1 = 1.0 / jnp.sqrt(INPUT_SIZE)
    bound2 = 1.0 / jnp.sqrt(HIDDEN_SIZE)
    w1 = jax.random.uniform(k1, (INPUT_SIZE, HIDDEN_SIZE), jnp.float32,
                            -bound1, bound1)
    b1 = jax.random.uniform(k2, (HIDDEN_SIZE,), jnp.float32, -bound1, bound1)
    w2 = jax.random.uniform(k3, (HIDDEN_SIZE, OUTPUT_SIZE), jnp.float32,
                            -bound2, bound2)
    b2 = jax.random.uniform(k4, (OUTPUT_SIZE,), jnp.float32, -bound2, bound2)
    return w1, b1, w2, b2


def reference_forward(x, w1p, b1p, w2p, b2p):
    # Precision-matched reference (same bf16 weights + bf16 activations,
    # f32 accumulation).
    h = jnp.dot(x.astype(jnp.bfloat16), w1p,
                preferred_element_type=jnp.float32) + b1p
    h = jnp.maximum(h, 0.0)
    out = jnp.dot(h.astype(jnp.bfloat16), w2p,
                  preferred_element_type=jnp.float32) + b2p
    return out[:, :OUTPUT_SIZE]


def reference_forward_f32(x, w1, b1, w2, b2):
    # Full-precision reference of the original module semantics.
    h = jnp.maximum(x @ w1 + b1, 0.0)
    return h @ w2 + b2


if __name__ == "__main__":
    key = jax.random.PRNGKey(0)
    kx, kp = jax.random.split(key)
    B = 300  # pads to 512 rows -> exercises 2 grid steps with resident weights
    x = jax.random.normal(kx, (B, INPUT_SIZE), jnp.float32)
    w1, b1, w2, b2 = init_params(kp)
    w1p, b1p, w2p, b2p = prepare_params(w1, b1, w2, b2)

    fwd = jax.jit(ar_net_forward)
    out = jax.block_until_ready(fwd(x, w1p, b1p, w2p, b2p))
    assert out.shape == (B, OUTPUT_SIZE)

    # Exact-ish check vs a precision-matched (bf16 weight+activation) reference.
    ref = reference_forward(x, w1p, b1p, w2p, b2p)
    assert jnp.allclose(out, ref, atol=2e-3, rtol=2e-3)

    # Loose sanity check vs the original f32 module semantics (difference is
    # only the intentional bf16 quantization of weights and activations).
    ref32 = reference_forward_f32(x, w1, b1, w2, b2)
    assert jnp.allclose(out, ref32, atol=5e-2, rtol=5e-2)

    print("KERNEL_OK")
</pallas_src>

<mosaic_0001>
module attributes {stable_mosaic.version = 11 : i64} {
  func.func @ar_net_kernel(%arg0: i32, %arg1: memref<256x200xf32, #tpu.memory_space<vmem>>, %arg2: memref<200x1152xbf16, #tpu.memory_space<vmem>>, %arg3: memref<1x1152xf32, #tpu.memory_space<vmem>>, %arg4: memref<1152x128xbf16, #tpu.memory_space<vmem>>, %arg5: memref<1x128xf32, #tpu.memory_space<vmem>>, %arg6: memref<256x128xf32, #tpu.memory_space<vmem>>) attributes {dimension_semantics = [#tpu.dimension_semantics<parallel>], iteration_bounds = array<i64: 2>, scalar_prefetch = 0 : i64, scratch_operands = 0 : i64, tpu.core_type = #tpu.core_type<tc>, window_params = [{transform_indices = @transform_0, window_bounds = array<i64: 256, 200>}, {pipeline_mode = #tpu.pipeline_mode<synchronous>, transform_indices = @transform_1, window_bounds = array<i64: 200, 1152>}, {pipeline_mode = #tpu.pipeline_mode<synchronous>, transform_indices = @transform_2, window_bounds = array<i64: 1, 1152>}, {pipeline_mode = #tpu.pipeline_mode<synchronous>, transform_indices = @transform_3, window_bounds = array<i64: 1152, 128>}, {pipeline_mode = #tpu.pipeline_mode<synchronous>, transform_indices = @transform_4, window_bounds = array<i64: 1, 128>}, {transform_indices = @transform_5, window_bounds = array<i64: 256, 128>}]} {
    %c0 = arith.constant 0 : index
    %c0_0 = arith.constant 0 : index
    %0 = vector.load %arg1[%c0, %c0_0] : memref<256x200xf32, #tpu.memory_space<vmem>>, vector<256x200xf32>
    %1 = arith.truncf %0 : vector<256x200xf32> to vector<256x200xbf16>
    %c0_1 = arith.constant 0 : index
    %c0_2 = arith.constant 0 : index
    %2 = vector.load %arg2[%c0_1, %c0_2] : memref<200x1152xbf16, #tpu.memory_space<vmem>>, vector<200x1152xbf16>
    %cst = arith.constant dense<0.000000e+00> : vector<256x1152xf32>
    %3 = tpu.matmul %1, %2, %cst {dimension_numbers = #tpu.dot_dimension_numbers<[1], [0], [0], [1], [0, 0, 1, 1], [], []>} : vector<256x200xbf16>, vector<200x1152xbf16>, vector<256x1152xf32> -> vector<256x1152xf32>
    %c0_3 = arith.constant 0 : index
    %c0_4 = arith.constant 0 : index
    %4 = vector.load %arg3[%c0_3, %c0_4] : memref<1x1152xf32, #tpu.memory_space<vmem>>, vector<1x1152xf32>
    %5 = vector.broadcast %4 : vector<1x1152xf32> to vector<256x1152xf32>
    %6 = arith.addf %3, %5 : vector<256x1152xf32>
    %cst_5 = arith.constant 0.000000e+00 : f32
    %7 = vector.broadcast %cst_5 : f32 to vector<256x1152xf32>
    %8 = arith.maximumf %6, %7 : vector<256x1152xf32>
    %9 = arith.truncf %8 : vector<256x1152xf32> to vector<256x1152xbf16>
    %c0_6 = arith.constant 0 : index
    %c0_7 = arith.constant 0 : index
    %10 = vector.load %arg4[%c0_6, %c0_7] : memref<1152x128xbf16, #tpu.memory_space<vmem>>, vector<1152x128xbf16>
    %cst_8 = arith.constant dense<0.000000e+00> : vector<256x128xf32>
    %11 = tpu.matmul %9, %10, %cst_8 {dimension_numbers = #tpu.dot_dimension_numbers<[1], [0], [0], [1], [0, 0, 1, 1], [], []>} : vector<256x1152xbf16>, vector<1152x128xbf16>, vector<256x128xf32> -> vector<256x128xf32>
    %c0_9 = arith.constant 0 : index
    %c0_10 = arith.constant 0 : index
    %12 = vector.load %arg5[%c0_9, %c0_10] : memref<1x128xf32, #tpu.memory_space<vmem>>, vector<1x128xf32>
    %13 = vector.broadcast %12 : vector<1x128xf32> to vector<256x128xf32>
    %14 = arith.addf %11, %13 : vector<256x128xf32>
    %c0_11 = arith.constant 0 : index
    %c0_12 = arith.constant 0 : index
    %15 = vector.load %arg6[%c0_11, %c0_12] : memref<256x128xf32, #tpu.memory_space<vmem>>, vector<256x128xf32>
    tpu.vector_store %arg6[%c0_11, %c0_12], %14 {strides = array<i32>} : memref<256x128xf32, #tpu.memory_space<vmem>>, vector<256x128xf32>,
    return
  }
  func.func @transform_0(%arg0: i32) -> (i32, i32) {
    %c0_i32 = arith.constant 0 : i32
    %c0_i32_0 = arith.constant 0 : i32
    return %arg0, %c0_i32 : i32, i32
  }
  func.func @transform_1(%arg0: i32) -> (i32, i32) {
    %c0_i32 = arith.constant 0 : i32
    %c0_i32_0 = arith.constant 0 : i32
    %c0_i32_1 = arith.constant 0 : i32
    return %c0_i32, %c0_i32_0 : i32, i32
  }
  func.func @transform_2(%arg0: i32) -> (i32, i32) {
    %c0_i32 = arith.constant 0 : i32
    %c0_i32_0 = arith.constant 0 : i32
    %c0_i32_1 = arith.constant 0 : i32
    return %c0_i32, %c0_i32_0 : i32, i32
  }
  func.func @transform_3(%arg0: i32) -> (i32, i32) {
    %c0_i32 = arith.constant 0 : i32
    %c0_i32_0 = arith.constant 0 : i32
    %c0_i32_1 = arith.constant 0 : i32
    return %c0_i32, %c0_i32_0 : i32, i32
  }
  func.func @transform_4(%arg0: i32) -> (i32, i32) {
    %c0_i32 = arith.constant 0 : i32
    %c0_i32_0 = arith.constant 0 : i32
    %c0_i32_1 = arith.constant 0 : i32
    return %c0_i32, %c0_i32_0 : i32, i32
  }
  func.func @transform_5(%arg0: i32) -> (i32, i32) {
    %c0_i32 = arith.constant 0 : i32
    %c0_i32_0 = arith.constant 0 : i32
    return %arg0, %c0_i32 : i32, i32
  }
}

</mosaic_0001>

<bundles_post_ra>
// kernel: ar_net_forward.1
= control target key start
LH: loop header
LB: loop body
LE: loop exit
PB: predicated region body
PF: predicated region fallthrough
CT: control target
= control target key end

     0   :  { %s5115_s18 = smov 0   ;;  %s7350_s0 = inlined_call_operand.vmem [shape: f32[512,200], index: 0, kind: input, shape index: {}]   ;;  %s7351_s1 = inlined_call_operand.vmem [shape: bf16[200,1152], index: 1, kind: input, shape index: {}]   ;;  %s7352_s2 = inlined_call_operand.vmem [shape: f32[1,1152], index: 2, kind: input, shape index: {}]   ;;  %s7353_s3 = inlined_call_operand.vmem [shape: bf16[1152,128], index: 3, kind: input, shape index: {}]   ;;  %s7354_s4 = inlined_call_operand.vmem [shape: f32[1,128], index: 4, kind: input, shape index: {}]   ;;  %s7355_s5 = inlined_call_operand.vmem [shape: f32[512,128], index: 5, kind: output, shape index: {}]  }
   0x1 LB: > { %s3995_s19 = sadd.s32 4294967295, %s5082_s18   ;;  %p3999_p0 = scmp.ge.s32.totalorder %s5082_s18, 1  ;;  %s5082_s18 = sphi %s5115_s18, %s15_s18  }
   0x2   : > { %p189_p1 = scmp.lt.s32.totalorder %s5082_s18, 3 }
   0x4   : > { %p190_p2 = pnand %p3999_p0, %p189_p1 }
   0x6   : > { %193 = sbr.rel (%p190_p2) target bundleno = 870 (0x366), region = 40 }
   0xb   : > { %v4838_v0 = vld [vmem:[%s7351_s1 + $0x1fc] ss:$36 sps:$4 sm:$0xff]   ;;  %v4840_v1 = vld [vmem:[%s7351_s1 + $0x204] ss:$36 sps:$4 sm:$0xff]   ;;  %v4844_v4 = vld [vmem:[%s7351_s1 + $0x1b4] ss:$36 sps:$4 sm:$0xff]  }
   0xc   : > { %1154 = vmatprep.subr.bf16.mxu0 %v4838_v0  ;;  %v4842_v2 = vld [vmem:[%s7351_s1 + $0x1f8] ss:$36 sps:$4 sm:$0xff]   ;;  %v4843_v3 = vld [vmem:[%s7351_s1 + $0x200] ss:$36 sps:$4 sm:$0xff]   ;;  %1347 = vmatprep.subr.bf16.mxu1 %v4840_v1  ;;  %v4848_v6 = vld [vmem:[%s7351_s1 + $0x1b0] ss:$36 sps:$4 sm:$0xff]  }
   0xd   : > { %1155 = vmatpush1.bf16.msra.mxu0 %v4842_v2  ;;  %1348 = vmatpush1.bf16.msra.mxu1 %v4843_v3  ;;  %v4846_v5 = vld [vmem:[%s7351_s1 + $0x1bc] ss:$36 sps:$4 sm:$0xff]   ;;  %v4850_v8 = vld [vmem:[%s7351_s1 + $0x16c] ss:$36 sps:$4 sm:$0xff]   ;;  %v4852_v9 = vld [vmem:[%s7351_s1 + $0x174] ss:$36 sps:$4 sm:$0xff]  }
   0xe   : > { %1156 = vmatprep.subr.bf16.mxu0 %v4844_v4  ;;  %v4849_v7 = vld [vmem:[%s7351_s1 + $0x1b8] ss:$36 sps:$4 sm:$0xff]   ;;  %1349 = vmatprep.subr.bf16.mxu1 %v4846_v5  ;;  %v4854_v10 = vld [vmem:[%s7351_s1 + $0x168] ss:$36 sps:$4 sm:$0xff]   ;;  %v4855_v11 = vld [vmem:[%s7351_s1 + $0x170] ss:$36 sps:$4 sm:$0xff]  }
   0xf   : > { %v4856_v12 = vld [vmem:[%s7351_s1 + $0x124] ss:$36 sps:$4 sm:$0xff]   ;;  %v4858_v13 = vld [vmem:[%s7351_s1 + $0x12c] ss:$36 sps:$4 sm:$0xff]   ;;  %v4862_v16 = vld [vmem:[%s7351_s1 + $0xdc] ss:$36 sps:$4 sm:$0xff]  }
  0x10   : > { %v4860_v14 = vld [vmem:[%s7351_s1 + $0x120] ss:$36 sps:$4 sm:$0xff]   ;;  %v4861_v15 = vld [vmem:[%s7351_s1 + $0x128] ss:$36 sps:$4 sm:$0xff]   ;;  %v4866_v18 = vld [vmem:[%s7351_s1 + $0xd8] ss:$36 sps:$4 sm:$0xff]  }
  0x11   : > { %1157 = vmatpush1.bf16.msra.mxu0 %v4848_v6  ;;  %1350 = vmatpush1.bf16.msra.mxu1 %v4849_v7  ;;  %v4864_v17 = vld [vmem:[%s7351_s1 + $0xe4] ss:$36 sps:$4 sm:$0xff]   ;;  %v4868_v20 = vld [vmem:[%s7351_s1 + $0x94] ss:$36 sps:$4 sm:$0xff]   ;;  %s4000_s14 = sshll.u32 %s3995_s19, 5  ;;  %vm1126_vm0 = vcmask 1043456  }
  0x12   : > { %1158 = vmatprep.subr.bf16.mxu0 %v4850_v8  ;;  %1351 = vmatprep.subr.bf16.mxu1 %v4852_v9  ;;  %v4867_v19 = vld [vmem:[%s7351_s1 + $0xe0] ss:$36 sps:$4 sm:$0xff]   ;;  %p219_p3 = scmp.lt.s32.totalorder %s4000_s14, 63  ;;  %v4872_v22 = vld [vmem:[%s7351_s1 + $0x90] ss:$36 sps:$4 sm:$0xff]   ;;  %v449_v31 = vld [vmem:[%s7351_s1 + $0x368] sm:$0xff] }
  0x13   : > { %v4870_v21 = vld [vmem:[%s7351_s1 + $0x9c] ss:$36 sps:$4 sm:$0xff]   ;;  %v4874_v24 = vld [vmem:[%s7351_s1 + $0x4c] ss:$36 sps:$4 sm:$0xff]   ;;  %v4876_v25 = vld [vmem:[%s7351_s1 + $0x54] ss:$36 sps:$4 sm:$0xff]   ;;  %v4117_v35 = vcombine.high %v449_v31, %v449_v31  ;;  %v4116_v37 = vcombine.low %v449_v31, %v449_v31 }
  0x14   : > { %v4873_v23 = vld [vmem:[%s7351_s1 + $0x98] ss:$36 sps:$4 sm:$0xff]   ;;  %v4878_v26 = vld [vmem:[%s7351_s1 + $0x48] ss:$36 sps:$4 sm:$0xff]   ;;  %s7468_s14 = smov (!%p219_p3, %s4000_s14), 63  ;;  %v448_v30 = vld [vmem:[%s7351_s1 + $0x360] sm:$0xff] }
  0x15   : > { %1159 = vmatpush1.bf16.msra.mxu0 %v4854_v10  ;;  %1352 = vmatpush1.bf16.msra.mxu1 %v4855_v11  ;;  %v4879_v27 = vld [vmem:[%s7351_s1 + $0x50] ss:$36 sps:$4 sm:$0xff]   ;;  %v4880_v28 = vld [vmem:[%s7351_s1 + $0x4] ss:$36 sps:$4 sm:$0xff]   ;;  %s4282_s16 = sshll.u32 %s7468_s14, 4  ;;  %v4115_v34 = vcombine.high %v448_v30, %v448_v30  ;;  %v4114_v36 = vcombine.low %v448_v30, %v448_v30  ;;  %v1134_v40 = vsel %vm1126_vm0, %v4116_v37, 0 }
  0x16   : > { %1160 = vmatprep.subr.bf16.mxu0 %v4856_v12  ;;  %1353 = vmatprep.subr.bf16.mxu1 %v4858_v13  ;;  %v4882_v29 = vld [vmem:[%s7351_s1 + $0xc] ss:$36 sps:$4 sm:$0xff]   ;;  %v4884_v32 = vld [vmem:[%s7351_s1] ss:$36 sps:$4 sm:$0xff]   ;;  %s5233_s19 = scalar_lea.vmem %s7350_s0, %s4282_s16  ;;  %vm1077_vm1 = vcmask 588800   ;;  %s4004_s15 = sshll.u32 %s7468_s14, 3 }
  0x17   : > { %v4885_v33 = vld [vmem:[%s7351_s1 + $0x8] ss:$36 sps:$4 sm:$0xff]   ;;  %v4890_v38 = vld [vmem:[%s7351_s1 + $0x31c] ss:$36 sps:$4 sm:$0xff]   ;;  %v1128_v39 = vsel %vm1126_vm0, %v4114_v36, 0  ;;  %v234_v60 = vld [vmem:[%s5233_s19 + $0x10] sm:$0xff]  ;;  %s7243_s20 = scalar_lea.vmem %s7355_s5, %s4004_s15 }
  0x18   : > { %v4892_v41 = vld [vmem:[%s7351_s1 + $0x324] ss:$36 sps:$4 sm:$0xff]   ;;  %v235_v43 = vld [vmem:[%s5233_s19 + $0x18] sm:$0xff]  ;;  %v4900_v49 = vld [vmem:[%s7351_s1 + $0x2d0] ss:$36 sps:$4 sm:$0xff]  }
  0x19   : > { %1161 = vmatpush1.bf16.msra.mxu0 %v4860_v14  ;;  %1354 = vmatpush1.bf16.msra.mxu1 %v4861_v15  ;;  %v233_v42 = vld [vmem:[%s5233_s19 + $0x8] sm:$0xff]  ;;  %v4894_v45 = vld [vmem:[%s7351_s1 + $0x318] ss:$36 sps:$4 sm:$0xff]   ;;  %v4895_v46 = vld [vmem:[%s7351_s1 + $0x320] ss:$36 sps:$4 sm:$0xff]  }
  0x1a   : > { %1162 = vmatprep.subr.bf16.mxu0 %v4862_v16  ;;  %1355 = vmatprep.subr.bf16.mxu1 %v4864_v17  ;;  %v5247_v44 = vpack.c.bf16 %v235_v43, %v233_v42  ;;  %v4896_v47 = vld [vmem:[%s7351_s1 + $0x2d4] ss:$36 sps:$4 sm:$0xff]   ;;  %v4898_v48 = vld [vmem:[%s7351_s1 + $0x2dc] ss:$36 sps:$4 sm:$0xff]   ;;  %v4902_v51 = vld [vmem:[%s7351_s1 + $0x28c] ss:$36 sps:$4 sm:$0xff]  }
  0x1b   : > { %v4901_v50 = vld [vmem:[%s7351_s1 + $0x2d8] ss:$36 sps:$4 sm:$0xff]   ;;  %v4906_v53 = vld [vmem:[%s7351_s1 + $0x288] ss:$36 sps:$4 sm:$0xff]   ;;  %v4907_v54 = vld [vmem:[%s7351_s1 + $0x290] ss:$36 sps:$4 sm:$0xff]  }
  0x1c   : > { %4124 = vmatprep.mubr.msk.bf16.mxu0 %vm1077_vm1, %v5247_v44  ;;  %4141 = vmatprep.mubr.msk.bf16.mxu1 %vm1077_vm1, %v5247_v44  ;;  %v4904_v52 = vld [vmem:[%s7351_s1 + $0x294] ss:$36 sps:$4 sm:$0xff]   ;;  %v4908_v55 = vld [vmem:[%s7351_s1 + $0x244] ss:$36 sps:$4 sm:$0xff]   ;;  %v4910_v56 = vld [vmem:[%s7351_s1 + $0x24c] ss:$36 sps:$4 sm:$0xff]  }
  0x1d   : > { %1163 = vmatpush1.bf16.msra.mxu0 %v4866_v18  ;;  %1356 = vmatpush1.bf16.msra.mxu1 %v4867_v19  ;;  %v4912_v57 = vld [vmem:[%s7351_s1 + $0x240] ss:$36 sps:$4 sm:$0xff]   ;;  %v4913_v58 = vld [vmem:[%s7351_s1 + $0x248] ss:$36 sps:$4 sm:$0xff]   ;;  %v4919_v62 = vld [vmem:[%s7351_s1 + $0x214] ss:$36 sps:$4 sm:$0xff]  }
  0x1e   : > { %1164 = vmatprep.subr.bf16.mxu0 %v4868_v20  ;;  %1357 = vmatprep.subr.bf16.mxu1 %v4870_v21  ;;  %v232_v59 = vld [vmem:[%s5233_s19] sm:$0xff]  ;;  %v4916_v61 = vld [vmem:[%s7351_s1 + $0x20c] ss:$36 sps:$4 sm:$0xff]   ;;  %v239_v0 = vld [vmem:[%s5233_s19 + $0x38] sm:$0xff] }
  0x1f   : > { %v237_v63 = vld [vmem:[%s5233_s19 + $0x28] sm:$0xff]  ;;  %v5305_v1 = vpack.c.bf16 %v234_v60, %v232_v59  ;;  %v4917_v3 = vld [vmem:[%s7351_s1 + $0x210] ss:$36 sps:$4 sm:$0xff]   ;;  %v236_v5 = vld [vmem:[%s5233_s19 + $0x20] sm:$0xff] }
  0x20   : > { %v4914_v2 = vld [vmem:[%s7351_s1 + $0x208] ss:$36 sps:$4 sm:$0xff]   ;;  %v5313_v4 = vpack.c.bf16 %v239_v0, %v237_v63  ;;  %v238_v6 = vld [vmem:[%s5233_s19 + $0x30] sm:$0xff]  ;;  %v4920_v7 = vld [vmem:[%s7351_s1 + $0x1c0] ss:$36 sps:$4 sm:$0xff]  }
  0x21   : > { %1165 = vmatpush1.bf16.msra.mxu0 %v4872_v22  ;;  %1358 = vmatpush1.bf16.msra.mxu1 %v4873_v23  ;;  %v4922_v8 = vld [vmem:[%s7351_s1 + $0x1c4] ss:$36 sps:$4 sm:$0xff]   ;;  %v4925_v9 = vld [vmem:[%s7351_s1 + $0x1cc] ss:$36 sps:$4 sm:$0xff]   ;;  %v243_v12 = vld [vmem:[%s5233_s19 + $0x58] sm:$0xff]  ;;  %v5343_v15 = vpack.c.bf16 %v238_v6, %v236_v5 }
  0x22   : > { %1166 = vmatprep.subr.bf16.mxu0 %v4874_v24  ;;  %1359 = vmatprep.subr.bf16.mxu1 %v4876_v25  ;;  %v4923_v10 = vld [vmem:[%s7351_s1 + $0x1c8] ss:$36 sps:$4 sm:$0xff]   ;;  %v4928_v13 = vld [vmem:[%s7351_s1 + $0x17c] ss:$36 sps:$4 sm:$0xff]   ;;  %v4934_v19 = vld [vmem:[%s7351_s1 + $0x134] ss:$36 sps:$4 sm:$0xff]  }
  0x23   : > { %v241_v11 = vld [vmem:[%s5233_s19 + $0x48] sm:$0xff]  ;;  %v4926_v17 = vld [vmem:[%s7351_s1 + $0x178] ss:$36 sps:$4 sm:$0xff]   ;;  %v4929_v18 = vld [vmem:[%s7351_s1 + $0x180] ss:$36 sps:$4 sm:$0xff]  }
  0x24   : > { %v4931_v14 = vld [vmem:[%s7351_s1 + $0x184] ss:$36 sps:$4 sm:$0xff]   ;;  %v5345_v16 = vpack.c.bf16 %v243_v12, %v241_v11  ;;  %v4937_v20 = vld [vmem:[%s7351_s1 + $0x13c] ss:$36 sps:$4 sm:$0xff]   ;;  %v242_v22 = vld [vmem:[%s5233_s19 + $0x50] sm:$0xff] }
  0x25   : > { %1167 = vmatpush1.bf16.msra.mxu0 %v4878_v26  ;;  %1360 = vmatpush1.bf16.msra.mxu1 %v4879_v27  ;;  %v240_v21 = vld [vmem:[%s5233_s19 + $0x40] sm:$0xff]  ;;  %v245_v23 = vld [vmem:[%s5233_s19 + $0x68] sm:$0xff]  ;;  %v247_v24 = vld [vmem:[%s5233_s19 + $0x78] sm:$0xff] }
  0x26   : > { %1168 = vmatprep.subr.bf16.mxu0 %v4880_v28  ;;  %1361 = vmatprep.subr.bf16.mxu1 %v4882_v29  ;;  %v4932_v25 = vld [vmem:[%s7351_s1 + $0x130] ss:$36 sps:$4 sm:$0xff]   ;;  %v4935_v26 = vld [vmem:[%s7351_s1 + $0x138] ss:$36 sps:$4 sm:$0xff]   ;;  %v5381_v29 = vpack.c.bf16 %v242_v22, %v240_v21  ;;  %v5383_v30 = vpack.c.bf16 %v247_v24, %v245_v23  ;;  %v4938_v31 = vld [vmem:[%s7351_s1 + $0xe8] ss:$36 sps:$4 sm:$0xff]  }
  0x27   : > { %v4940_v27 = vld [vmem:[%s7351_s1 + $0xec] ss:$36 sps:$4 sm:$0xff]   ;;  %v4943_v28 = vld [vmem:[%s7351_s1 + $0xf4] ss:$36 sps:$4 sm:$0xff]   ;;  %v4955_v42 = vld [vmem:[%s7351_s1 + $0x64] ss:$36 sps:$4 sm:$0xff]  }
  0x28   : > { %v246_v36 = vld [vmem:[%s5233_s19 + $0x70] sm:$0xff]  ;;  %v249_v37 = vld [vmem:[%s5233_s19 + $0x88] sm:$0xff]  ;;  %v256_v22 = vld [vmem:[%s5233_s19 + $0xc0] sm:$0xff] }
  0x29   : > { %1169 = vmatpush1.bf16.msra.mxu0 %v4884_v32  ;;  %1362 = vmatpush1.bf16.msra.mxu1 %v4885_v33  ;;  %v4941_v32 = vld [vmem:[%s7351_s1 + $0xf0] ss:$36 sps:$4 sm:$0xff]   ;;  %v244_v33 = vld [vmem:[%s5233_s19 + $0x60] sm:$0xff]  ;;  %v261_v24 = vld [vmem:[%s5233_s19 + $0xe8] sm:$0xff] }
  0x2a   : > { %4123 = vmatprep.subr.msk.bf16.mxu0 %vm1126_vm0, %v4115_v34  ;;  %4140 = vmatprep.subr.msk.bf16.mxu1 %vm1126_vm0, %v4117_v35  ;;  %v4946_v34 = vld [vmem:[%s7351_s1 + $0xa4] ss:$36 sps:$4 sm:$0xff]   ;;  %v4949_v35 = vld [vmem:[%s7351_s1 + $0xac] ss:$36 sps:$4 sm:$0xff]   ;;  %v5419_v43 = vpack.c.bf16 %v246_v36, %v244_v33 }
  0x2b   : > { %v4968_v6 = vld [vmem:[%s7351_s1 + $0x32c] ss:$36 sps:$4 sm:$0xff]   ;;  %v4974_v12 = vld [vmem:[%s7351_s1 + $0x2e4] ss:$36 sps:$4 sm:$0xff]  }
  0x2c   : > { %v4969_v11 = vld [vmem:[%s7351_s1 + $0x330] ss:$36 sps:$4 sm:$0xff]   ;;  %v4983_v21 = vld [vmem:[%s7351_s1 + $0x2a4] ss:$36 sps:$4 sm:$0xff]  }
  0x2d   : > { %1177 = vmatpush2.bf16.msra.mxu0 %v1128_v39  ;;  %1370 = vmatpush2.bf16.msra.mxu1 %v1134_v40  ;;  %v4944_v39 = vld [vmem:[%s7351_s1 + $0xa0] ss:$36 sps:$4 sm:$0xff]   ;;  %v4947_v40 = vld [vmem:[%s7351_s1 + $0xa8] ss:$36 sps:$4 sm:$0xff]   ;;  %v258_v23 = vld [vmem:[%s5233_s19 + $0xd0] sm:$0xff] }
  0x2e   : > { %1178 = vmatprep.subr.bf16.mxu0 %v4890_v38  ;;  %1371 = vmatprep.subr.bf16.mxu1 %v4892_v41  ;;  %v251_v38 = vld [vmem:[%s5233_s19 + $0x98] sm:$0xff]  ;;  %v4984_v33 = vld [vmem:[%s7351_s1 + $0x250] ss:$36 sps:$4 sm:$0xff]   ;;  %v260_v36 = vld [vmem:[%s5233_s19 + $0xe0] sm:$0xff] }
  0x2f   : > { %v4952_v41 = vld [vmem:[%s7351_s1 + $0x5c] ss:$36 sps:$4 sm:$0xff]  }
  0x31   : > { %1179 = vmatpush2.bf16.msra.mxu0 %v4894_v45  ;;  %1372 = vmatpush2.bf16.msra.mxu1 %v4895_v46  ;;  %v5421_v45 = vpack.c.bf16 %v251_v38, %v249_v37  ;;  %v4950_v46 = vld [vmem:[%s7351_s1 + $0x58] ss:$36 sps:$4 sm:$0xff]   ;;  %v262_v37 = vld [vmem:[%s5233_s19 + $0xf0] sm:$0xff]  ;;  %v265_v38 = vld [vmem:[%s5233_s19 + $0x108] sm:$0xff] }
  0x32   : > { %1180 = vmatprep.subr.bf16.mxu0 %v4896_v47  ;;  %1373 = vmatprep.subr.bf16.mxu1 %v4898_v48  ;;  %v4953_v47 = vld [vmem:[%s7351_s1 + $0x60] ss:$36 sps:$4 sm:$0xff]  }
  0x33   : > { %v248_v48 = vld [vmem:[%s5233_s19 + $0x80] sm:$0xff] }
  0x35   : > { %1181 = vmatpush2.bf16.msra.mxu0 %v4900_v49  ;;  %1374 = vmatpush2.bf16.msra.mxu1 %v4901_v50  ;;  %v4958_v49 = vld [vmem:[%s7351_s1 + $0x14] ss:$36 sps:$4 sm:$0xff]   ;;  %v4961_v50 = vld [vmem:[%s7351_s1 + $0x1c] ss:$36 sps:$4 sm:$0xff]  }
  0x36   : > { %1182 = vmatprep.subr.bf16.mxu0 %v4902_v51  ;;  %1375 = vmatprep.subr.bf16.mxu1 %v4904_v52  ;;  %v450_v51 = vld [vmem:[%s7351_s1 + $0x370] sm:$0xff]  ;;  %v451_v52 = vld [vmem:[%s7351_s1 + $0x378] sm:$0xff] }
  0x37   : > { %v4119_v59 = vcombine.high %v450_v51, %v450_v51  ;;  %v4121_v60 = vcombine.high %v451_v52, %v451_v52 }
  0x39   : > { %1183 = vmatpush2.bf16.msra.mxu0 %v4906_v53  ;;  %1376 = vmatpush2.bf16.msra.mxu1 %v4907_v54  ;;  %v250_v53 = vld [vmem:[%s5233_s19 + $0x90] sm:$0xff]  ;;  %v253_v54 = vld [vmem:[%s5233_s19 + $0xa8] sm:$0xff] }
  0x3a   : > { %1184 = vmatprep.subr.bf16.mxu0 %v4908_v55  ;;  %1377 = vmatprep.subr.bf16.mxu1 %v4910_v56  ;;  %v255_v55 = vld [vmem:[%s5233_s19 + $0xb8] sm:$0xff]  ;;  %v4956_v56 = vld [vmem:[%s7351_s1 + $0x10] ss:$36 sps:$4 sm:$0xff]  }
  0x3b   : > { %v5459_v63 = vpack.c.bf16 %v255_v55, %v253_v54  ;;  %v273_v54 = vld [vmem:[%s5233_s19 + $0x148] sm:$0xff]  ;;  %v275_v55 = vld [vmem:[%s5233_s19 + $0x158] sm:$0xff] }
  0x3d   : > { %1185 = vmatpush2.bf16.msra.mxu0 %v4912_v57  ;;  %1378 = vmatpush2.bf16.msra.mxu1 %v4913_v58  ;;  %v4959_v57 = vld [vmem:[%s7351_s1 + $0x18] ss:$36 sps:$4 sm:$0xff]   ;;  %v4118_v58 = vcombine.low %v450_v51, %v450_v51 }
  0x3e   : > { %1540 = vmatprep.subr.bf16.mxu0 %v4916_v61  ;;  %1733 = vmatprep.subr.bf16.mxu1 %v4919_v62  ;;  %v4120_v61 = vcombine.low %v451_v52, %v451_v52  ;;  %v5457_v62 = vpack.c.bf16 %v250_v53, %v248_v48  ;;  %v269_v48 = vld [vmem:[%s5233_s19 + $0x128] sm:$0xff]  ;;  %v268_v52 = vld [vmem:[%s5233_s19 + $0x120] sm:$0xff]  ;;  %v270_v53 = vld [vmem:[%s5233_s19 + $0x130] sm:$0xff] }
  0x3f   : > { %v1140_v0 = vsel %vm1126_vm0, %v4118_v58, 0  ;;  %v272_v58 = vld [vmem:[%s5233_s19 + $0x140] sm:$0xff] }
  0x40   : > { %1187 = vmatmul.mubr.bf16.vlgmr.msra.gmra.mxu0 %v5305_v1  ;;  %1380 = vmatmul.mubr.bf16.vlgmr.msra.gmra.mxu1 %v5305_v1  ;;  %v1146_v5 = vsel %vm1126_vm0, %v4120_v61, 0  ;;  %v279_v61 = vld [vmem:[%s5233_s19 + $0x178] sm:$0xff] }
  0x41   : > { %1541 = vmatpush1.bf16.msra.mxu0 %v4914_v2  ;;  %1734 = vmatpush1.bf16.msra.mxu1 %v4917_v3  ;;  %v252_v2 = vld [vmem:[%s5233_s19 + $0xa0] sm:$0xff]  ;;  %v254_v3 = vld [vmem:[%s5233_s19 + $0xb0] sm:$0xff] }
  0x42   : > { %4125 = vmatprep.mubr.msk.bf16.mxu0 %vm1077_vm1, %v5313_v4  ;;  %4142 = vmatprep.mubr.msk.bf16.mxu1 %vm1077_vm1, %v5313_v4 }
  0x43   : > { %1542 = vmatprep.subr.bf16.mxu0 %v4922_v8  ;;  %1735 = vmatprep.subr.bf16.mxu1 %v4925_v9  ;;  %v257_v8 = vld [vmem:[%s5233_s19 + $0xc8] sm:$0xff]  ;;  %v259_v9 = vld [vmem:[%s5233_s19 + $0xd8] sm:$0xff] }
  0x45   : > { %1543 = vmatpush1.bf16.msra.mxu0 %v4920_v7  ;;  %1736 = vmatpush1.bf16.msra.mxu1 %v4923_v10  ;;  %v4971_v7 = vld [vmem:[%s7351_s1 + $0x334] ss:$36 sps:$4 sm:$0xff]   ;;  %v4966_v10 = vld [vmem:[%s7351_s1 + $0x328] ss:$36 sps:$4 sm:$0xff]  }
  0x46   : > { %1544 = vmatprep.subr.bf16.mxu0 %v4928_v13  ;;  %1737 = vmatprep.subr.bf16.mxu1 %v4931_v14  ;;  %v4977_v13 = vld [vmem:[%s7351_s1 + $0x2ec] ss:$36 sps:$4 sm:$0xff]   ;;  %v5493_v14 = vpack.c.bf16 %v254_v3, %v252_v2  ;;  %v276_v3 = vld [vmem:[%s5233_s19 + $0x160] sm:$0xff] }
  0x48   : > { %1197 = vmatmul.mubr.bf16.gmra.mxu0 %v5343_v15  ;;  %1390 = vmatmul.mubr.bf16.gmra.mxu1 %v5343_v15 }
  0x49   : > { %4126 = vmatprep.mubr.msk.bf16.mxu0 %vm1077_vm1, %v5345_v16  ;;  %4143 = vmatprep.mubr.msk.bf16.mxu1 %vm1077_vm1, %v5345_v16 }
  0x4a   : > { %1545 = vmatpush1.bf16.msra.mxu0 %v4926_v17  ;;  %1738 = vmatpush1.bf16.msra.mxu1 %v4929_v18  ;;  %v4972_v17 = vld [vmem:[%s7351_s1 + $0x2e0] ss:$36 sps:$4 sm:$0xff]   ;;  %v4975_v18 = vld [vmem:[%s7351_s1 + $0x2e8] ss:$36 sps:$4 sm:$0xff]  }
  0x4b   : > { %1546 = vmatprep.subr.bf16.mxu0 %v4934_v19  ;;  %1739 = vmatprep.subr.bf16.mxu1 %v4937_v20  ;;  %v5501_v19 = vpack.c.bf16 %v259_v9, %v257_v8  ;;  %v4980_v20 = vld [vmem:[%s7351_s1 + $0x29c] ss:$36 sps:$4 sm:$0xff]  }
  0x4e   : > { %1547 = vmatpush1.bf16.msra.mxu0 %v4932_v25  ;;  %1740 = vmatpush1.bf16.msra.mxu1 %v4935_v26  ;;  %v263_v25 = vld [vmem:[%s5233_s19 + $0xf8] sm:$0xff] }
  0x4f   : > { %1548 = vmatprep.subr.bf16.mxu0 %v4940_v27  ;;  %1741 = vmatprep.subr.bf16.mxu1 %v4943_v28  ;;  %v4978_v26 = vld [vmem:[%s7351_s1 + $0x298] ss:$36 sps:$4 sm:$0xff]   ;;  %v4981_v27 = vld [vmem:[%s7351_s1 + $0x2a0] ss:$36 sps:$4 sm:$0xff]  }
  0x50   : > { %1207 = vmatmul.mubr.bf16.gmra.mxu0 %v5381_v29  ;;  %1400 = vmatmul.mubr.bf16.gmra.mxu1 %v5381_v29  ;;  %v4986_v28 = vld [vmem:[%s7351_s1 + $0x254] ss:$36 sps:$4 sm:$0xff]  }
  0x51   : > { %4127 = vmatprep.mubr.msk.bf16.mxu0 %vm1077_vm1, %v5383_v30  ;;  %4144 = vmatprep.mubr.msk.bf16.mxu1 %vm1077_vm1, %v5383_v30 }
  0x52   : > { %1549 = vmatpush1.bf16.msra.mxu0 %v4938_v31  ;;  %1742 = vmatpush1.bf16.msra.mxu1 %v4941_v32  ;;  %v4989_v31 = vld [vmem:[%s7351_s1 + $0x25c] ss:$36 sps:$4 sm:$0xff]   ;;  %v5531_v32 = vpack.c.bf16 %v258_v23, %v256_v22  ;;  %v289_v22 = vld [vmem:[%s5233_s19 + $0x1c8] sm:$0xff] }
  0x53   : > { %1550 = vmatprep.subr.bf16.mxu0 %v4946_v34  ;;  %1743 = vmatprep.subr.bf16.mxu1 %v4949_v35  ;;  %v4987_v34 = vld [vmem:[%s7351_s1 + $0x258] ss:$36 sps:$4 sm:$0xff]   ;;  %v5539_v35 = vpack.c.bf16 %v263_v25, %v261_v24 }
  0x54   : > { %v291_v23 = vld [vmem:[%s5233_s19 + $0x1d8] sm:$0xff] }
  0x55   : > { %v5639_v25 = vpack.c.bf16 %v291_v23, %v289_v22 }
  0x56   : > { %1551 = vmatpush1.bf16.msra.mxu0 %v4944_v39  ;;  %1744 = vmatpush1.bf16.msra.mxu1 %v4947_v40  ;;  %v267_v39 = vld [vmem:[%s5233_s19 + $0x118] sm:$0xff]  ;;  %v5084_v40 = vmov 0  }
  0x57   : > { %1552 = vmatprep.subr.bf16.mxu0 %v4952_v41  ;;  %1745 = vmatprep.subr.bf16.mxu1 %v4955_v42  ;;  %v5553_v41 = vpack.c.bf16 %v262_v37, %v260_v36  ;;  %v5555_v42 = vpack.c.bf16 %v267_v39, %v265_v38  ;;  %v292_v36 = vld [vmem:[%s5233_s19 + $0x1e0] sm:$0xff]  ;;  %v294_v37 = vld [vmem:[%s5233_s19 + $0x1f0] sm:$0xff]  ;;  %v4990_v39 = vld [vmem:[%s7351_s1 + $0x218] ss:$36 sps:$4 sm:$0xff]  }
  0x58   : > { %1217 = vmatmul.mubr.bf16.gmra.mxu0 %v5419_v43  ;;  %1410 = vmatmul.mubr.bf16.gmra.mxu1 %v5419_v43  ;;  %v5663_v38 = vpack.c.bf16 %v294_v37, %v292_v36 }
  0x59   : > { %4128 = vmatprep.mubr.msk.bf16.mxu0 %vm1077_vm1, %v5421_v45  ;;  %4145 = vmatprep.mubr.msk.bf16.mxu1 %vm1077_vm1, %v5421_v45 }
  0x5a   : > { %1553 = vmatpush1.bf16.msra.mxu0 %v4950_v46  ;;  %1746 = vmatpush1.bf16.msra.mxu1 %v4953_v47  ;;  %v264_v46 = vld [vmem:[%s5233_s19 + $0x100] sm:$0xff]  ;;  %v266_v47 = vld [vmem:[%s5233_s19 + $0x110] sm:$0xff] }
  0x5b   : > { %1554 = vmatprep.subr.bf16.mxu0 %v4958_v49  ;;  %1747 = vmatprep.subr.bf16.mxu1 %v4961_v50  ;;  %v271_v49 = vld [vmem:[%s5233_s19 + $0x138] sm:$0xff]  ;;  %v5567_v50 = vpack.c.bf16 %v266_v47, %v264_v46  ;;  %v4991_v46 = vld [vmem:[%s7351_s1 + $0x1d0] ss:$36 sps:$4 sm:$0xff]   ;;  %v4992_v47 = vld [vmem:[%s7351_s1 + $0x188] ss:$36 sps:$4 sm:$0xff]  }
  0x5c   : > { %v5569_v51 = vpack.c.bf16 %v271_v49, %v269_v48  ;;  %v4993_v48 = vld [vmem:[%s7351_s1 + $0x140] ss:$36 sps:$4 sm:$0xff]   ;;  %v4994_v49 = vld [vmem:[%s7351_s1 + $0xf8] ss:$36 sps:$4 sm:$0xff]  }
  0x5e   : > { %1555 = vmatpush1.bf16.msra.mxu0 %v4956_v56  ;;  %1748 = vmatpush1.bf16.msra.mxu1 %v4959_v57  ;;  %v5581_v56 = vpack.c.bf16 %v270_v53, %v268_v52  ;;  %v5583_v57 = vpack.c.bf16 %v275_v55, %v273_v54  ;;  %v4995_v52 = vld [vmem:[%s7351_s1 + $0xb0] ss:$36 sps:$4 sm:$0xff]   ;;  %v4996_v53 = vld [vmem:[%s7351_s1 + $0x68] ss:$36 sps:$4 sm:$0xff]   ;;  %v4997_v54 = vld [vmem:[%s7351_s1 + $0x20] ss:$36 sps:$4 sm:$0xff]  }
  0x5f   : > { %4157 = vmatprep.subr.msk.bf16.mxu0 %vm1126_vm0, %v4119_v59  ;;  %4174 = vmatprep.subr.msk.bf16.mxu1 %vm1126_vm0, %v4121_v60  ;;  %v274_v59 = vld [vmem:[%s5233_s19 + $0x150] sm:$0xff]  ;;  %v277_v60 = vld [vmem:[%s5233_s19 + $0x168] sm:$0xff]  ;;  %v4998_v55 = vld [vmem:[%s7351_s1 + $0x380] ss:$0 sps:$4 sm:$0xff]  }
  0x60   : > { %1227 = vmatmul.mubr.bf16.gmra.mxu0 %v5457_v62  ;;  %1420 = vmatmul.mubr.bf16.gmra.mxu1 %v5457_v62  ;;  %7361 = vst [vmem:[#allocation2_spill] sm:$0xff] %v5581_v56  ;;  %7362 = vst [vmem:[#allocation3_spill] sm:$0xff] %v5583_v57  ;;  %v5597_v2 = vpack.c.bf16 %v279_v61, %v277_v60  ;;  %v5000_v60 = vld [vmem:[%s7351_s1 + $0x2f0] ss:$36 sps:$4 sm:$0xff]   ;;  %v5001_v61 = vld [vmem:[%s7351_s1 + $0x2a8] ss:$36 sps:$4 sm:$0xff]  }
  0x61   : > { %4129 = vmatprep.mubr.msk.bf16.mxu0 %vm1077_vm1, %v5459_v63  ;;  %4146 = vmatprep.mubr.msk.bf16.mxu1 %vm1077_vm1, %v5459_v63 }
  0x62   : > { %1563 = vmatpush2.bf16.msra.mxu0 %v1140_v0  ;;  %1756 = vmatpush2.bf16.msra.mxu1 %v1146_v5  ;;  %v5595_v0 = vpack.c.bf16 %v274_v59, %v272_v58  ;;  %7364 = vst [vmem:[#allocation5_spill] sm:$0xff] %v5597_v2  ;;  %v278_v5 = vld [vmem:[%s5233_s19 + $0x170] sm:$0xff]  ;;  %v1152_v58 = vsel %vm1126_vm0, %v4998_v55, 0  ;;  %v4999_v59 = vld [vmem:[%s7351_s1 + $0x338] ss:$36 sps:$4 sm:$0xff]  }
  0x63   : > { %1564 = vmatprep.subr.bf16.mxu0 %v4968_v6  ;;  %1757 = vmatprep.subr.bf16.mxu1 %v4971_v7  ;;  %v281_v6 = vld [vmem:[%s5233_s19 + $0x188] sm:$0xff]  ;;  %v283_v7 = vld [vmem:[%s5233_s19 + $0x198] sm:$0xff]  ;;  %v5609_v8 = vpack.c.bf16 %v278_v5, %v276_v3  ;;  %v5002_v3 = vld [vmem:[%s7351_s1 + $0x260] ss:$36 sps:$4 sm:$0xff]  }
  0x64   : > { %7363 = vst [vmem:[#allocation4_spill] sm:$0xff] %v5595_v0  ;;  %v5611_v9 = vpack.c.bf16 %v283_v7, %v281_v6  ;;  %v5003_v5 = vld [vmem:[%s7353_s3 + $0x78] sm:$0xff]   ;;  %v457_v7 = vlaneseq }
  0x65   : > { %7365 = vst [vmem:[#allocation6_spill] sm:$0xff] %v5609_v8  ;;  %v5004_v6 = vld [vmem:[%s7353_s3 + $0xf8] sm:$0xff]  }
  0x66   : > { %1565 = vmatpush2.bf16.msra.mxu0 %v4966_v10  ;;  %1758 = vmatpush2.bf16.msra.mxu1 %v4969_v11  ;;  %v280_v10 = vld [vmem:[%s5233_s19 + $0x180] sm:$0xff]  ;;  %v282_v11 = vld [vmem:[%s5233_s19 + $0x190] sm:$0xff] }
  0x67   : > { %1566 = vmatprep.subr.bf16.mxu0 %v4974_v12  ;;  %1759 = vmatprep.subr.bf16.mxu1 %v4977_v13  ;;  %v285_v12 = vld [vmem:[%s5233_s19 + $0x1a8] sm:$0xff]  ;;  %v287_v13 = vld [vmem:[%s5233_s19 + $0x1b8] sm:$0xff] }
  0x68   : > { %1237 = vmatmul.mubr.bf16.gmra.mxu0 %v5493_v14  ;;  %1430 = vmatmul.mubr.bf16.gmra.mxu1 %v5493_v14 }
  0x69   : > { %4130 = vmatprep.mubr.msk.bf16.mxu0 %vm1077_vm1, %v5501_v19  ;;  %4147 = vmatprep.mubr.msk.bf16.mxu1 %vm1077_vm1, %v5501_v19 }
  0x6a   : > { %1567 = vmatpush2.bf16.msra.mxu0 %v4972_v17  ;;  %1760 = vmatpush2.bf16.msra.mxu1 %v4975_v18  ;;  %v5623_v17 = vpack.c.bf16 %v282_v11, %v280_v10  ;;  %v5625_v18 = vpack.c.bf16 %v287_v13, %v285_v12  ;;  %v453_v12 = vld [vmem:[%s7352_s2] sm:$0xff] }
  0x6b   : > { %1568 = vmatprep.subr.bf16.mxu0 %v4980_v20  ;;  %1761 = vmatprep.subr.bf16.mxu1 %v4983_v21  ;;  %v284_v20 = vld [vmem:[%s5233_s19 + $0x1a0] sm:$0xff]  ;;  %v286_v21 = vld [vmem:[%s5233_s19 + $0x1b0] sm:$0xff] }
  0x6c   : > { %v5637_v24 = vpack.c.bf16 %v286_v21, %v284_v20 }
  0x6e   : > { %1569 = vmatpush2.bf16.msra.mxu0 %v4978_v26  ;;  %1762 = vmatpush2.bf16.msra.mxu1 %v4981_v27  ;;  %v288_v26 = vld [vmem:[%s5233_s19 + $0x1c0] sm:$0xff]  ;;  %v290_v27 = vld [vmem:[%s5233_s19 + $0x1d0] sm:$0xff] }
  0x6f   : > { %1570 = vmatprep.subr.bf16.mxu0 %v4986_v28  ;;  %1763 = vmatprep.subr.bf16.mxu1 %v4989_v31  ;;  %v293_v28 = vld [vmem:[%s5233_s19 + $0x1e8] sm:$0xff]  ;;  %v295_v31 = vld [vmem:[%s5233_s19 + $0x1f8] sm:$0xff] }
  0x70   : > { %1247 = vmatmul.mubr.bf16.gmra.mxu0 %v5531_v32  ;;  %1440 = vmatmul.mubr.bf16.gmra.mxu1 %v5531_v32 }
  0x71   : > { %4131 = vmatprep.mubr.msk.bf16.mxu0 %vm1077_vm1, %v5539_v35  ;;  %4148 = vmatprep.mubr.msk.bf16.mxu1 %vm1077_vm1, %v5539_v35 }
  0x72   : > { %1571 = vmatpush2.bf16.msra.mxu0 %v4984_v33  ;;  %1764 = vmatpush2.bf16.msra.mxu1 %v4987_v34  ;;  %v5651_v33 = vpack.c.bf16 %v290_v27, %v288_v26  ;;  %v5653_v34 = vpack.c.bf16 %v295_v31, %v293_v28 }
  0x73   : > { %1926 = vmatprep.subr.bf16.mxu0 %v5084_v40  ;;  %4803 = vmatprep.subr.bf16.mxu1 %v5084_v40 }
  0x78   : > { %1257 = vmatmul.mubr.bf16.gmra.mxu0 %v5553_v41  ;;  %1450 = vmatmul.mubr.bf16.gmra.mxu1 %v5553_v41 }
  0x79   : > { %4132 = vmatprep.mubr.msk.bf16.mxu0 %vm1077_vm1, %v5555_v42  ;;  %4149 = vmatprep.mubr.msk.bf16.mxu1 %vm1077_vm1, %v5555_v42 }
  0x80   : > { %1267 = vmatmul.mubr.bf16.gmra.mxu0 %v5567_v50  ;;  %1460 = vmatmul.mubr.bf16.gmra.mxu1 %v5567_v50 }
  0x81   : > { %4133 = vmatprep.mubr.msk.bf16.mxu0 %vm1077_vm1, %v5569_v51  ;;  %4150 = vmatprep.mubr.msk.bf16.mxu1 %vm1077_vm1, %v5569_v51 }
  0x88   : > { %1277 = vmatmul.mubr.bf16.gmra.mxu0 %v5581_v56  ;;  %1470 = vmatmul.mubr.bf16.gmra.mxu1 %v5581_v56 }
  0x89   : > { %4134 = vmatprep.mubr.msk.bf16.mxu0 %vm1077_vm1, %v5583_v57  ;;  %4151 = vmatprep.mubr.msk.bf16.mxu1 %vm1077_vm1, %v5583_v57 }
  0x90   : > { %1287 = vmatmul.mubr.bf16.gmra.mxu0 %v5595_v0  ;;  %1480 = vmatmul.mubr.bf16.gmra.mxu1 %v5595_v0 }
  0x91   : > { %4135 = vmatprep.mubr.msk.bf16.mxu0 %vm1077_vm1, %v5597_v2  ;;  %4152 = vmatprep.mubr.msk.bf16.mxu1 %vm1077_vm1, %v5597_v2 }
  0x98   : > { %1297 = vmatmul.mubr.bf16.gmra.mxu0 %v5609_v8  ;;  %1490 = vmatmul.mubr.bf16.gmra.mxu1 %v5609_v8 }
  0x99   : > { %4136 = vmatprep.mubr.msk.bf16.mxu0 %vm1077_vm1, %v5611_v9  ;;  %4153 = vmatprep.mubr.msk.bf16.mxu1 %vm1077_vm1, %v5611_v9 }
  0xa0   : > { %1307 = vmatmul.mubr.bf16.gmra.mxu0 %v5623_v17  ;;  %1500 = vmatmul.mubr.bf16.gmra.mxu1 %v5623_v17 }
  0xa1   : > { %4137 = vmatprep.mubr.msk.bf16.mxu0 %vm1077_vm1, %v5625_v18  ;;  %4154 = vmatprep.mubr.msk.bf16.mxu1 %vm1077_vm1, %v5625_v18 }
  0xa8   : > { %1317 = vmatmul.mubr.bf16.gmra.mxu0 %v5637_v24  ;;  %1510 = vmatmul.mubr.bf16.gmra.mxu1 %v5637_v24 }
  0xa9   : > { %4138 = vmatprep.mubr.msk.bf16.mxu0 %vm1077_vm1, %v5639_v25  ;;  %4155 = vmatprep.mubr.msk.bf16.mxu1 %vm1077_vm1, %v5639_v25 }
  0xb0   : > { %1327 = vmatmul.mubr.bf16.gmra.mxu0 %v5651_v33  ;;  %1520 = vmatmul.mubr.bf16.gmra.mxu1 %v5651_v33 }
  0xb1   : > { %4139 = vmatprep.mubr.msk.bf16.mxu0 %vm1077_vm1, %v5653_v34  ;;  %4156 = vmatprep.mubr.msk.bf16.mxu1 %vm1077_vm1, %v5653_v34 }
  0xb8   : > { %1337 = vmatmul.mubr.bf16.gmra.mxu0 %v5663_v38  ;;  %1530 = vmatmul.mubr.bf16.gmra.mxu1 %v5663_v38 }
  0xb9   : > { %4158 = vmatprep.mubr.msk.bf16.mxu0 %vm1077_vm1, %v5247_v44  ;;  %4175 = vmatprep.mubr.msk.bf16.mxu1 %vm1077_vm1, %v5247_v44 }
  0xc0   : > { %1573 = vmatmul.mubr.bf16.vlgmr.msra.gmra.mxu0 %v5305_v1  ;;  %1766 = vmatmul.mubr.bf16.vlgmr.msra.gmra.mxu1 %v5305_v1 }
  0xc1   : > { %1927 = vmatpush1.bf16.msra.mxu0 %v4990_v39  ;;  %4816 = vmatpush1.bf16.msra.mxu1 %v4990_v39 }
  0xc2   : > { %4159 = vmatprep.mubr.msk.bf16.mxu0 %vm1077_vm1, %v5313_v4  ;;  %4176 = vmatprep.mubr.msk.bf16.mxu1 %vm1077_vm1, %v5313_v4 }
  0xc3   : > { %1928 = vmatprep.subr.bf16.mxu0 %v5084_v40  ;;  %4804 = vmatprep.subr.bf16.mxu1 %v5084_v40 }
  0xc5   : > { %1929 = vmatpush1.bf16.msra.mxu0 %v4991_v46  ;;  %4817 = vmatpush1.bf16.msra.mxu1 %v4991_v46 }
  0xc6   : > { %1930 = vmatprep.subr.bf16.mxu0 %v5084_v40  ;;  %4805 = vmatprep.subr.bf16.mxu1 %v5084_v40 }
  0xc8   : > { %1583 = vmatmul.mubr.bf16.gmra.mxu0 %v5343_v15  ;;  %1776 = vmatmul.mubr.bf16.gmra.mxu1 %v5343_v15 }
  0xc9   : > { %4160 = vmatprep.mubr.msk.bf16.mxu0 %vm1077_vm1, %v5345_v16  ;;  %4177 = vmatprep.mubr.msk.bf16.mxu1 %vm1077_vm1, %v5345_v16 }
  0xca   : > { %1931 = vmatpush1.bf16.msra.mxu0 %v4992_v47  ;;  %4818 = vmatpush1.bf16.msra.mxu1 %v4992_v47 }
  0xcb   : > { %1932 = vmatprep.subr.bf16.mxu0 %v5084_v40  ;;  %4806 = vmatprep.subr.bf16.mxu1 %v5084_v40 }
  0xce   : > { %1933 = vmatpush1.bf16.msra.mxu0 %v4993_v48  ;;  %4819 = vmatpush1.bf16.msra.mxu1 %v4993_v48 }
  0xcf   : > { %1934 = vmatprep.subr.bf16.mxu0 %v5084_v40  ;;  %4807 = vmatprep.subr.bf16.mxu1 %v5084_v40 }
  0xd0   : > { %1593 = vmatmul.mubr.bf16.gmra.mxu0 %v5381_v29  ;;  %1786 = vmatmul.mubr.bf16.gmra.mxu1 %v5381_v29 }
  0xd1   : > { %4161 = vmatprep.mubr.msk.bf16.mxu0 %vm1077_vm1, %v5383_v30  ;;  %4178 = vmatprep.mubr.msk.bf16.mxu1 %vm1077_vm1, %v5383_v30 }
  0xd2   : > { %1935 = vmatpush1.bf16.msra.mxu0 %v4994_v49  ;;  %4820 = vmatpush1.bf16.msra.mxu1 %v4994_v49 }
  0xd3   : > { %1936 = vmatprep.subr.bf16.mxu0 %v5084_v40  ;;  %4808 = vmatprep.subr.bf16.mxu1 %v5084_v40 }
  0xd6   : > { %1937 = vmatpush1.bf16.msra.mxu0 %v4995_v52  ;;  %4821 = vmatpush1.bf16.msra.mxu1 %v4995_v52 }
  0xd7   : > { %1938 = vmatprep.subr.bf16.mxu0 %v5084_v40  ;;  %4809 = vmatprep.subr.bf16.mxu1 %v5084_v40 }
  0xd8   : > { %1603 = vmatmul.mubr.bf16.gmra.mxu0 %v5419_v43  ;;  %1796 = vmatmul.mubr.bf16.gmra.mxu1 %v5419_v43 }
  0xd9   : > { %4162 = vmatprep.mubr.msk.bf16.mxu0 %vm1077_vm1, %v5421_v45  ;;  %4179 = vmatprep.mubr.msk.bf16.mxu1 %vm1077_vm1, %v5421_v45 }
  0xda   : > { %1939 = vmatpush1.bf16.msra.mxu0 %v4996_v53  ;;  %4822 = vmatpush1.bf16.msra.mxu1 %v4996_v53 }
  0xdb   : > { %1940 = vmatprep.subr.bf16.mxu0 %v5084_v40  ;;  %4810 = vmatprep.subr.bf16.mxu1 %v5084_v40 }
  0xde   : > { %1941 = vmatpush1.bf16.msra.mxu0 %v4997_v54  ;;  %4823 = vmatpush1.bf16.msra.mxu1 %v4997_v54 }
  0xdf   : > { %1948 = vmatprep.subr.bf16.mxu0 %v5084_v40  ;;  %4811 = vmatprep.subr.bf16.mxu1 %v5084_v40 }
  0xe0   : > { %1613 = vmatmul.mubr.bf16.gmra.mxu0 %v5457_v62  ;;  %1806 = vmatmul.mubr.bf16.gmra.mxu1 %v5457_v62 }
  0xe1   : > { %4163 = vmatprep.mubr.msk.bf16.mxu0 %vm1077_vm1, %v5459_v63  ;;  %4180 = vmatprep.mubr.msk.bf16.mxu1 %vm1077_vm1, %v5459_v63 }
  0xe2   : > { %1949 = vmatpush2.bf16.msra.mxu0 %v1152_v58  ;;  %4824 = vmatpush2.bf16.msra.mxu1 %v1152_v58 }
  0xe3   : > { %1950 = vmatprep.subr.bf16.mxu0 %v5084_v40  ;;  %4812 = vmatprep.subr.bf16.mxu1 %v5084_v40 }
  0xe6   : > { %1951 = vmatpush2.bf16.msra.mxu0 %v4999_v59  ;;  %4825 = vmatpush2.bf16.msra.mxu1 %v4999_v59 }
  0xe7   : > { %1952 = vmatprep.subr.bf16.mxu0 %v5084_v40  ;;  %4813 = vmatprep.subr.bf16.mxu1 %v5084_v40 }
  0xe8   : > { %1623 = vmatmul.mubr.bf16.gmra.mxu0 %v5493_v14  ;;  %1816 = vmatmul.mubr.bf16.gmra.mxu1 %v5493_v14 }
  0xe9   : > { %4164 = vmatprep.mubr.msk.bf16.mxu0 %vm1077_vm1, %v5501_v19  ;;  %4181 = vmatprep.mubr.msk.bf16.mxu1 %vm1077_vm1, %v5501_v19 }
  0xea   : > { %1953 = vmatpush2.bf16.msra.mxu0 %v5000_v60  ;;  %4826 = vmatpush2.bf16.msra.mxu1 %v5000_v60 }
  0xeb   : > { %1954 = vmatprep.subr.bf16.mxu0 %v5084_v40  ;;  %4814 = vmatprep.subr.bf16.mxu1 %v5084_v40 }
  0xee   : > { %1955 = vmatpush2.bf16.msra.mxu0 %v5001_v61  ;;  %4827 = vmatpush2.bf16.msra.mxu1 %v5001_v61 }
  0xef   : > { %1956 = vmatprep.subr.bf16.mxu0 %v5084_v40  ;;  %4815 = vmatprep.subr.bf16.mxu1 %v5084_v40  ;;  %v5783_v40 = vshrl.u32 %v457_v7, 7 }
  0xf0   : > { %1633 = vmatmul.mubr.bf16.gmra.mxu0 %v5531_v32  ;;  %1826 = vmatmul.mubr.bf16.gmra.mxu1 %v5531_v32 }
  0xf1   : > { %4165 = vmatprep.mubr.msk.bf16.mxu0 %vm1077_vm1, %v5539_v35  ;;  %4182 = vmatprep.mubr.msk.bf16.mxu1 %vm1077_vm1, %v5539_v35  ;;  %v467_v10 = vsub.s32 2, %v5783_v40  ;;  %v459_v11 = vsub.s32 0, %v5783_v40  ;;  %v463_v13 = vsub.s32 1, %v5783_v40  ;;  %v471_v20 = vsub.s32 3, %v5783_v40 }
  0xf2   : > { %1957 = vmatpush2.bf16.msra.mxu0 %v5002_v3  ;;  %4828 = vmatpush2.bf16.msra.mxu1 %v5002_v3 }
  0xf3   : > { %4283 = vmatprep.subr.bf16.mxu1 %v5003_v5  ;;  %4395 = vmatprep.subr.bf16.mxu0 %v5004_v6  ;;  %v5798_v21 = vrot.slane %v453_v12, %v467_v10  ;;  %v5800_v22 = vrot.slane %v453_v12, %v459_v11  ;;  %v5804_v27 = vrot.slane %v453_v12, %v463_v13 }
  0xf4   : > { %v5806_v28 = vrot.slane %v453_v12, %v471_v20 }
  0xf8   : > { %1643 = vmatmul.mubr.bf16.gmra.mxu0 %v5553_v41  ;;  %1836 = vmatmul.mubr.bf16.gmra.mxu1 %v5553_v41 }
  0xf9   : > { %4166 = vmatprep.mubr.msk.bf16.mxu0 %vm1077_vm1, %v5555_v42  ;;  %4183 = vmatprep.mubr.msk.bf16.mxu1 %vm1077_vm1, %v5555_v42 }
 0x100   : > { %v1188_v23 = vpop.f32.mrf.mxu0  ;;  %v1381_v26 = vpop.f32.mrf.mxu1  ;;  %1653 = vmatmul.mubr.bf16.gmra.mxu0 %v5567_v50  ;;  %1846 = vmatmul.mubr.bf16.gmra.mxu1 %v5567_v50 }
 0x101   : > { %v1382_v31 = vadd.f32 %v1381_v26, %v5798_v21  ;;  %4167 = vmatprep.mubr.msk.bf16.mxu0 %vm1077_vm1, %v5569_v51  ;;  %4184 = vmatprep.mubr.msk.bf16.mxu1 %vm1077_vm1, %v5569_v51  ;;  %v1189_v36 = vadd.f32 %v1188_v23, %v5800_v22 }
 0x102   : > { %v1190_v37 = vpop.f32.mrf.mxu0  ;;  %v1383_v39 = vpop.f32.mrf.mxu1 }
 0x103   : > { %v1191_v46 = vadd.f32 %v1190_v37, %v5804_v27  ;;  %v1384_v47 = vadd.f32 %v1383_v39, %v5806_v28  ;;  %v2089_v52 = vmax.f32 %v1382_v31, 0.0  ;;  %v2087_v55 = vmax.f32 %v1189_v36, 0.0 }
 0x104   : > { %v1192_v48 = vpop.f32.mrf.mxu0  ;;  %v1385_v49 = vpop.f32.mrf.mxu1 }
 0x105   : > { %v1193_v53 = vadd.f32 %v1192_v48, %v5800_v22  ;;  %v1386_v54 = vadd.f32 %v1385_v49, %v5798_v21  ;;  %v2088_v6 = vmax.f32 %v1191_v46, 0.0  ;;  %v2090_v7 = vmax.f32 %v1384_v47, 0.0 }
 0x106   : > { %v1194_v58 = vpop.f32.mrf.mxu0  ;;  %v1387_v59 = vpop.f32.mrf.mxu1 }
 0x107   : > { %v2096_v60 = vmax.f32 %v1193_v53, 0.0  ;;  %v2098_v61 = vmax.f32 %v1386_v54, 0.0  ;;  %v1195_v3 = vadd.f32 %v1194_v58, %v5804_v27  ;;  %v1388_v5 = vadd.f32 %v1387_v59, %v5806_v28 }
 0x108   : > { %v1198_v10 = vpop.f32.mrf.mxu0  ;;  %v1391_v11 = vpop.f32.mrf.mxu1  ;;  %1663 = vmatmul.mubr.bf16.gmra.mxu0 %v5581_v56  ;;  %1856 = vmatmul.mubr.bf16.gmra.mxu1 %v5581_v56 }
 0x109   : > { %v5822_v12 = vpack.c.bf16 %v2096_v60, %v2087_v55  ;;  %v5824_v13 = vpack.c.bf16 %v2098_v61, %v2089_v52  ;;  %v2097_v20 = vmax.f32 %v1195_v3, 0.0  ;;  %v2099_v23 = vmax.f32 %v1388_v5, 0.0  ;;  %4168 = vmatprep.mubr.msk.bf16.mxu0 %vm1077_vm1, %v5583_v57  ;;  %4185 = vmatprep.mubr.msk.bf16.mxu1 %vm1077_vm1, %v5583_v57 }
 0x10a   : > { %v1199_v26 = vadd.f32 %v1198_v10, %v5800_v22  ;;  %v1392_v31 = vadd.f32 %v1391_v11, %v5798_v21  ;;  %v1200_v36 = vpop.f32.mrf.mxu0  ;;  %v1393_v37 = vpop.f32.mrf.mxu1 }
 0x10b   : > { %7366 = vst [vmem:[#allocation7_spill] sm:$0xff] %v5824_v13  ;;  %v5832_v39 = vpack.c.bf16 %v2097_v20, %v2088_v6  ;;  %v5834_v46 = vpack.c.bf16 %v2099_v23, %v2090_v7  ;;  %v1201_v47 = vadd.f32 %v1200_v36, %v5804_v27  ;;  %v1394_v48 = vadd.f32 %v1393_v37, %v5806_v28 }
 0x10c   : > { %v1202_v49 = vpop.f32.mrf.mxu0  ;;  %v1395_v52 = vpop.f32.mrf.mxu1  ;;  %v2107_v53 = vmax.f32 %v1392_v31, 0.0  ;;  %v2105_v58 = vmax.f32 %v1199_v26, 0.0 }
 0x10d   : > { %7367 = vst [vmem:[#allocation8_spill] sm:$0xff] %v5834_v46  ;;  %v1203_v54 = vadd.f32 %v1202_v49, %v5800_v22  ;;  %v1396_v55 = vadd.f32 %v1395_v52, %v5798_v21  ;;  %v2106_v7 = vmax.f32 %v1201_v47, 0.0  ;;  %v2108_v10 = vmax.f32 %v1394_v48, 0.0 }
 0x10e   : > { %v1204_v59 = vpop.f32.mrf.mxu0  ;;  %v1397_v60 = vpop.f32.mrf.mxu1 }
 0x10f   : > { %v2114_v61 = vmax.f32 %v1203_v54, 0.0  ;;  %v2116_v3 = vmax.f32 %v1396_v55, 0.0  ;;  %v1205_v5 = vadd.f32 %v1204_v59, %v5804_v27  ;;  %v1398_v6 = vadd.f32 %v1397_v60, %v5806_v28 }
 0x110   : > { %v1208_v11 = vpop.f32.mrf.mxu0  ;;  %v1401_v20 = vpop.f32.mrf.mxu1  ;;  %1673 = vmatmul.mubr.bf16.gmra.mxu0 %v5595_v0  ;;  %1866 = vmatmul.mubr.bf16.gmra.mxu1 %v5595_v0 }
 0x111   : > { %v5844_v23 = vpack.c.bf16 %v2114_v61, %v2105_v58  ;;  %v5846_v31 = vpack.c.bf16 %v2116_v3, %v2107_v53  ;;  %v2115_v26 = vmax.f32 %v1205_v5, 0.0  ;;  %v2117_v36 = vmax.f32 %v1398_v6, 0.0  ;;  %4169 = vmatprep.mubr.msk.bf16.mxu0 %vm1077_vm1, %v5597_v2  ;;  %4186 = vmatprep.mubr.msk.bf16.mxu1 %vm1077_vm1, %v5597_v2 }
 0x112   : > { %v1209_v37 = vadd.f32 %v1208_v11, %v5800_v22  ;;  %v1402_v47 = vadd.f32 %v1401_v20, %v5798_v21  ;;  %v1210_v48 = vpop.f32.mrf.mxu0  ;;  %v1403_v49 = vpop.f32.mrf.mxu1 }
 0x113   : > { %7368 = vst [vmem:[#allocation9_spill] sm:$0xff] %v5846_v31  ;;  %v5854_v52 = vpack.c.bf16 %v2115_v26, %v2106_v7  ;;  %v5856_v54 = vpack.c.bf16 %v2117_v36, %v2108_v10  ;;  %v1211_v53 = vadd.f32 %v1210_v48, %v5804_v27  ;;  %v1404_v55 = vadd.f32 %v1403_v49, %v5806_v28 }
 0x114   : > { %v1212_v58 = vpop.f32.mrf.mxu0  ;;  %v1405_v59 = vpop.f32.mrf.mxu1  ;;  %v2125_v60 = vmax.f32 %v1402_v47, 0.0  ;;  %v2123_v5 = vmax.f32 %v1209_v37, 0.0 }
 0x115   : > { %7369 = vst [vmem:[#allocation10_spill] sm:$0xff] %v5856_v54  ;;  %v1213_v61 = vadd.f32 %v1212_v58, %v5800_v22  ;;  %v1406_v3 = vadd.f32 %v1405_v59, %v5798_v21  ;;  %v2124_v26 = vmax.f32 %v1211_v53, 0.0  ;;  %v2126_v36 = vmax.f32 %v1404_v55, 0.0 }
 0x116   : > { %v1214_v6 = vpop.f32.mrf.mxu0  ;;  %v1407_v11 = vpop.f32.mrf.mxu1 }
 0x117   : > { %v2132_v20 = vmax.f32 %v1213_v61, 0.0  ;;  %v2134_v31 = vmax.f32 %v1406_v3, 0.0  ;;  %v1215_v7 = vadd.f32 %v1214_v6, %v5804_v27  ;;  %v1408_v10 = vadd.f32 %v1407_v11, %v5806_v28 }
 0x118   : > { %v1218_v48 = vpop.f32.mrf.mxu0  ;;  %v1411_v49 = vpop.f32.mrf.mxu1  ;;  %1683 = vmatmul.mubr.bf16.gmra.mxu0 %v5609_v8  ;;  %1876 = vmatmul.mubr.bf16.gmra.mxu1 %v5609_v8 }
 0x119   : > { %v5866_v47 = vpack.c.bf16 %v2132_v20, %v2123_v5  ;;  %v5868_v58 = vpack.c.bf16 %v2134_v31, %v2125_v60  ;;  %v2133_v37 = vmax.f32 %v1215_v7, 0.0  ;;  %v2135_v59 = vmax.f32 %v1408_v10, 0.0  ;;  %4170 = vmatprep.mubr.msk.bf16.mxu0 %vm1077_vm1, %v5611_v9  ;;  %4187 = vmatprep.mubr.msk.bf16.mxu1 %vm1077_vm1, %v5611_v9 }
 0x11a   : > { %v1219_v53 = vadd.f32 %v1218_v48, %v5800_v22  ;;  %v1412_v55 = vadd.f32 %v1411_v49, %v5798_v21  ;;  %v1220_v61 = vpop.f32.mrf.mxu0  ;;  %v1413_v3 = vpop.f32.mrf.mxu1 }
 0x11b   : > { %7370 = vst [vmem:[#allocation11_spill] sm:$0xff] %v5868_v58  ;;  %v5876_v6 = vpack.c.bf16 %v2133_v37, %v2124_v26  ;;  %v5878_v5 = vpack.c.bf16 %v2135_v59, %v2126_v36  ;;  %v1221_v31 = vadd.f32 %v1220_v61, %v5804_v27  ;;  %v1414_v60 = vadd.f32 %v1413_v3, %v5806_v28 }
 0x11c   : > { %v1222_v11 = vpop.f32.mrf.mxu0  ;;  %v1415_v20 = vpop.f32.mrf.mxu1  ;;  %v2143_v7 = vmax.f32 %v1412_v55, 0.0  ;;  %v2141_v48 = vmax.f32 %v1219_v53, 0.0 }
 0x11d   : > { %7371 = vst [vmem:[#allocation12_spill] sm:$0xff] %v5878_v5  ;;  %v1223_v10 = vadd.f32 %v1222_v11, %v5800_v22  ;;  %v1416_v58 = vadd.f32 %v1415_v20, %v5798_v21  ;;  %v2142_v37 = vmax.f32 %v1221_v31, 0.0  ;;  %v2144_v59 = vmax.f32 %v1414_v60, 0.0 }
 0x11e   : > { %v1224_v54 = vpop.f32.mrf.mxu0  ;;  %v1417_v49 = vpop.f32.mrf.mxu1 }
 0x11f   : > { %v2150_v13 = vmax.f32 %v1223_v10, 0.0  ;;  %v2152_v46 = vmax.f32 %v1416_v58, 0.0  ;;  %v1225_v26 = vadd.f32 %v1224_v54, %v5804_v27  ;;  %v1418_v36 = vadd.f32 %v1417_v49, %v5806_v28 }
 0x120   : > { %v1228_v61 = vpop.f32.mrf.mxu0  ;;  %v1421_v3 = vpop.f32.mrf.mxu1  ;;  %1693 = vmatmul.mubr.bf16.gmra.mxu0 %v5623_v17  ;;  %1886 = vmatmul.mubr.bf16.gmra.mxu1 %v5623_v17 }
 0x121   : > { %v5888_v55 = vpack.c.bf16 %v2150_v13, %v2141_v48  ;;  %v5890_v11 = vpack.c.bf16 %v2152_v46, %v2143_v7  ;;  %v2151_v53 = vmax.f32 %v1225_v26, 0.0  ;;  %v2153_v20 = vmax.f32 %v1418_v36, 0.0  ;;  %4171 = vmatprep.mubr.msk.bf16.mxu0 %vm1077_vm1, %v5625_v18  ;;  %4188 = vmatprep.mubr.msk.bf16.mxu1 %vm1077_vm1, %v5625_v18 }
 0x122   : > { %v1229_v54 = vadd.f32 %v1228_v61, %v5800_v22  ;;  %v1422_v58 = vadd.f32 %v1421_v3, %v5798_v21  ;;  %v1230_v31 = vpop.f32.mrf.mxu0  ;;  %v1423_v60 = vpop.f32.mrf.mxu1 }
 0x123   : > { %7372 = vst [vmem:[#allocation13_spill] sm:$0xff] %v5890_v11  ;;  %v5898_v10 = vpack.c.bf16 %v2151_v53, %v2142_v37  ;;  %v5900_v13 = vpack.c.bf16 %v2153_v20, %v2144_v59  ;;  %v1231_v46 = vadd.f32 %v1230_v31, %v5804_v27  ;;  %v1424_v7 = vadd.f32 %v1423_v60, %v5806_v28 }
 0x124   : > { %v1232_v48 = vpop.f32.mrf.mxu0  ;;  %v1425_v49 = vpop.f32.mrf.mxu1  ;;  %v2161_v26 = vmax.f32 %v1422_v58, 0.0  ;;  %v2159_v61 = vmax.f32 %v1229_v54, 0.0 }
 0x125   : > { %7373 = vst [vmem:[#allocation14_spill] sm:$0xff] %v5900_v13  ;;  %v1233_v36 = vadd.f32 %v1232_v48, %v5800_v22  ;;  %v1426_v11 = vadd.f32 %v1425_v49, %v5798_v21  ;;  %v2160_v53 = vmax.f32 %v1231_v46, 0.0  ;;  %v2162_v20 = vmax.f32 %v1424_v7, 0.0 }
 0x126   : > { %v1234_v5 = vpop.f32.mrf.mxu0  ;;  %v1427_v3 = vpop.f32.mrf.mxu1 }
 0x127   : > { %v2168_v8 = vmax.f32 %v1233_v36, 0.0  ;;  %v2170_v2 = vmax.f32 %v1426_v11, 0.0  ;;  %v1235_v37 = vadd.f32 %v1234_v5, %v5804_v27  ;;  %v1428_v59 = vadd.f32 %v1427_v3, %v5806_v28 }
 0x128   : > { %v1238_v31 = vpop.f32.mrf.mxu0  ;;  %v1431_v60 = vpop.f32.mrf.mxu1  ;;  %1703 = vmatmul.mubr.bf16.gmra.mxu0 %v5637_v24  ;;  %1896 = vmatmul.mubr.bf16.gmra.mxu1 %v5637_v24 }
 0x129   : > { %v5910_v58 = vpack.c.bf16 %v2168_v8, %v2159_v61  ;;  %v5912_v48 = vpack.c.bf16 %v2170_v2, %v2161_v26  ;;  %v2169_v54 = vmax.f32 %v1235_v37, 0.0  ;;  %v2171_v49 = vmax.f32 %v1428_v59, 0.0  ;;  %4172 = vmatprep.mubr.msk.bf16.mxu0 %vm1077_vm1, %v5639_v25  ;;  %4189 = vmatprep.mubr.msk.bf16.mxu1 %vm1077_vm1, %v5639_v25 }
 0x12a   : > { %v1239_v5 = vadd.f32 %v1238_v31, %v5800_v22  ;;  %v1432_v11 = vadd.f32 %v1431_v60, %v5798_v21  ;;  %v1240_v46 = vpop.f32.mrf.mxu0  ;;  %v1433_v7 = vpop.f32.mrf.mxu1 }
 0x12b   : > { %7374 = vst [vmem:[#allocation15_spill] sm:$0xff] %v5912_v48  ;;  %v5920_v36 = vpack.c.bf16 %v2169_v54, %v2160_v53  ;;  %v5922_v8 = vpack.c.bf16 %v2171_v49, %v2162_v20  ;;  %v1241_v2 = vadd.f32 %v1240_v46, %v5804_v27  ;;  %v1434_v26 = vadd.f32 %v1433_v7, %v5806_v28 }
 0x12c   : > { %v1242_v61 = vpop.f32.mrf.mxu0  ;;  %v1435_v3 = vpop.f32.mrf.mxu1  ;;  %v2179_v37 = vmax.f32 %v1432_v11, 0.0  ;;  %v2177_v31 = vmax.f32 %v1239_v5, 0.0 }
 0x12d   : > { %7375 = vst [vmem:[#allocation16_spill] sm:$0xff] %v5922_v8  ;;  %v1243_v59 = vadd.f32 %v1242_v61, %v5800_v22  ;;  %v1436_v48 = vadd.f32 %v1435_v3, %v5798_v21  ;;  %v2178_v54 = vmax.f32 %v1241_v2, 0.0  ;;  %v2180_v49 = vmax.f32 %v1434_v26, 0.0 }
 0x12e   : > { %v1244_v13 = vpop.f32.mrf.mxu0  ;;  %v1437_v60 = vpop.f32.mrf.mxu1 }
 0x12f   : > { %v2186_v0 = vmax.f32 %v1243_v59, 0.0  ;;  %v2188_v57 = vmax.f32 %v1436_v48, 0.0  ;;  %v1245_v53 = vadd.f32 %v1244_v13, %v5804_v27  ;;  %v1438_v20 = vadd.f32 %v1437_v60, %v5806_v28 }
 0x130   : > { %v1248_v46 = vpop.f32.mrf.mxu0  ;;  %v1441_v7 = vpop.f32.mrf.mxu1  ;;  %1713 = vmatmul.mubr.bf16.gmra.mxu0 %v5651_v33  ;;  %1906 = vmatmul.mubr.bf16.gmra.mxu1 %v5651_v33 }
 0x131   : > { %v5932_v11 = vpack.c.bf16 %v2186_v0, %v2177_v31  ;;  %v5934_v61 = vpack.c.bf16 %v2188_v57, %v2179_v37  ;;  %v2187_v5 = vmax.f32 %v1245_v53, 0.0  ;;  %v2189_v3 = vmax.f32 %v1438_v20, 0.0  ;;  %4173 = vmatprep.mubr.msk.bf16.mxu0 %vm1077_vm1, %v5653_v34  ;;  %4190 = vmatprep.mubr.msk.bf16.mxu1 %vm1077_vm1, %v5653_v34 }
 0x132   : > { %v1249_v13 = vadd.f32 %v1248_v46, %v5800_v22  ;;  %v1442_v48 = vadd.f32 %v1441_v7, %v5798_v21  ;;  %v1250_v2 = vpop.f32.mrf.mxu0  ;;  %v1443_v26 = vpop.f32.mrf.mxu1 }
 0x133   : > { %7376 = vst [vmem:[#allocation17_spill] sm:$0xff] %v5932_v11  ;;  %7377 = vst [vmem:[#allocation18_spill] sm:$0xff] %v5934_v61  ;;  %v5942_v59 = vpack.c.bf16 %v2187_v5, %v2178_v54  ;;  %v5944_v0 = vpack.c.bf16 %v2189_v3, %v2180_v49  ;;  %v1251_v57 = vadd.f32 %v1250_v2, %v5804_v27 }
 0x134   : > { %v1444_v37 = vadd.f32 %v1443_v26, %v5806_v28  ;;  %v1252_v31 = vpop.f32.mrf.mxu0  ;;  %v1445_v60 = vpop.f32.mrf.mxu1  ;;  %v2197_v53 = vmax.f32 %v1442_v48, 0.0  ;;  %v2195_v46 = vmax.f32 %v1249_v13, 0.0 }
 0x135   : > { %7378 = vst [vmem:[#allocation19_spill] sm:$0xff] %v5944_v0  ;;  %v1253_v20 = vadd.f32 %v1252_v31, %v5800_v22  ;;  %v1446_v61 = vadd.f32 %v1445_v60, %v5798_v21  ;;  %v2196_v5 = vmax.f32 %v1251_v57, 0.0 }
 0x136   : > { %v1254_v8 = vpop.f32.mrf.mxu0  ;;  %v1447_v7 = vpop.f32.mrf.mxu1  ;;  %v2198_v3 = vmax.f32 %v1444_v37, 0.0 }
 0x137   : > { %v2204_v11 = vmax.f32 %v1253_v20, 0.0  ;;  %v2206_v56 = vmax.f32 %v1446_v61, 0.0  ;;  %v1255_v54 = vadd.f32 %v1254_v8, %v5804_v27  ;;  %v1448_v49 = vadd.f32 %v1447_v7, %v5806_v28 }
 0x138   : > { %v1258_v2 = vpop.f32.mrf.mxu0  ;;  %v1451_v26 = vpop.f32.mrf.mxu1  ;;  %1723 = vmatmul.mubr.bf16.gmra.mxu0 %v5663_v38  ;;  %1916 = vmatmul.mubr.bf16.gmra.mxu1 %v5663_v38 }
 0x139   : > { %v5954_v48 = vpack.c.bf16 %v2204_v11, %v2195_v46  ;;  %v5956_v31 = vpack.c.bf16 %v2206_v56, %v2197_v53  ;;  %v2205_v13 = vmax.f32 %v1255_v54, 0.0  ;;  %v2207_v60 = vmax.f32 %v1448_v49, 0.0  ;;  %4191 = vmatprep.mubr.msk.bf16.mxu0 %vm1077_vm1, %v5247_v44  ;;  %4203 = vmatprep.mubr.msk.bf16.mxu1 %vm1077_vm1, %v5611_v9  ;;  %v5005_v9 = vld [vmem:[%s7353_s3 + $0x38] sm:$0xff]  }
 0x13a   : > { %v1259_v8 = vadd.f32 %v1258_v2, %v5800_v22  ;;  %v1452_v61 = vadd.f32 %v1451_v26, %v5798_v21  ;;  %v1260_v57 = vpop.f32.mrf.mxu0  ;;  %v1453_v37 = vpop.f32.mrf.mxu1  ;;  %v5006_v49 = vld [vmem:[%s7353_s3 + $0xb8] sm:$0xff]  }
 0x13b   : > { %7379 = vst [vmem:[#allocation20_spill] sm:$0xff] %v5956_v31  ;;  %v5964_v20 = vpack.c.bf16 %v2205_v13, %v2196_v5  ;;  %v5966_v11 = vpack.c.bf16 %v2207_v60, %v2198_v3  ;;  %v1261_v56 = vadd.f32 %v1260_v57, %v5804_v27  ;;  %v1454_v3 = vadd.f32 %v1453_v37, %v5806_v28  ;;  %v5007_v13 = vld [vmem:[%s7353_s3 + $0x70] sm:$0xff]  }
 0x13c   : > { %v1262_v53 = vpop.f32.mrf.mxu0  ;;  %v1455_v46 = vpop.f32.mrf.mxu1  ;;  %v2215_v7 = vmax.f32 %v1452_v61, 0.0  ;;  %v2213_v5 = vmax.f32 %v1259_v8, 0.0 }
 0x13d   : > { %7380 = vst [vmem:[#allocation21_spill] sm:$0xff] %v5966_v11  ;;  %v1263_v44 = vadd.f32 %v1262_v53, %v5800_v22  ;;  %v1456_v54 = vadd.f32 %v1455_v46, %v5798_v21  ;;  %v5012_v46 = vld [vmem:[%s7353_s3 + $0xf0] sm:$0xff]   ;;  %v2214_v31 = vmax.f32 %v1261_v56, 0.0 }
 0x13e   : > { %v1264_v2 = vpop.f32.mrf.mxu0  ;;  %v1457_v26 = vpop.f32.mrf.mxu1  ;;  %v5014_v56 = vld [vmem:[%s7353_s3 + $0xb0] sm:$0xff]  }
 0x13f   : > { %v2222_v60 = vmax.f32 %v1263_v44, 0.0  ;;  %v2224_v61 = vmax.f32 %v1456_v54, 0.0  ;;  %v1265_v57 = vadd.f32 %v1264_v2, %v5804_v27  ;;  %v1458_v53 = vadd.f32 %v1457_v26, %v5806_v28  ;;  %v5008_v2 = vld [vmem:[%s7353_s3 + $0x30] sm:$0xff]  }
 0x140   : > { %v1268_v8 = vpop.f32.mrf.mxu0  ;;  %v1461_v11 = vpop.f32.mrf.mxu1  ;;  %1959 = vmatmul.mubr.bf16.vlgmr.msra.gmra.mxu0 %v5305_v1  ;;  %2055 = vmatmul.mubr.bf16.vlgmr.msra.gmra.mxu1 %v5623_v17  ;;  %v2216_v26 = vmax.f32 %v1454_v3, 0.0 }
 0x141   : > { %v5988_v37 = vpack.c.bf16 %v2222_v60, %v2213_v5  ;;  %v5990_v0 = vpack.c.bf16 %v2224_v61, %v2215_v7  ;;  %v2223_v44 = vmax.f32 %v1265_v57, 0.0  ;;  %v2225_v54 = vmax.f32 %v1458_v53, 0.0  ;;  %4284 = vmatpush3.bf16.msra.mxu1 %v5005_v9  ;;  %4396 = vmatpush3.bf16.msra.mxu0 %v5006_v49  ;;  %v5009_v9 = vld [vmem:[%s7353_s3 + $0x68] sm:$0xff]  }
 0x142   : > { %v1269_v1 = vadd.f32 %v1268_v8, %v5800_v22  ;;  %v1462_v17 = vadd.f32 %v1461_v11, %v5798_v21  ;;  %v1270_v5 = vpop.f32.mrf.mxu0  ;;  %v1463_v7 = vpop.f32.mrf.mxu1  ;;  %4285 = vmatprep.subr.bf16.mxu1 %v5007_v13  ;;  %4192 = vmatprep.mubr.msk.bf16.mxu0 %vm1077_vm1, %v5313_v4  ;;  %v5020_v49 = vld [vmem:[%s7353_s3 + $0xe8] sm:$0xff]  }
 0x143   : > { %4204 = vmatprep.mubr.msk.bf16.mxu1 %vm1077_vm1, %v5625_v18  ;;  %4397 = vmatprep.subr.bf16.mxu0 %v5012_v46  ;;  %v6010_v3 = vpack.c.bf16 %v2223_v44, %v2214_v31  ;;  %v1271_v11 = vadd.f32 %v1270_v5, %v5804_v27  ;;  %v1464_v13 = vadd.f32 %v1463_v7, %v5806_v28  ;;  %v5010_v18 = vld [vmem:[%s7353_s3 + $0x28] sm:$0xff]  }
 0x144   : > { %v1272_v60 = vpop.f32.mrf.mxu0  ;;  %v1465_v4 = vpop.f32.mrf.mxu1  ;;  %v6014_v61 = vpack.c.bf16 %v2225_v54, %v2216_v26  ;;  %v2233_v57 = vmax.f32 %v1462_v17, 0.0  ;;  %v2231_v31 = vmax.f32 %v1269_v1, 0.0  ;;  %v5011_v54 = vld [vmem:[%s7353_s3 + $0x60] sm:$0xff]   ;;  %v5022_v7 = vld [vmem:[%s7353_s3 + $0xa8] sm:$0xff]  }
 0x145   : > { %v1273_v53 = vadd.f32 %v1272_v60, %v5800_v22  ;;  %v1466_v8 = vadd.f32 %v1465_v4, %v5798_v21  ;;  %4286 = vmatpush3.bf16.msra.mxu1 %v5008_v2  ;;  %4398 = vmatpush3.bf16.msra.mxu0 %v5014_v56  ;;  %v2232_v56 = vmax.f32 %v1271_v11, 0.0  ;;  %v2234_v1 = vmax.f32 %v1464_v13, 0.0  ;;  %v5013_v11 = vld [vmem:[%s7353_s3 + $0x20] sm:$0xff]  }
 0x146   : > { %v1274_v46 = vpop.f32.mrf.mxu0  ;;  %v1467_v44 = vpop.f32.mrf.mxu1  ;;  %4287 = vmatprep.subr.bf16.mxu1 %v5009_v9  ;;  %4399 = vmatprep.subr.bf16.mxu0 %v5020_v49  ;;  %v5025_v9 = vld [vmem:[%s7353_s3 + $0xe0] sm:$0xff]  }
 0x147   : > { %v2240_v26 = vmax.f32 %v1273_v53, 0.0  ;;  %v2242_v17 = vmax.f32 %v1466_v8, 0.0  ;;  %v1275_v5 = vadd.f32 %v1274_v46, %v5804_v27  ;;  %v1468_v2 = vadd.f32 %v1467_v44, %v5806_v28 }
 0x148   : > { %v1278_v60 = vpop.f32.mrf.mxu0  ;;  %v1471_v4 = vpop.f32.mrf.mxu1  ;;  %1967 = vmatmul.mubr.bf16.gmra.mxu0 %v5343_v15  ;;  %2063 = vmatmul.mubr.bf16.gmra.mxu1 %v5637_v24 }
 0x149   : > { %v6034_v49 = vpack.c.bf16 %v2240_v26, %v2231_v31  ;;  %v6036_v53 = vpack.c.bf16 %v2242_v17, %v2233_v57  ;;  %v2241_v8 = vmax.f32 %v1275_v5, 0.0  ;;  %v2243_v46 = vmax.f32 %v1468_v2, 0.0  ;;  %4288 = vmatpush3.bf16.msra.mxu1 %v5010_v18  ;;  %4193 = vmatprep.mubr.msk.bf16.mxu0 %vm1077_vm1, %v5345_v16  ;;  %v5015_v57 = vld [vmem:[%s7353_s3 + $0x58] sm:$0xff]   ;;  %v5027_v18 = vld [vmem:[%s7353_s3 + $0xa0] sm:$0xff]  }
 0x14a   : > { %v1279_v15 = vadd.f32 %v1278_v60, %v5800_v22  ;;  %v1472_v24 = vadd.f32 %v1471_v4, %v5798_v21  ;;  %v1280_v13 = vpop.f32.mrf.mxu0  ;;  %v1473_v44 = vpop.f32.mrf.mxu1  ;;  %4289 = vmatprep.subr.bf16.mxu1 %v5011_v54  ;;  %4205 = vmatprep.mubr.msk.bf16.mxu1 %vm1077_vm1, %v5639_v25 }
 0x14b   : > { %4400 = vmatpush3.bf16.msra.mxu0 %v5022_v7  ;;  %v6053_v16 = vpack.c.bf16 %v2241_v8, %v2232_v56  ;;  %v6055_v31 = vpack.c.bf16 %v2243_v46, %v2234_v1  ;;  %v1281_v26 = vadd.f32 %v1280_v13, %v5804_v27  ;;  %v1474_v54 = vadd.f32 %v1473_v44, %v5806_v28  ;;  %v5016_v56 = vld [vmem:[%s7353_s3 + $0x18] sm:$0xff]   ;;  %v5017_v8 = vld [vmem:[%s7353_s3 + $0x50] sm:$0xff]  }
 0x14c   : > { %v1282_v17 = vpop.f32.mrf.mxu0  ;;  %v1475_v5 = vpop.f32.mrf.mxu1  ;;  %4401 = vmatprep.subr.bf16.mxu0 %v5025_v9  ;;  %v2251_v25 = vmax.f32 %v1472_v24, 0.0  ;;  %v2249_v60 = vmax.f32 %v1279_v15, 0.0 }
 0x14d   : > { %v1283_v2 = vadd.f32 %v1282_v17, %v5800_v22  ;;  %v1476_v7 = vadd.f32 %v1475_v5, %v5798_v21  ;;  %4290 = vmatpush3.bf16.msra.mxu1 %v5013_v11  ;;  %v5029_v11 = vld [vmem:[%s7353_s3 + $0xd8] sm:$0xff]   ;;  %v2250_v44 = vmax.f32 %v1281_v26, 0.0  ;;  %v2252_v15 = vmax.f32 %v1474_v54, 0.0  ;;  %v5018_v26 = vld [vmem:[%s7353_s3 + $0x10] sm:$0xff]  }
 0x14e   : > { %v1284_v1 = vpop.f32.mrf.mxu0  ;;  %v1477_v4 = vpop.f32.mrf.mxu1  ;;  %4291 = vmatprep.subr.bf16.mxu1 %v5015_v57  ;;  %v5030_v57 = vld [vmem:[%s7353_s3 + $0x98] sm:$0xff]  }
 0x14f   : > { %v2258_v46 = vmax.f32 %v1283_v2, 0.0  ;;  %v2260_v9 = vmax.f32 %v1476_v7, 0.0  ;;  %v1285_v24 = vadd.f32 %v1284_v1, %v5804_v27  ;;  %v1478_v13 = vadd.f32 %v1477_v4, %v5806_v28  ;;  %4402 = vmatpush3.bf16.msra.mxu0 %v5027_v18 }
 0x150   : > { %v1288_v17 = vpop.f32.mrf.mxu0  ;;  %v1481_v5 = vpop.f32.mrf.mxu1  ;;  %1975 = vmatmul.mubr.bf16.gmra.mxu0 %v5381_v29  ;;  %2071 = vmatmul.mubr.bf16.gmra.mxu1 %v5651_v33  ;;  %v5033_v29 = vld [vmem:[%s7353_s3 + $0xd0] sm:$0xff]  }
 0x151   : > { %v6077_v2 = vpack.c.bf16 %v2258_v46, %v2249_v60  ;;  %v6079_v7 = vpack.c.bf16 %v2260_v9, %v2251_v25  ;;  %v2259_v18 = vmax.f32 %v1285_v24, 0.0  ;;  %v2261_v1 = vmax.f32 %v1478_v13, 0.0  ;;  %4292 = vmatpush3.bf16.msra.mxu1 %v5016_v56  ;;  %4194 = vmatprep.mubr.msk.bf16.mxu0 %vm1077_vm1, %v5383_v30  ;;  %v5019_v56 = vld [vmem:[%s7353_s3 + $0x48] sm:$0xff]  }
 0x152   : > { %v1289_v33 = vadd.f32 %v1288_v17, %v5800_v22  ;;  %v1482_v54 = vadd.f32 %v1481_v5, %v5798_v21  ;;  %v1290_v25 = vpop.f32.mrf.mxu0  ;;  %v1483_v60 = vpop.f32.mrf.mxu1  ;;  %4293 = vmatprep.subr.bf16.mxu1 %v5017_v8  ;;  %4206 = vmatprep.mubr.msk.bf16.mxu1 %vm1077_vm1, %v5653_v34 }
 0x153   : > { %4403 = vmatprep.subr.bf16.mxu0 %v5029_v11  ;;  %v6096_v30 = vpack.c.bf16 %v2259_v18, %v2250_v44  ;;  %v6098_v4 = vpack.c.bf16 %v2261_v1, %v2252_v15  ;;  %v1291_v46 = vadd.f32 %v1290_v25, %v5804_v27  ;;  %v1484_v9 = vadd.f32 %v1483_v60, %v5806_v28  ;;  %v5021_v11 = vld [vmem:[%s7353_s3 + $0x8] sm:$0xff]   ;;  %v5023_v18 = vld [vmem:[%s7353_s3 + $0x40] sm:$0xff]  }
 0x154   : > { %v1292_v24 = vpop.f32.mrf.mxu0  ;;  %v1485_v13 = vpop.f32.mrf.mxu1  ;;  %4404 = vmatpush3.bf16.msra.mxu0 %v5030_v57  ;;  %v2269_v8 = vmax.f32 %v1482_v54, 0.0  ;;  %v2267_v44 = vmax.f32 %v1289_v33, 0.0 }
 0x155   : > { %v1293_v17 = vadd.f32 %v1292_v24, %v5800_v22  ;;  %v1486_v34 = vadd.f32 %v1485_v13, %v5798_v21  ;;  %4294 = vmatpush3.bf16.msra.mxu1 %v5018_v26  ;;  %4405 = vmatprep.subr.bf16.mxu0 %v5033_v29  ;;  %v5034_v26 = vld [vmem:[%s7353_s3 + $0x90] sm:$0xff]   ;;  %v2268_v60 = vmax.f32 %v1291_v46, 0.0  ;;  %v2270_v29 = vmax.f32 %v1484_v9, 0.0  ;;  %v5024_v46 = vld [vmem:[%s7353_s3] sm:$0xff]  }
 0x156   : > { %v1294_v15 = vpop.f32.mrf.mxu0  ;;  %v1487_v5 = vpop.f32.mrf.mxu1  ;;  %4295 = vmatprep.subr.bf16.mxu1 %v5019_v56  ;;  %v5037_v56 = vld [vmem:[%s7353_s3 + $0xc8] sm:$0xff]  }
 0x157   : > { %v2276_v57 = vmax.f32 %v1293_v17, 0.0  ;;  %v2278_v1 = vmax.f32 %v1486_v34, 0.0  ;;  %v1295_v54 = vadd.f32 %v1294_v15, %v5804_v27  ;;  %v1488_v25 = vadd.f32 %v1487_v5, %v5806_v28 }
 0x158   : > { %v1298_v33 = vpop.f32.mrf.mxu0  ;;  %v1491_v24 = vpop.f32.mrf.mxu1  ;;  %1983 = vmatmul.mubr.bf16.gmra.mxu0 %v5419_v43  ;;  %2079 = vmatmul.mubr.bf16.gmra.mxu1 %v5663_v38 }
 0x159   : > { %v6120_v13 = vpack.c.bf16 %v2276_v57, %v2267_v44  ;;  %v6122_v17 = vpack.c.bf16 %v2278_v1, %v2269_v8  ;;  %v2277_v34 = vmax.f32 %v1295_v54, 0.0  ;;  %v2279_v15 = vmax.f32 %v1488_v25, 0.0  ;;  %4296 = vmatpush3.bf16.msra.mxu1 %v5021_v11  ;;  %3134 = vmatprep.mubr.bf16.mxu1 %v5832_v39  ;;  %v5026_v8 = vld [vmem:[%s7353_s3 + $0x178] sm:$0xff]   ;;  %v5038_v39 = vld [vmem:[%s7353_s3 + $0x88] sm:$0xff]  }
 0x15a   : > { %v1299_v43 = vadd.f32 %v1298_v33, %v5800_v22  ;;  %v1492_v38 = vadd.f32 %v1491_v24, %v5798_v21  ;;  %v1300_v9 = vpop.f32.mrf.mxu0  ;;  %v1493_v5 = vpop.f32.mrf.mxu1  ;;  %4297 = vmatprep.subr.bf16.mxu1 %v5023_v18  ;;  %4195 = vmatprep.mubr.msk.bf16.mxu0 %vm1077_vm1, %v5421_v45 }
 0x15b   : > { %4406 = vmatpush3.bf16.msra.mxu0 %v5034_v26  ;;  %v6138_v11 = vpack.c.bf16 %v2277_v34, %v2268_v60  ;;  %v6140_v44 = vpack.c.bf16 %v2279_v15, %v2270_v29  ;;  %v1301_v57 = vadd.f32 %v1300_v9, %v5804_v27  ;;  %v1494_v18 = vadd.f32 %v1493_v5, %v5806_v28  ;;  %v5028_v60 = vld [vmem:[%s7353_s3 + $0x138] sm:$0xff]   ;;  %v5031_v34 = vld [vmem:[%s7353_s3 + $0x170] sm:$0xff]  }
 0x15c   : > { %v1302_v1 = vpop.f32.mrf.mxu0  ;;  %v1495_v54 = vpop.f32.mrf.mxu1  ;;  %4407 = vmatprep.subr.bf16.mxu0 %v5037_v56  ;;  %v2287_v45 = vmax.f32 %v1492_v38, 0.0  ;;  %v2285_v33 = vmax.f32 %v1299_v43, 0.0 }
 0x15d   : > { %v1303_v25 = vadd.f32 %v1302_v1, %v5800_v22  ;;  %v1496_v26 = vadd.f32 %v1495_v54, %v5798_v21  ;;  %4298 = vmatpush3.bf16.msra.mxu1 %v5024_v46  ;;  %v5039_v46 = vld [vmem:[%s7353_s3 + $0xc0] sm:$0xff]   ;;  %v2286_v5 = vmax.f32 %v1301_v57, 0.0  ;;  %v2288_v43 = vmax.f32 %v1494_v18, 0.0  ;;  %v5032_v57 = vld [vmem:[%s7353_s3 + $0x130] sm:$0xff]  }
 0x15e   : > { %v1304_v29 = vpop.f32.mrf.mxu0  ;;  %v1497_v24 = vpop.f32.mrf.mxu1  ;;  %4507 = vmatprep.subr.bf16.mxu1 %v5026_v8  ;;  %v5041_v8 = vld [vmem:[%s7353_s3 + $0x80] sm:$0xff]  }
 0x15f   : > { %v2294_v15 = vmax.f32 %v1303_v25, 0.0  ;;  %v2296_v56 = vmax.f32 %v1496_v26, 0.0  ;;  %v1305_v38 = vadd.f32 %v1304_v29, %v5804_v27  ;;  %v1498_v9 = vadd.f32 %v1497_v24, %v5806_v28  ;;  %4408 = vmatpush3.bf16.msra.mxu0 %v5038_v39 }
 0x160   : > { %v1308_v1 = vpop.f32.mrf.mxu0  ;;  %v1501_v54 = vpop.f32.mrf.mxu1  ;;  %1991 = vmatmul.mubr.bf16.gmra.mxu0 %v5457_v62  ;;  %3135 = vmatmul.mubr.bf16.vlgmr.msra.gmra.mxu1 %v5822_v12  ;;  %v5043_v62 = vld [vmem:[%s7353_s3 + $0x1f8] sm:$0xff]  }
 0x161   : > { %v6162_v25 = vpack.c.bf16 %v2294_v15, %v2285_v33  ;;  %v6164_v26 = vpack.c.bf16 %v2296_v56, %v2287_v45  ;;  %v2295_v39 = vmax.f32 %v1305_v38, 0.0  ;;  %v2297_v29 = vmax.f32 %v1498_v9, 0.0  ;;  %3142 = vmatprep.mubr.bf16.mxu1 %v5854_v52  ;;  %4508 = vmatpush3.bf16.msra.mxu1 %v5028_v60  ;;  %v5035_v52 = vld [vmem:[%s7353_s3 + $0x168] sm:$0xff]  }
 0x162   : > { %v1309_v12 = vadd.f32 %v1308_v1, %v5800_v22  ;;  %v1502_v18 = vadd.f32 %v1501_v54, %v5798_v21  ;;  %v1310_v33 = vpop.f32.mrf.mxu0  ;;  %v1503_v45 = vpop.f32.mrf.mxu1  ;;  %4196 = vmatprep.mubr.msk.bf16.mxu0 %vm1077_vm1, %v5459_v63  ;;  %4509 = vmatprep.subr.bf16.mxu1 %v5031_v34 }
 0x163   : > { %4409 = vmatprep.subr.bf16.mxu0 %v5039_v46  ;;  %v6180_v60 = vpack.c.bf16 %v2295_v39, %v2286_v5  ;;  %v6182_v24 = vpack.c.bf16 %v2297_v29, %v2288_v43  ;;  %v1311_v15 = vadd.f32 %v1310_v33, %v5804_v27  ;;  %v1504_v56 = vadd.f32 %v1503_v45, %v5806_v28  ;;  %v5036_v43 = vld [vmem:[%s7353_s3 + $0x128] sm:$0xff]  }
 0x164   : > { %v1312_v38 = vpop.f32.mrf.mxu0  ;;  %v1505_v9 = vpop.f32.mrf.mxu1  ;;  %4410 = vmatpush3.bf16.msra.mxu0 %v5041_v8  ;;  %v2305_v1 = vmax.f32 %v1502_v18, 0.0  ;;  %v2303_v54 = vmax.f32 %v1309_v12, 0.0  ;;  %v5040_v18 = vld [vmem:[%s7353_s3 + $0x160] sm:$0xff]  }
 0x165   : > { %v1313_v63 = vadd.f32 %v1312_v38, %v5800_v22  ;;  %v1506_v34 = vadd.f32 %v1505_v9, %v5798_v21  ;;  %4510 = vmatpush3.bf16.msra.mxu1 %v5032_v57  ;;  %4619 = vmatprep.subr.bf16.mxu0 %v5043_v62  ;;  %v2304_v57 = vmax.f32 %v1311_v15, 0.0  ;;  %v2306_v62 = vmax.f32 %v1504_v56, 0.0 }
 0x166   : > { %v1314_v46 = vpop.f32.mrf.mxu0  ;;  %v1507_v5 = vpop.f32.mrf.mxu1  ;;  %4511 = vmatprep.subr.bf16.mxu1 %v5035_v52 }
 0x167   : > { %v2312_v39 = vmax.f32 %v1313_v63, 0.0  ;;  %v2314_v29 = vmax.f32 %v1506_v34, 0.0  ;;  %v1315_v33 = vadd.f32 %v1314_v46, %v5804_v27  ;;  %v1508_v8 = vadd.f32 %v1507_v5, %v5806_v28 }
 0x168   : > { %v1318_v12 = vpop.f32.mrf.mxu0  ;;  %v1511_v45 = vpop.f32.mrf.mxu1  ;;  %1999 = vmatmul.mubr.bf16.gmra.mxu0 %v5493_v14  ;;  %3143 = vmatmul.mubr.bf16.gmra.mxu1 %v5844_v23  ;;  %v5042_v14 = vld [vmem:[%s7353_s3 + $0x120] sm:$0xff]   ;;  %v5045_v23 = vld [vmem:[%s7353_s3 + $0x158] sm:$0xff]  }
 0x169   : > { %v6198_v52 = vpack.c.bf16 %v2312_v39, %v2303_v54  ;;  %v6200_v38 = vpack.c.bf16 %v2314_v29, %v2305_v1  ;;  %v2313_v9 = vmax.f32 %v1315_v33, 0.0  ;;  %v2315_v63 = vmax.f32 %v1508_v8, 0.0  ;;  %3150 = vmatprep.mubr.bf16.mxu1 %v5876_v6  ;;  %4197 = vmatprep.mubr.msk.bf16.mxu0 %vm1077_vm1, %v5501_v19 }
 0x16a   : > { %v1319_v15 = vadd.f32 %v1318_v12, %v5800_v22  ;;  %v1512_v56 = vadd.f32 %v1511_v45, %v5798_v21  ;;  %v1320_v34 = vpop.f32.mrf.mxu0  ;;  %v1513_v46 = vpop.f32.mrf.mxu1  ;;  %4512 = vmatpush3.bf16.msra.mxu1 %v5036_v43 }
 0x16b   : > { %4513 = vmatprep.subr.bf16.mxu1 %v5040_v18  ;;  %v6213_v6 = vpack.c.bf16 %v2313_v9, %v2304_v57  ;;  %v6215_v1 = vpack.c.bf16 %v2315_v63, %v2306_v62  ;;  %v1321_v19 = vadd.f32 %v1320_v34, %v5804_v27  ;;  %v1514_v54 = vadd.f32 %v1513_v46, %v5806_v28  ;;  %v5046_v57 = vld [vmem:[%s7353_s3 + $0x118] sm:$0xff]  }
 0x16c   : > { %v1322_v5 = vpop.f32.mrf.mxu0  ;;  %v1515_v39 = vpop.f32.mrf.mxu1  ;;  %v2323_v43 = vmax.f32 %v1512_v56, 0.0  ;;  %v2321_v8 = vmax.f32 %v1319_v15, 0.0  ;;  %v5049_v56 = vld [vmem:[%s7353_s3 + $0x150] sm:$0xff]  }
 0x16d   : > { %v1323_v29 = vadd.f32 %v1322_v5, %v5800_v22  ;;  %v1516_v33 = vadd.f32 %v1515_v39, %v5798_v21  ;;  %v2322_v34 = vmax.f32 %v1321_v19, 0.0  ;;  %v2324_v15 = vmax.f32 %v1514_v54, 0.0 }
 0x16e   : > { %v1324_v18 = vpop.f32.mrf.mxu0  ;;  %v1517_v12 = vpop.f32.mrf.mxu1  ;;  %4514 = vmatpush3.bf16.msra.mxu1 %v5042_v14 }
 0x16f   : > { %v2330_v62 = vmax.f32 %v1323_v29, 0.0  ;;  %v2332_v45 = vmax.f32 %v1516_v33, 0.0  ;;  %v1325_v9 = vadd.f32 %v1324_v18, %v5804_v27  ;;  %v1518_v63 = vadd.f32 %v1517_v12, %v5806_v28  ;;  %4515 = vmatprep.subr.bf16.mxu1 %v5045_v23 }
 0x170   : > { %v1328_v46 = vpop.f32.mrf.mxu0  ;;  %v1521_v5 = vpop.f32.mrf.mxu1  ;;  %2007 = vmatmul.mubr.bf16.gmra.mxu0 %v5531_v32  ;;  %3151 = vmatmul.mubr.bf16.gmra.mxu1 %v5866_v47  ;;  %v5050_v32 = vld [vmem:[%s7353_s3 + $0x110] sm:$0xff]  }
 0x171   : > { %v6231_v14 = vpack.c.bf16 %v2330_v62, %v2321_v8  ;;  %v6233_v39 = vpack.c.bf16 %v2332_v45, %v2323_v43  ;;  %v2331_v29 = vmax.f32 %v1325_v9, 0.0  ;;  %v2333_v33 = vmax.f32 %v1518_v63, 0.0  ;;  %3158 = vmatprep.mubr.bf16.mxu1 %v5898_v10  ;;  %4198 = vmatprep.mubr.msk.bf16.mxu0 %vm1077_vm1, %v5539_v35  ;;  %v5053_v10 = vld [vmem:[%s7353_s3 + $0x148] sm:$0xff]  }
 0x172   : > { %v1329_v23 = vadd.f32 %v1328_v46, %v5800_v22  ;;  %v1522_v19 = vadd.f32 %v1521_v5, %v5798_v21  ;;  %v1330_v54 = vpop.f32.mrf.mxu0  ;;  %v1523_v18 = vpop.f32.mrf.mxu1  ;;  %4516 = vmatpush3.bf16.msra.mxu1 %v5046_v57 }
 0x173   : > { %4517 = vmatprep.subr.bf16.mxu1 %v5049_v56  ;;  %v6243_v47 = vpack.c.bf16 %v2331_v29, %v2322_v34  ;;  %v6248_v43 = vpack.c.bf16 %v2333_v33, %v2324_v15  ;;  %v1331_v35 = vadd.f32 %v1330_v54, %v5804_v27  ;;  %v1524_v8 = vadd.f32 %v1523_v18, %v5806_v28  ;;  %v5054_v15 = vld [vmem:[%s7353_s3 + $0x108] sm:$0xff]  }
 0x174   : > { %v1332_v12 = vpop.f32.mrf.mxu0  ;;  %v1525_v62 = vpop.f32.mrf.mxu1  ;;  %v2341_v57 = vmax.f32 %v1522_v19, 0.0  ;;  %v2339_v63 = vmax.f32 %v1329_v23, 0.0  ;;  %v5057_v19 = vld [vmem:[%s7353_s3 + $0x140] sm:$0xff]  }
 0x175   : > { %v1333_v45 = vadd.f32 %v1332_v12, %v5800_v22  ;;  %v1526_v9 = vadd.f32 %v1525_v62, %v5798_v21  ;;  %v2340_v54 = vmax.f32 %v1331_v35, 0.0  ;;  %v2342_v23 = vmax.f32 %v1524_v8, 0.0 }
 0x176   : > { %v1334_v56 = vpop.f32.mrf.mxu0  ;;  %v1527_v34 = vpop.f32.mrf.mxu1  ;;  %4518 = vmatpush3.bf16.msra.mxu1 %v5050_v32 }
 0x177   : > { %v2348_v46 = vmax.f32 %v1333_v45, 0.0  ;;  %v2350_v5 = vmax.f32 %v1526_v9, 0.0  ;;  %v1335_v29 = vadd.f32 %v1334_v56, %v5804_v27  ;;  %v1528_v33 = vadd.f32 %v1527_v34, %v5806_v28  ;;  %4519 = vmatprep.subr.bf16.mxu1 %v5053_v10 }
 0x178   : > { %v1338_v18 = vpop.f32.mrf.mxu0  ;;  %v1531_v12 = vpop.f32.mrf.mxu1  ;;  %2015 = vmatmul.mubr.bf16.gmra.mxu0 %v5553_v41  ;;  %3159 = vmatmul.mubr.bf16.gmra.mxu1 %v5888_v55  ;;  %v475_v41 = vsub.s32 4, %v5783_v40  ;;  %v483_v55 = vsub.s32 6, %v5783_v40 }
 0x179   : > { %v6264_v32 = vpack.c.bf16 %v2348_v46, %v2339_v63  ;;  %v6266_v62 = vpack.c.bf16 %v2350_v5, %v2341_v57  ;;  %v2349_v45 = vmax.f32 %v1335_v29, 0.0  ;;  %v2351_v9 = vmax.f32 %v1528_v33, 0.0  ;;  %3166 = vmatprep.mubr.bf16.mxu1 %v5920_v36  ;;  %4199 = vmatprep.mubr.msk.bf16.mxu0 %vm1077_vm1, %v5555_v42  ;;  %v5058_v57 = vld [vmem:[%s7353_s3 + $0x100] sm:$0xff]   ;;  %v6283_v42 = vld [vmem:[%s7353_s3 + $0x238] sm:$0xff]  }
 0x17a   : > { %v1339_v10 = vadd.f32 %v1338_v18, %v5800_v22  ;;  %v1532_v35 = vadd.f32 %v1531_v12, %v5798_v21  ;;  %v1340_v8 = vpop.f32.mrf.mxu0  ;;  %v1533_v56 = vpop.f32.mrf.mxu1  ;;  %4520 = vmatpush3.bf16.msra.mxu1 %v5054_v15  ;;  %v479_v29 = vsub.s32 5, %v5783_v40  ;;  %v487_v33 = vsub.s32 7, %v5783_v40 }
 0x17b   : > { %7381 = vst [vmem:[#allocation22_spill] sm:$0xff] %v6266_v62  ;;  %v6278_v63 = vpack.c.bf16 %v2349_v45, %v2340_v54  ;;  %4521 = vmatprep.subr.bf16.mxu1 %v5057_v19  ;;  %v6285_v36 = vpack.c.bf16 %v2351_v9, %v2342_v23  ;;  %v1341_v34 = vadd.f32 %v1340_v8, %v5804_v27  ;;  %v5075_v23 = vld [vmem:[%s7352_s2] sm:$0xff] }
 0x17c   : > { %v1534_v46 = vadd.f32 %v1533_v56, %v5806_v28  ;;  %v1342_v5 = vpop.f32.mrf.mxu0  ;;  %v1535_v15 = vpop.f32.mrf.mxu1  ;;  %v2359_v54 = vmax.f32 %v1532_v35, 0.0  ;;  %v2357_v12 = vmax.f32 %v1339_v10, 0.0  ;;  %v6296_v9 = vrot.slane %v5075_v23, %v475_v41 }
 0x17d   : > { %7382 = vst [vmem:[#allocation23_spill] sm:$0xff] %v6285_v36  ;;  %v1343_v19 = vadd.f32 %v1342_v5, %v5800_v22  ;;  %v1536_v18 = vadd.f32 %v1535_v15, %v5798_v21  ;;  %v6298_v8 = vrot.slane %v5075_v23, %v483_v55  ;;  %v2358_v21 = vmax.f32 %v1341_v34, 0.0 }
 0x17e   : > { %v1344_v45 = vpop.f32.mrf.mxu0  ;;  %v1537_v62 = vpop.f32.mrf.mxu1  ;;  %4522 = vmatpush3.bf16.msra.mxu1 %v5058_v57  ;;  %v2360_v10 = vmax.f32 %v1534_v46, 0.0  ;;  %v6305_v41 = vrot.slane %v5075_v23, %v479_v29  ;;  %v6307_v55 = vrot.slane %v5075_v23, %v487_v33 }
 0x17f   : > { %v2366_v56 = vmax.f32 %v1343_v19, 0.0  ;;  %v2368_v36 = vmax.f32 %v1536_v18, 0.0  ;;  %v1345_v40 = vadd.f32 %v1344_v45, %v5804_v27  ;;  %v1538_v22 = vadd.f32 %v1537_v62, %v5806_v28  ;;  %4755 = vmatprep.subr.bf16.mxu1 %v6283_v42 }
 0x180   : > { %v1574_v35 = vpop.f32.mrf.mxu0  ;;  %v1767_v5 = vpop.f32.mrf.mxu1  ;;  %2023 = vmatmul.mubr.bf16.gmra.mxu0 %v5567_v50  ;;  %3167 = vmatmul.mubr.bf16.gmra.mxu1 %v5910_v58 }
 0x181   : > { %v6309_v57 = vpack.c.bf16 %v2366_v56, %v2357_v12  ;;  %v6311_v15 = vpack.c.bf16 %v2368_v36, %v2359_v54  ;;  %v2367_v27 = vmax.f32 %v1345_v40, 0.0  ;;  %v2369_v28 = vmax.f32 %v1538_v22, 0.0  ;;  %3174 = vmatprep.mubr.bf16.mxu1 %v5942_v59  ;;  %4200 = vmatprep.mubr.msk.bf16.mxu0 %vm1077_vm1, %v5569_v51 }
 0x182   : > { %v1575_v62 = vadd.f32 %v1574_v35, %v6296_v9  ;;  %v1768_v50 = vadd.f32 %v1767_v5, %v6298_v8  ;;  %v1576_v58 = vpop.f32.mrf.mxu0  ;;  %v1769_v34 = vpop.f32.mrf.mxu1 }
 0x183   : > { %v6318_v46 = vpack.c.bf16 %v2367_v27, %v2358_v21  ;;  %v6320_v29 = vpack.c.bf16 %v2369_v28, %v2360_v10  ;;  %v1577_v36 = vadd.f32 %v1576_v58, %v6305_v41  ;;  %v1770_v33 = vadd.f32 %v1769_v34, %v6307_v55  ;;  %v7383_v28 = vld [vmem:[#allocation2_spill] sm:$0xff] }
 0x184   : > { %v1578_v54 = vpop.f32.mrf.mxu0  ;;  %v1771_v19 = vpop.f32.mrf.mxu1  ;;  %v2093_v59 = vmax.f32 %v1768_v50, 0.0  ;;  %v2091_v12 = vmax.f32 %v1575_v62, 0.0  ;;  %v7384_v50 = vld [vmem:[#allocation17_spill] sm:$0xff] }
 0x185   : > { %v1579_v18 = vadd.f32 %v1578_v54, %v6296_v9  ;;  %v1772_v51 = vadd.f32 %v1771_v19, %v6298_v8  ;;  %v2092_v10 = vmax.f32 %v1577_v36, 0.0  ;;  %v2094_v35 = vmax.f32 %v1770_v33, 0.0  ;;  %v7386_v19 = vld [vmem:[#allocation3_spill] sm:$0xff] }
 0x186   : > { %v1580_v45 = vpop.f32.mrf.mxu0  ;;  %v1773_v23 = vpop.f32.mrf.mxu1 }
 0x187   : > { %v2100_v56 = vmax.f32 %v1579_v18, 0.0  ;;  %v2102_v40 = vmax.f32 %v1772_v51, 0.0  ;;  %v1581_v22 = vadd.f32 %v1580_v45, %v6305_v41  ;;  %v1774_v21 = vadd.f32 %v1773_v23, %v6307_v55 }
 0x188   : > { %v1584_v5 = vpop.f32.mrf.mxu0  ;;  %v1777_v27 = vpop.f32.mrf.mxu1  ;;  %2031 = vmatmul.mubr.bf16.gmra.mxu0 %v7383_v28  ;;  %3175 = vmatmul.mubr.bf16.gmra.mxu1 %v7384_v50 }
 0x189   : > { %v6330_v58 = vpack.c.bf16 %v2100_v56, %v2091_v12  ;;  %v6332_v34 = vpack.c.bf16 %v2102_v40, %v2093_v59  ;;  %v2101_v62 = vmax.f32 %v1581_v22, 0.0  ;;  %v2103_v54 = vmax.f32 %v1774_v21, 0.0  ;;  %3182 = vmatprep.mubr.bf16.mxu1 %v5964_v20  ;;  %4201 = vmatprep.mubr.msk.bf16.mxu0 %vm1077_vm1, %v7386_v19 }
 0x18a   : > { %v1585_v36 = vadd.f32 %v1584_v5, %v6296_v9  ;;  %v1778_v33 = vadd.f32 %v1777_v27, %v6298_v8  ;;  %v1586_v18 = vpop.f32.mrf.mxu0  ;;  %v1779_v51 = vpop.f32.mrf.mxu1 }
 0x18b   : > { %7385 = vst [vmem:[#allocation2_spill] sm:$0xff] %v6332_v34  ;;  %v6339_v45 = vpack.c.bf16 %v2101_v62, %v2092_v10  ;;  %v6341_v23 = vpack.c.bf16 %v2103_v54, %v2094_v35  ;;  %v1587_v59 = vadd.f32 %v1586_v18, %v6305_v41  ;;  %v1780_v12 = vadd.f32 %v1779_v51, %v6307_v55  ;;  %v7388_v34 = vld [vmem:[#allocation4_spill] sm:$0xff] }
 0x18c   : > { %v1588_v56 = vpop.f32.mrf.mxu0  ;;  %v1781_v40 = vpop.f32.mrf.mxu1  ;;  %v2111_v20 = vmax.f32 %v1778_v33, 0.0  ;;  %v2109_v5 = vmax.f32 %v1585_v36, 0.0 }
 0x18d   : > { %7387 = vst [vmem:[#allocation17_spill] sm:$0xff] %v6341_v23  ;;  %v1589_v22 = vadd.f32 %v1588_v56, %v6296_v9  ;;  %v1782_v21 = vadd.f32 %v1781_v40, %v6298_v8  ;;  %v2110_v62 = vmax.f32 %v1587_v59, 0.0  ;;  %v2112_v54 = vmax.f32 %v1780_v12, 0.0 }
 0x18e   : > { %v1590_v28 = vpop.f32.mrf.mxu0  ;;  %v1783_v27 = vpop.f32.mrf.mxu1 }
 0x18f   : > { %v2118_v50 = vmax.f32 %v1589_v22, 0.0  ;;  %v2120_v19 = vmax.f32 %v1782_v21, 0.0  ;;  %v1591_v10 = vadd.f32 %v1590_v28, %v6305_v41  ;;  %v1784_v35 = vadd.f32 %v1783_v27, %v6307_v55  ;;  %v7390_v22 = vld [vmem:[#allocation5_spill] sm:$0xff] }
 0x190   : > { %v1594_v18 = vpop.f32.mrf.mxu0  ;;  %v1787_v51 = vpop.f32.mrf.mxu1  ;;  %2039 = vmatmul.mubr.bf16.gmra.mxu0 %v7388_v34  ;;  %3183 = vmatmul.mubr.bf16.gmra.mxu1 %v5954_v48 }
 0x191   : > { %v6351_v33 = vpack.c.bf16 %v2118_v50, %v2109_v5  ;;  %v6353_v56 = vpack.c.bf16 %v2120_v19, %v2111_v20  ;;  %v2119_v36 = vmax.f32 %v1591_v10, 0.0  ;;  %v2121_v40 = vmax.f32 %v1784_v35, 0.0  ;;  %3190 = vmatprep.mubr.bf16.mxu1 %v6010_v3  ;;  %4202 = vmatprep.mubr.msk.bf16.mxu0 %vm1077_vm1, %v7390_v22 }
 0x192   : > { %v1595_v59 = vadd.f32 %v1594_v18, %v6296_v9  ;;  %v1788_v12 = vadd.f32 %v1787_v51, %v6298_v8  ;;  %v1596_v21 = vpop.f32.mrf.mxu0  ;;  %v1789_v28 = vpop.f32.mrf.mxu1 }
 0x193   : > { %7389 = vst [vmem:[#allocation3_spill] sm:$0xff] %v6353_v56  ;;  %v6360_v34 = vpack.c.bf16 %v2119_v36, %v2110_v62  ;;  %v6362_v48 = vpack.c.bf16 %v2121_v40, %v2112_v54  ;;  %v1597_v20 = vadd.f32 %v1596_v21, %v6305_v41  ;;  %v1790_v5 = vadd.f32 %v1789_v28, %v6307_v55 }
 0x194   : > { %v1598_v27 = vpop.f32.mrf.mxu0  ;;  %v1791_v50 = vpop.f32.mrf.mxu1  ;;  %v2129_v3 = vmax.f32 %v1788_v12, 0.0  ;;  %v2127_v35 = vmax.f32 %v1595_v59, 0.0 }
 0x195   : > { %7391 = vst [vmem:[#allocation4_spill] sm:$0xff] %v6362_v48  ;;  %v1599_v19 = vadd.f32 %v1598_v27, %v6296_v9  ;;  %v1792_v10 = vadd.f32 %v1791_v50, %v6298_v8  ;;  %v2128_v36 = vmax.f32 %v1597_v20, 0.0  ;;  %v2130_v40 = vmax.f32 %v1790_v5, 0.0  ;;  %v7392_v48 = vld [vmem:[#allocation6_spill] sm:$0xff] }
 0x196   : > { %v1600_v18 = vpop.f32.mrf.mxu0  ;;  %v1793_v51 = vpop.f32.mrf.mxu1 }
 0x197   : > { %v2136_v22 = vmax.f32 %v1599_v19, 0.0  ;;  %v2138_v56 = vmax.f32 %v1792_v10, 0.0  ;;  %v1601_v62 = vadd.f32 %v1600_v18, %v6305_v41  ;;  %v1794_v54 = vadd.f32 %v1793_v51, %v6307_v55  ;;  %v7394_v19 = vld [vmem:[#allocation8_spill] sm:$0xff] }
 0x198   : > { %v1604_v21 = vpop.f32.mrf.mxu0  ;;  %v1797_v28 = vpop.f32.mrf.mxu1  ;;  %2047 = vmatmul.mubr.bf16.gmra.mxu0 %v7392_v48  ;;  %3191 = vmatmul.mubr.bf16.gmra.mxu1 %v5988_v37 }
 0x199   : > { %v6372_v12 = vpack.c.bf16 %v2136_v22, %v2127_v35  ;;  %v6374_v27 = vpack.c.bf16 %v2138_v56, %v2129_v3  ;;  %v2137_v59 = vmax.f32 %v1601_v62, 0.0  ;;  %v2139_v50 = vmax.f32 %v1794_v54, 0.0  ;;  %3198 = vmatprep.mubr.bf16.mxu1 %v6053_v16  ;;  %3295 = vmatprep.mubr.bf16.mxu0 %v7394_v19 }
 0x19a   : > { %v1605_v10 = vadd.f32 %v1604_v21, %v6296_v9  ;;  %v1798_v20 = vadd.f32 %v1797_v28, %v6298_v8  ;;  %v1606_v5 = vpop.f32.mrf.mxu0  ;;  %v1799_v18 = vpop.f32.mrf.mxu1 }
 0x19b   : > { %7393 = vst [vmem:[#allocation5_spill] sm:$0xff] %v6374_v27  ;;  %v6380_v51 = vpack.c.bf16 %v2137_v59, %v2128_v36  ;;  %v6382_v48 = vpack.c.bf16 %v2139_v50, %v2130_v40  ;;  %v1607_v37 = vadd.f32 %v1606_v5, %v6305_v41  ;;  %v1800_v56 = vadd.f32 %v1799_v18, %v6307_v55  ;;  %v5044_v36 = vld [vmem:[%s7353_s3 + $0x1b8] sm:$0xff]  }
 0x19c   : > { %v1608_v3 = vpop.f32.mrf.mxu0  ;;  %v1801_v35 = vpop.f32.mrf.mxu1  ;;  %v2147_v22 = vmax.f32 %v1798_v20, 0.0  ;;  %v2145_v54 = vmax.f32 %v1605_v10, 0.0  ;;  %v5047_v20 = vld [vmem:[%s7353_s3 + $0x1f0] sm:$0xff]  }
 0x19d   : > { %7395 = vst [vmem:[#allocation6_spill] sm:$0xff] %v6382_v48  ;;  %v1609_v16 = vadd.f32 %v1608_v3, %v6296_v9  ;;  %v1802_v62 = vadd.f32 %v1801_v35, %v6298_v8  ;;  %v2146_v5 = vmax.f32 %v1607_v37, 0.0  ;;  %v2148_v18 = vmax.f32 %v1800_v56, 0.0  ;;  %v7396_v35 = vld [vmem:[#allocation7_spill] sm:$0xff] }
 0x19e   : > { %v1610_v21 = vpop.f32.mrf.mxu0  ;;  %v1803_v28 = vpop.f32.mrf.mxu1 }
 0x19f   : > { %v2154_v40 = vmax.f32 %v1609_v16, 0.0  ;;  %v2156_v59 = vmax.f32 %v1802_v62, 0.0  ;;  %v1611_v50 = vadd.f32 %v1610_v21, %v6305_v41  ;;  %v1804_v19 = vadd.f32 %v1803_v28, %v6307_v55  ;;  %v7398_v28 = vld [vmem:[#allocation10_spill] sm:$0xff] }
 0x1a0   : > { %v1614_v3 = vpop.f32.mrf.mxu0  ;;  %v1807_v10 = vpop.f32.mrf.mxu1  ;;  %3199 = vmatmul.mubr.bf16.gmra.mxu1 %v6034_v49  ;;  %3296 = vmatmul.mubr.bf16.vlgmr.msra.gmra.mxu0 %v7396_v35  ;;  %v5048_v49 = vld [vmem:[%s7353_s3 + $0x1b0] sm:$0xff]  }
 0x1a1   : > { %v6398_v27 = vpack.c.bf16 %v2154_v40, %v2145_v54  ;;  %v6400_v16 = vpack.c.bf16 %v2156_v59, %v2147_v22  ;;  %v2155_v62 = vmax.f32 %v1611_v50, 0.0  ;;  %v2157_v21 = vmax.f32 %v1804_v19, 0.0  ;;  %3206 = vmatprep.mubr.bf16.mxu1 %v6096_v30  ;;  %3303 = vmatprep.mubr.bf16.mxu0 %v7398_v28  ;;  %v5051_v22 = vld [vmem:[%s7353_s3 + $0x1e8] sm:$0xff]  }
 0x1a2   : > { %v1615_v48 = vadd.f32 %v1614_v3, %v6296_v9  ;;  %v1808_v37 = vadd.f32 %v1807_v10, %v6298_v8  ;;  %4620 = vmatpush3.bf16.msra.mxu0 %v5044_v36  ;;  %v1616_v56 = vpop.f32.mrf.mxu0  ;;  %v1809_v23 = vpop.f32.mrf.mxu1 }
 0x1a3   : > { %7397 = vst [vmem:[#allocation8_spill] sm:$0xff] %v6400_v16  ;;  %4621 = vmatprep.subr.bf16.mxu0 %v5047_v20  ;;  %v6412_v54 = vpack.c.bf16 %v2155_v62, %v2146_v5  ;;  %v6414_v30 = vpack.c.bf16 %v2157_v21, %v2148_v18  ;;  %v1617_v40 = vadd.f32 %v1616_v56, %v6305_v41  ;;  %v5052_v5 = vld [vmem:[%s7353_s3 + $0x1a8] sm:$0xff]  }
 0x1a4   : > { %v1810_v59 = vadd.f32 %v1809_v23, %v6307_v55  ;;  %v1618_v36 = vpop.f32.mrf.mxu0  ;;  %v1811_v50 = vpop.f32.mrf.mxu1  ;;  %v2165_v19 = vmax.f32 %v1808_v37, 0.0  ;;  %v2163_v20 = vmax.f32 %v1615_v48, 0.0  ;;  %v5055_v37 = vld [vmem:[%s7353_s3 + $0x1e0] sm:$0xff]  }
 0x1a5   : > { %7399 = vst [vmem:[#allocation7_spill] sm:$0xff] %v6414_v30  ;;  %v1619_v3 = vadd.f32 %v1618_v36, %v6296_v9  ;;  %v1812_v10 = vadd.f32 %v1811_v50, %v6298_v8  ;;  %v2164_v56 = vmax.f32 %v1617_v40, 0.0 }
 0x1a6   : > { %v1620_v35 = vpop.f32.mrf.mxu0  ;;  %v1813_v28 = vpop.f32.mrf.mxu1  ;;  %4622 = vmatpush3.bf16.msra.mxu0 %v5048_v49  ;;  %v2166_v48 = vmax.f32 %v1810_v59, 0.0  ;;  %v7400_v49 = vld [vmem:[#allocation9_spill] sm:$0xff] }
 0x1a7   : > { %v2172_v18 = vmax.f32 %v1619_v3, 0.0  ;;  %v2174_v62 = vmax.f32 %v1812_v10, 0.0  ;;  %v1621_v21 = vadd.f32 %v1620_v35, %v6305_v41  ;;  %v1814_v23 = vadd.f32 %v1813_v28, %v6307_v55  ;;  %4623 = vmatprep.subr.bf16.mxu0 %v5051_v22  ;;  %v7402_v22 = vld [vmem:[#allocation12_spill] sm:$0xff] }
 0x1a8   : > { %v1624_v36 = vpop.f32.mrf.mxu0  ;;  %v1817_v50 = vpop.f32.mrf.mxu1  ;;  %3207 = vmatmul.mubr.bf16.gmra.mxu1 %v6077_v2  ;;  %3304 = vmatmul.mubr.bf16.gmra.mxu0 %v7400_v49  ;;  %v5056_v2 = vld [vmem:[%s7353_s3 + $0x1a0] sm:$0xff]  }
 0x1a9   : > { %v6430_v16 = vpack.c.bf16 %v2172_v18, %v2163_v20  ;;  %v6432_v3 = vpack.c.bf16 %v2174_v62, %v2165_v19  ;;  %v2173_v10 = vmax.f32 %v1621_v21, 0.0  ;;  %v2175_v35 = vmax.f32 %v1814_v23, 0.0  ;;  %3214 = vmatprep.mubr.bf16.mxu1 %v6138_v11  ;;  %3311 = vmatprep.mubr.bf16.mxu0 %v7402_v22  ;;  %v5059_v19 = vld [vmem:[%s7353_s3 + $0x1d8] sm:$0xff]  }
 0x1aa   : > { %v1625_v28 = vadd.f32 %v1624_v36, %v6296_v9  ;;  %v1818_v40 = vadd.f32 %v1817_v50, %v6298_v8  ;;  %v1626_v59 = vpop.f32.mrf.mxu0  ;;  %v1819_v30 = vpop.f32.mrf.mxu1  ;;  %4624 = vmatpush3.bf16.msra.mxu0 %v5052_v5 }
 0x1ab   : > { %7401 = vst [vmem:[#allocation10_spill] sm:$0xff] %v6432_v3  ;;  %4625 = vmatprep.subr.bf16.mxu0 %v5055_v37  ;;  %v6444_v20 = vpack.c.bf16 %v2173_v10, %v2164_v56  ;;  %v6446_v11 = vpack.c.bf16 %v2175_v35, %v2166_v48  ;;  %v1627_v18 = vadd.f32 %v1626_v59, %v6305_v41  ;;  %v5060_v56 = vld [vmem:[%s7353_s3 + $0x198] sm:$0xff]  }
 0x1ac   : > { %v1820_v62 = vadd.f32 %v1819_v30, %v6307_v55  ;;  %v1628_v21 = vpop.f32.mrf.mxu0  ;;  %v1821_v23 = vpop.f32.mrf.mxu1  ;;  %v2183_v5 = vmax.f32 %v1818_v40, 0.0  ;;  %v2181_v37 = vmax.f32 %v1625_v28, 0.0  ;;  %v5062_v40 = vld [vmem:[%s7353_s3 + $0x1d0] sm:$0xff]  }
 0x1ad   : > { %7403 = vst [vmem:[#allocation9_spill] sm:$0xff] %v6446_v11  ;;  %v1629_v36 = vadd.f32 %v1628_v21, %v6296_v9  ;;  %v1822_v50 = vadd.f32 %v1821_v23, %v6298_v8  ;;  %v2182_v59 = vmax.f32 %v1627_v18, 0.0 }
 0x1ae   : > { %v1630_v49 = vpop.f32.mrf.mxu0  ;;  %v1823_v22 = vpop.f32.mrf.mxu1  ;;  %4626 = vmatpush3.bf16.msra.mxu0 %v5056_v2  ;;  %v2184_v28 = vmax.f32 %v1820_v62, 0.0  ;;  %v7404_v2 = vld [vmem:[#allocation11_spill] sm:$0xff] }
 0x1af   : > { %v2190_v48 = vmax.f32 %v1629_v36, 0.0  ;;  %v2192_v10 = vmax.f32 %v1822_v50, 0.0  ;;  %v1631_v35 = vadd.f32 %v1630_v49, %v6305_v41  ;;  %v1824_v30 = vadd.f32 %v1823_v22, %v6307_v55  ;;  %4627 = vmatprep.subr.bf16.mxu0 %v5059_v19  ;;  %v7406_v19 = vld [vmem:[#allocation14_spill] sm:$0xff] }
 0x1b0   : > { %v1634_v21 = vpop.f32.mrf.mxu0  ;;  %v1827_v23 = vpop.f32.mrf.mxu1  ;;  %3215 = vmatmul.mubr.bf16.gmra.mxu1 %v6120_v13  ;;  %3312 = vmatmul.mubr.bf16.gmra.mxu0 %v7404_v2  ;;  %v5063_v13 = vld [vmem:[%s7353_s3 + $0x190] sm:$0xff]  }
 0x1b1   : > { %v6462_v3 = vpack.c.bf16 %v2190_v48, %v2181_v37  ;;  %v6464_v36 = vpack.c.bf16 %v2192_v10, %v2183_v5  ;;  %v2191_v50 = vmax.f32 %v1631_v35, 0.0  ;;  %v2193_v49 = vmax.f32 %v1824_v30, 0.0  ;;  %3222 = vmatprep.mubr.bf16.mxu1 %v6180_v60  ;;  %3319 = vmatprep.mubr.bf16.mxu0 %v7406_v19  ;;  %v5065_v5 = vld [vmem:[%s7353_s3 + $0x1c8] sm:$0xff]  }
 0x1b2   : > { %v1635_v22 = vadd.f32 %v1634_v21, %v6296_v9  ;;  %v1828_v18 = vadd.f32 %v1827_v23, %v6298_v8  ;;  %v1636_v62 = vpop.f32.mrf.mxu0  ;;  %v1829_v11 = vpop.f32.mrf.mxu1  ;;  %4628 = vmatpush3.bf16.msra.mxu0 %v5060_v56 }
 0x1b3   : > { %7405 = vst [vmem:[#allocation12_spill] sm:$0xff] %v6464_v36  ;;  %4629 = vmatprep.subr.bf16.mxu0 %v5062_v40  ;;  %v6476_v37 = vpack.c.bf16 %v2191_v50, %v2182_v59  ;;  %v6478_v60 = vpack.c.bf16 %v2193_v49, %v2184_v28  ;;  %v1637_v48 = vadd.f32 %v1636_v62, %v6305_v41  ;;  %v5066_v59 = vld [vmem:[%s7353_s3 + $0x188] sm:$0xff]  }
 0x1b4   : > { %v1830_v10 = vadd.f32 %v1829_v11, %v6307_v55  ;;  %v1638_v35 = vpop.f32.mrf.mxu0  ;;  %v1831_v30 = vpop.f32.mrf.mxu1  ;;  %v2201_v56 = vmax.f32 %v1828_v18, 0.0  ;;  %v2199_v40 = vmax.f32 %v1635_v22, 0.0  ;;  %v5068_v18 = vld [vmem:[%s7353_s3 + $0x1c0] sm:$0xff]  }
 0x1b5   : > { %7407 = vst [vmem:[#allocation11_spill] sm:$0xff] %v6478_v60  ;;  %v1639_v21 = vadd.f32 %v1638_v35, %v6296_v9  ;;  %v1832_v23 = vadd.f32 %v1831_v30, %v6298_v8  ;;  %v2200_v62 = vmax.f32 %v1637_v48, 0.0 }
 0x1b6   : > { %v1640_v2 = vpop.f32.mrf.mxu0  ;;  %v1833_v19 = vpop.f32.mrf.mxu1  ;;  %4630 = vmatpush3.bf16.msra.mxu0 %v5063_v13  ;;  %v2202_v22 = vmax.f32 %v1830_v10, 0.0  ;;  %v7408_v13 = vld [vmem:[#allocation13_spill] sm:$0xff] }
 0x1b7   : > { %v2208_v28 = vmax.f32 %v1639_v21, 0.0  ;;  %v2210_v50 = vmax.f32 %v1832_v23, 0.0  ;;  %v1641_v49 = vadd.f32 %v1640_v2, %v6305_v41  ;;  %v1834_v11 = vadd.f32 %v1833_v19, %v6307_v55  ;;  %4631 = vmatprep.subr.bf16.mxu0 %v5065_v5  ;;  %v7410_v5 = vld [vmem:[#allocation16_spill] sm:$0xff] }
 0x1b8   : > { %v1644_v35 = vpop.f32.mrf.mxu0  ;;  %v1837_v30 = vpop.f32.mrf.mxu1  ;;  %3223 = vmatmul.mubr.bf16.gmra.mxu1 %v6162_v25  ;;  %3320 = vmatmul.mubr.bf16.gmra.mxu0 %v7408_v13  ;;  %v5069_v25 = vld [vmem:[%s7353_s3 + $0x180] sm:$0xff]  }
 0x1b9   : > { %v6494_v36 = vpack.c.bf16 %v2208_v28, %v2199_v40  ;;  %v6496_v21 = vpack.c.bf16 %v2210_v50, %v2201_v56  ;;  %v2209_v23 = vmax.f32 %v1641_v49, 0.0  ;;  %v2211_v2 = vmax.f32 %v1834_v11, 0.0  ;;  %3230 = vmatprep.mubr.bf16.mxu1 %v6213_v6  ;;  %3327 = vmatprep.mubr.bf16.mxu0 %v7410_v5 }
 0x1ba   : > { %v1645_v19 = vadd.f32 %v1644_v35, %v6296_v9  ;;  %v1838_v48 = vadd.f32 %v1837_v30, %v6298_v8  ;;  %v1646_v10 = vpop.f32.mrf.mxu0  ;;  %v1839_v60 = vpop.f32.mrf.mxu1  ;;  %4632 = vmatpush3.bf16.msra.mxu0 %v5066_v59 }
 0x1bb   : > { %7409 = vst [vmem:[#allocation14_spill] sm:$0xff] %v6496_v21  ;;  %v6505_v40 = vpack.c.bf16 %v2209_v23, %v2200_v62  ;;  %4633 = vmatprep.subr.bf16.mxu0 %v5068_v18  ;;  %v6507_v56 = vpack.c.bf16 %v2211_v2, %v2202_v22  ;;  %v1647_v6 = vadd.f32 %v1646_v10, %v6305_v41 }
 0x1bc   : > { %v1840_v28 = vadd.f32 %v1839_v60, %v6307_v55  ;;  %v1648_v50 = vpop.f32.mrf.mxu0  ;;  %v1841_v49 = vpop.f32.mrf.mxu1  ;;  %v2219_v11 = vmax.f32 %v1838_v48, 0.0  ;;  %v2217_v30 = vmax.f32 %v1645_v19, 0.0  ;;  %v7411_v48 = vld [vmem:[#allocation15_spill] sm:$0xff] }
 0x1bd   : > { %v1649_v35 = vadd.f32 %v1648_v50, %v6296_v9  ;;  %v1842_v59 = vadd.f32 %v1841_v49, %v6298_v8  ;;  %v2218_v2 = vmax.f32 %v1647_v6, 0.0 }
 0x1be   : > { %v1650_v13 = vpop.f32.mrf.mxu0  ;;  %v1843_v5 = vpop.f32.mrf.mxu1  ;;  %4634 = vmatpush3.bf16.msra.mxu0 %v5069_v25  ;;  %v2220_v10 = vmax.f32 %v1840_v28, 0.0 }
 0x1bf   : > { %v2226_v62 = vmax.f32 %v1649_v35, 0.0  ;;  %v2228_v23 = vmax.f32 %v1842_v59, 0.0  ;;  %v1651_v18 = vadd.f32 %v1650_v13, %v6305_v41  ;;  %v1844_v22 = vadd.f32 %v1843_v5, %v6307_v55  ;;  %v7413_v35 = vld [vmem:[#allocation19_spill] sm:$0xff] }
 0x1c0   : > { %v1654_v60 = vpop.f32.mrf.mxu0  ;;  %v1847_v21 = vpop.f32.mrf.mxu1  ;;  %3231 = vmatmul.mubr.bf16.gmra.mxu1 %v6198_v52  ;;  %3328 = vmatmul.mubr.bf16.gmra.mxu0 %v7411_v48 }
 0x1c1   : > { %v6517_v50 = vpack.c.bf16 %v2226_v62, %v2217_v30  ;;  %v6519_v19 = vpack.c.bf16 %v2228_v23, %v2219_v11  ;;  %v2227_v49 = vmax.f32 %v1651_v18, 0.0  ;;  %v2229_v25 = vmax.f32 %v1844_v22, 0.0  ;;  %3238 = vmatprep.mubr.bf16.mxu1 %v6243_v47  ;;  %3335 = vmatprep.mubr.bf16.mxu0 %v7413_v35 }
 0x1c2   : > { %v1655_v59 = vadd.f32 %v1654_v60, %v6296_v9  ;;  %v1848_v6 = vadd.f32 %v1847_v21, %v6298_v8  ;;  %v1656_v28 = vpop.f32.mrf.mxu0  ;;  %v1849_v13 = vpop.f32.mrf.mxu1 }
 0x1c3   : > { %7412 = vst [vmem:[#allocation13_spill] sm:$0xff] %v6519_v19  ;;  %v6525_v5 = vpack.c.bf16 %v2227_v49, %v2218_v2  ;;  %v6527_v52 = vpack.c.bf16 %v2229_v25, %v2220_v10  ;;  %v1657_v30 = vadd.f32 %v1656_v28, %v6305_v41  ;;  %v1850_v11 = vadd.f32 %v1849_v13, %v6307_v55 }
 0x1c4   : > { %v1658_v62 = vpop.f32.mrf.mxu0  ;;  %v1851_v23 = vpop.f32.mrf.mxu1  ;;  %v2237_v18 = vmax.f32 %v1848_v6, 0.0  ;;  %v2235_v60 = vmax.f32 %v1655_v59, 0.0  ;;  %v7415_v6 = vld [vmem:[#allocation18_spill] sm:$0xff] }
 0x1c5   : > { %7414 = vst [vmem:[#allocation16_spill] sm:$0xff] %v6527_v52  ;;  %v1659_v47 = vadd.f32 %v1658_v62, %v6296_v9  ;;  %v1852_v22 = vadd.f32 %v1851_v23, %v6298_v8  ;;  %v2236_v49 = vmax.f32 %v1657_v30, 0.0  ;;  %v2238_v25 = vmax.f32 %v1850_v11, 0.0 }
 0x1c6   : > { %v1660_v48 = vpop.f32.mrf.mxu0  ;;  %v1853_v21 = vpop.f32.mrf.mxu1 }
 0x1c7   : > { %v2244_v35 = vmax.f32 %v1659_v47, 0.0  ;;  %v2246_v19 = vmax.f32 %v1852_v22, 0.0  ;;  %v1661_v2 = vadd.f32 %v1660_v48, %v6305_v41  ;;  %v1854_v10 = vadd.f32 %v1853_v21, %v6307_v55  ;;  %v7417_v47 = vld [vmem:[#allocation21_spill] sm:$0xff] }
 0x1c8   : > { %v1664_v28 = vpop.f32.mrf.mxu0  ;;  %v1857_v13 = vpop.f32.mrf.mxu1  ;;  %3239 = vmatmul.mubr.bf16.gmra.mxu1 %v6231_v14  ;;  %3336 = vmatmul.mubr.bf16.gmra.mxu0 %v7415_v6 }
 0x1c9   : > { %v6537_v62 = vpack.c.bf16 %v2244_v35, %v2235_v60  ;;  %v6539_v23 = vpack.c.bf16 %v2246_v19, %v2237_v18  ;;  %v2245_v59 = vmax.f32 %v1661_v2, 0.0  ;;  %v2247_v52 = vmax.f32 %v1854_v10, 0.0  ;;  %3246 = vmatprep.mubr.bf16.mxu1 %v6278_v63  ;;  %3343 = vmatprep.mubr.bf16.mxu0 %v7417_v47 }
 0x1ca   : > { %v1665_v22 = vadd.f32 %v1664_v28, %v6296_v9  ;;  %v1858_v30 = vadd.f32 %v1857_v13, %v6298_v8  ;;  %v1666_v11 = vpop.f32.mrf.mxu0  ;;  %v1859_v48 = vpop.f32.mrf.mxu1 }
 0x1cb   : > { %7416 = vst [vmem:[#allocation15_spill] sm:$0xff] %v6539_v23  ;;  %v6545_v21 = vpack.c.bf16 %v2245_v59, %v2236_v49  ;;  %v6547_v14 = vpack.c.bf16 %v2247_v52, %v2238_v25  ;;  %v1667_v60 = vadd.f32 %v1666_v11, %v6305_v41  ;;  %v1860_v19 = vadd.f32 %v1859_v48, %v6307_v55 }
 0x1cc   : > { %v1668_v18 = vpop.f32.mrf.mxu0  ;;  %v1861_v35 = vpop.f32.mrf.mxu1  ;;  %v2255_v2 = vmax.f32 %v1858_v30, 0.0  ;;  %v2253_v28 = vmax.f32 %v1665_v22, 0.0  ;;  %v7419_v30 = vld [vmem:[#allocation20_spill] sm:$0xff] }
 0x1cd   : > { %7418 = vst [vmem:[#allocation19_spill] sm:$0xff] %v6547_v14  ;;  %v1669_v63 = vadd.f32 %v1668_v18, %v6296_v9  ;;  %v1862_v10 = vadd.f32 %v1861_v35, %v6298_v8  ;;  %v2254_v25 = vmax.f32 %v1667_v60, 0.0  ;;  %v2256_v59 = vmax.f32 %v1860_v19, 0.0 }
 0x1ce   : > { %v1670_v6 = vpop.f32.mrf.mxu0  ;;  %v1863_v13 = vpop.f32.mrf.mxu1 }
 0x1cf   : > { %v2262_v47 = vmax.f32 %v1669_v63, 0.0  ;;  %v2264_v23 = vmax.f32 %v1862_v10, 0.0  ;;  %v1671_v49 = vadd.f32 %v1670_v6, %v6305_v41  ;;  %v1864_v52 = vadd.f32 %v1863_v13, %v6307_v55 }
 0x1d0   : > { %v1674_v11 = vpop.f32.mrf.mxu0  ;;  %v1867_v48 = vpop.f32.mrf.mxu1  ;;  %3247 = vmatmul.mubr.bf16.gmra.mxu1 %v6264_v32  ;;  %3344 = vmatmul.mubr.bf16.gmra.mxu0 %v7419_v30 }
 0x1d1   : > { %v6557_v18 = vpack.c.bf16 %v2262_v47, %v2253_v28  ;;  %v6559_v35 = vpack.c.bf16 %v2264_v23, %v2255_v2  ;;  %v2263_v22 = vmax.f32 %v1671_v49, 0.0  ;;  %v2265_v14 = vmax.f32 %v1864_v52, 0.0  ;;  %3254 = vmatprep.mubr.bf16.mxu1 %v6318_v46  ;;  %3351 = vmatprep.mubr.bf16.mxu0 %v6014_v61 }
 0x1d2   : > { %v1675_v63 = vadd.f32 %v1674_v11, %v6296_v9  ;;  %v1868_v60 = vadd.f32 %v1867_v48, %v6298_v8  ;;  %v1676_v19 = vpop.f32.mrf.mxu0  ;;  %v1869_v10 = vpop.f32.mrf.mxu1 }
 0x1d3   : > { %v6565_v6 = vpack.c.bf16 %v2263_v22, %v2254_v25  ;;  %v6567_v32 = vpack.c.bf16 %v2265_v14, %v2256_v59  ;;  %v1677_v28 = vadd.f32 %v1676_v19, %v6305_v41  ;;  %v1870_v23 = vadd.f32 %v1869_v10, %v6307_v55 }
 0x1d4   : > { %v1678_v2 = vpop.f32.mrf.mxu0  ;;  %v1871_v13 = vpop.f32.mrf.mxu1  ;;  %v2273_v47 = vmax.f32 %v1868_v60, 0.0  ;;  %v2271_v49 = vmax.f32 %v1675_v63, 0.0 }
 0x1d5   : > { %v1679_v46 = vadd.f32 %v1678_v2, %v6296_v9  ;;  %v1872_v61 = vadd.f32 %v1871_v13, %v6298_v8  ;;  %v2272_v59 = vmax.f32 %v1677_v28, 0.0  ;;  %v2274_v22 = vmax.f32 %v1870_v23, 0.0 }
 0x1d6   : > { %v1680_v52 = vpop.f32.mrf.mxu0  ;;  %v1873_v11 = vpop.f32.mrf.mxu1 }
 0x1d7   : > { %v2280_v48 = vmax.f32 %v1679_v46, 0.0  ;;  %v2282_v30 = vmax.f32 %v1872_v61, 0.0  ;;  %v1681_v25 = vadd.f32 %v1680_v52, %v6305_v41  ;;  %v1874_v14 = vadd.f32 %v1873_v11, %v6307_v55 }
 0x1d8   : > { %v1684_v19 = vpop.f32.mrf.mxu0  ;;  %v1877_v10 = vpop.f32.mrf.mxu1  ;;  %3255 = vmatmul.mubr.bf16.gmra.mxu1 %v6309_v57  ;;  %3352 = vmatmul.mubr.bf16.gmra.mxu0 %v5990_v0 }
 0x1d9   : > { %v6577_v60 = vpack.c.bf16 %v2280_v48, %v2271_v49  ;;  %v6579_v2 = vpack.c.bf16 %v2282_v30, %v2273_v47  ;;  %v2281_v63 = vmax.f32 %v1681_v25, 0.0  ;;  %v2283_v13 = vmax.f32 %v1874_v14, 0.0  ;;  %3359 = vmatprep.mubr.bf16.mxu0 %v6055_v31  ;;  %3456 = vmatprep.mubr.bf16.mxu1 %v6339_v45 }
 0x1da   : > { %v1685_v46 = vadd.f32 %v1684_v19, %v6296_v9  ;;  %v1878_v28 = vadd.f32 %v1877_v10, %v6298_v8  ;;  %v1686_v23 = vpop.f32.mrf.mxu0  ;;  %v1879_v61 = vpop.f32.mrf.mxu1 }
 0x1db   : > { %v6585_v52 = vpack.c.bf16 %v2281_v63, %v2272_v59  ;;  %v6587_v57 = vpack.c.bf16 %v2283_v13, %v2274_v22  ;;  %v1687_v0 = vadd.f32 %v1686_v23, %v6305_v41  ;;  %v1880_v47 = vadd.f32 %v1879_v61, %v6307_v55  ;;  %v5064_v63 = vld [vmem:[%s7353_s3 + $0x230] sm:$0xff]  }
 0x1dc   : > { %v1688_v49 = vpop.f32.mrf.mxu0  ;;  %v1881_v11 = vpop.f32.mrf.mxu1  ;;  %v2291_v48 = vmax.f32 %v1878_v28, 0.0  ;;  %v2289_v30 = vmax.f32 %v1685_v46, 0.0 }
 0x1dd   : > { %v1689_v31 = vadd.f32 %v1688_v49, %v6296_v9  ;;  %v1882_v45 = vadd.f32 %v1881_v11, %v6298_v8  ;;  %v2290_v13 = vmax.f32 %v1687_v0, 0.0  ;;  %v2292_v23 = vmax.f32 %v1880_v47, 0.0 }
 0x1de   : > { %v1690_v25 = vpop.f32.mrf.mxu0  ;;  %v1883_v14 = vpop.f32.mrf.mxu1 }
 0x1df   : > { %v2298_v19 = vmax.f32 %v1689_v31, 0.0  ;;  %v2300_v10 = vmax.f32 %v1882_v45, 0.0  ;;  %v1691_v59 = vadd.f32 %v1690_v25, %v6305_v41  ;;  %v1884_v22 = vadd.f32 %v1883_v14, %v6307_v55 }
 0x1e0   : > { %v1694_v28 = vpop.f32.mrf.mxu0  ;;  %v1887_v61 = vpop.f32.mrf.mxu1  ;;  %3360 = vmatmul.mubr.bf16.gmra.mxu0 %v6036_v53  ;;  %3457 = vmatmul.mubr.bf16.vlgmr.msra.gmra.mxu1 %v6330_v58  ;;  %v5067_v53 = vld [vmem:[%s7353_s3 + $0x228] sm:$0xff]  }
 0x1e1   : > { %v6600_v46 = vpack.c.bf16 %v2298_v19, %v2289_v30  ;;  %v6602_v49 = vpack.c.bf16 %v2300_v10, %v2291_v48  ;;  %v2299_v11 = vmax.f32 %v1691_v59, 0.0  ;;  %v2301_v31 = vmax.f32 %v1884_v22, 0.0  ;;  %3367 = vmatprep.mubr.bf16.mxu0 %v6098_v4  ;;  %3464 = vmatprep.mubr.bf16.mxu1 %v6360_v34 }
 0x1e2   : > { %v1695_v45 = vadd.f32 %v1694_v28, %v6296_v9  ;;  %v1888_v0 = vadd.f32 %v1887_v61, %v6298_v8  ;;  %v1696_v47 = vpop.f32.mrf.mxu0  ;;  %v1889_v25 = vpop.f32.mrf.mxu1  ;;  %4756 = vmatpush3.bf16.msra.mxu1 %v6283_v42 }
 0x1e3   : > { %4757 = vmatprep.subr.bf16.mxu1 %v5064_v63  ;;  %v6612_v58 = vpack.c.bf16 %v2299_v11, %v2290_v13  ;;  %v6614_v48 = vpack.c.bf16 %v2301_v31, %v2292_v23  ;;  %v1697_v4 = vadd.f32 %v1696_v47, %v6305_v41  ;;  %v1890_v34 = vadd.f32 %v1889_v25, %v6307_v55  ;;  %v5070_v31 = vld [vmem:[%s7353_s3 + $0x220] sm:$0xff]  }
 0x1e4   : > { %v1698_v30 = vpop.f32.mrf.mxu0  ;;  %v1891_v14 = vpop.f32.mrf.mxu1  ;;  %v2309_v19 = vmax.f32 %v1888_v0, 0.0  ;;  %v2307_v59 = vmax.f32 %v1695_v45, 0.0 }
 0x1e5   : > { %v1699_v10 = vadd.f32 %v1698_v30, %v6296_v9  ;;  %v1892_v42 = vadd.f32 %v1891_v14, %v6298_v8  ;;  %v2308_v0 = vmax.f32 %v1697_v4, 0.0  ;;  %v2310_v47 = vmax.f32 %v1890_v34, 0.0 }
 0x1e6   : > { %v1700_v22 = vpop.f32.mrf.mxu0  ;;  %v1893_v28 = vpop.f32.mrf.mxu1  ;;  %4758 = vmatpush3.bf16.msra.mxu1 %v5064_v63 }
 0x1e7   : > { %v2316_v61 = vmax.f32 %v1699_v10, 0.0  ;;  %v2318_v13 = vmax.f32 %v1892_v42, 0.0  ;;  %v1701_v23 = vadd.f32 %v1700_v22, %v6305_v41  ;;  %v1894_v11 = vadd.f32 %v1893_v28, %v6307_v55  ;;  %4759 = vmatprep.subr.bf16.mxu1 %v5067_v53 }
 0x1e8   : > { %v1704_v25 = vpop.f32.mrf.mxu0  ;;  %v1897_v30 = vpop.f32.mrf.mxu1  ;;  %3368 = vmatmul.mubr.bf16.gmra.mxu0 %v6079_v7  ;;  %3465 = vmatmul.mubr.bf16.gmra.mxu1 %v6351_v33  ;;  %v5071_v7 = vld [vmem:[%s7353_s3 + $0x218] sm:$0xff]  }
 0x1e9   : > { %v6627_v63 = vpack.c.bf16 %v2316_v61, %v2307_v59  ;;  %v6629_v45 = vpack.c.bf16 %v2318_v13, %v2309_v19  ;;  %v2317_v14 = vmax.f32 %v1701_v23, 0.0  ;;  %v2319_v10 = vmax.f32 %v1894_v11, 0.0  ;;  %3375 = vmatprep.mubr.bf16.mxu0 %v6140_v44  ;;  %3472 = vmatprep.mubr.bf16.mxu1 %v6380_v51 }
 0x1ea   : > { %v1705_v42 = vadd.f32 %v1704_v25, %v6296_v9  ;;  %v1898_v4 = vadd.f32 %v1897_v30, %v6298_v8  ;;  %v1706_v34 = vpop.f32.mrf.mxu0  ;;  %v1899_v22 = vpop.f32.mrf.mxu1  ;;  %4760 = vmatpush3.bf16.msra.mxu1 %v5067_v53 }
 0x1eb   : > { %4761 = vmatprep.subr.bf16.mxu1 %v5070_v31  ;;  %v6638_v33 = vpack.c.bf16 %v2317_v14, %v2308_v0  ;;  %v6640_v19 = vpack.c.bf16 %v2319_v10, %v2310_v47  ;;  %v1707_v44 = vadd.f32 %v1706_v34, %v6305_v41  ;;  %v1900_v51 = vadd.f32 %v1899_v22, %v6307_v55  ;;  %v5072_v10 = vld [vmem:[%s7353_s3 + $0x210] sm:$0xff]  }
 0x1ec   : > { %v1708_v59 = vpop.f32.mrf.mxu0  ;;  %v1901_v28 = vpop.f32.mrf.mxu1  ;;  %v2327_v61 = vmax.f32 %v1898_v4, 0.0  ;;  %v2325_v23 = vmax.f32 %v1705_v42, 0.0 }
 0x1ed   : > { %v1709_v13 = vadd.f32 %v1708_v59, %v6296_v9  ;;  %v1902_v53 = vadd.f32 %v1901_v28, %v6298_v8  ;;  %v2326_v4 = vmax.f32 %v1707_v44, 0.0  ;;  %v2328_v34 = vmax.f32 %v1900_v51, 0.0 }
 0x1ee   : > { %v1710_v11 = vpop.f32.mrf.mxu0  ;;  %v1903_v25 = vpop.f32.mrf.mxu1  ;;  %4762 = vmatpush3.bf16.msra.mxu1 %v5070_v31 }
 0x1ef   : > { %v2334_v30 = vmax.f32 %v1709_v13, 0.0  ;;  %v2336_v0 = vmax.f32 %v1902_v53, 0.0  ;;  %v1711_v47 = vadd.f32 %v1710_v11, %v6305_v41  ;;  %v1904_v14 = vadd.f32 %v1903_v25, %v6307_v55  ;;  %4763 = vmatprep.subr.bf16.mxu1 %v5071_v7 }
 0x1f0   : > { %v1714_v22 = vpop.f32.mrf.mxu0  ;;  %v1907_v59 = vpop.f32.mrf.mxu1  ;;  %3376 = vmatmul.mubr.bf16.gmra.mxu0 %v6122_v17  ;;  %3473 = vmatmul.mubr.bf16.gmra.mxu1 %v6372_v12  ;;  %v5073_v12 = vld [vmem:[%s7353_s3 + $0x208] sm:$0xff]  }
 0x1f1   : > { %v6653_v31 = vpack.c.bf16 %v2334_v30, %v2325_v23  ;;  %v6655_v42 = vpack.c.bf16 %v2336_v0, %v2327_v61  ;;  %v2335_v28 = vmax.f32 %v1711_v47, 0.0  ;;  %v2337_v13 = vmax.f32 %v1904_v14, 0.0  ;;  %3383 = vmatprep.mubr.bf16.mxu0 %v6182_v24  ;;  %3480 = vmatprep.mubr.bf16.mxu1 %v6412_v54 }
 0x1f2   : > { %v1715_v53 = vadd.f32 %v1714_v22, %v6296_v9  ;;  %v1908_v44 = vadd.f32 %v1907_v59, %v6298_v8  ;;  %v1716_v51 = vpop.f32.mrf.mxu0  ;;  %v1909_v11 = vpop.f32.mrf.mxu1  ;;  %4764 = vmatpush3.bf16.msra.mxu1 %v5071_v7 }
 0x1f3   : > { %4765 = vmatprep.subr.bf16.mxu1 %v5072_v10  ;;  %v6661_v17 = vpack.c.bf16 %v2335_v28, %v2326_v4  ;;  %v6666_v61 = vpack.c.bf16 %v2337_v13, %v2328_v34  ;;  %v1717_v24 = vadd.f32 %v1716_v51, %v6305_v41  ;;  %v1910_v54 = vadd.f32 %v1909_v11, %v6307_v55  ;;  %v5074_v13 = vld [vmem:[%s7353_s3 + $0x200] sm:$0xff]  }
 0x1f4   : > { %v1718_v23 = vpop.f32.mrf.mxu0  ;;  %v1911_v25 = vpop.f32.mrf.mxu1  ;;  %v2345_v30 = vmax.f32 %v1908_v44, 0.0  ;;  %v2343_v47 = vmax.f32 %v1715_v53, 0.0 }
 0x1f5   : > { %v1719_v0 = vadd.f32 %v1718_v23, %v6296_v9  ;;  %v1912_v7 = vadd.f32 %v1911_v25, %v6298_v8  ;;  %v2344_v44 = vmax.f32 %v1717_v24, 0.0  ;;  %v2346_v51 = vmax.f32 %v1910_v54, 0.0 }
 0x1f6   : > { %v1720_v14 = vpop.f32.mrf.mxu0  ;;  %v1913_v4 = vpop.f32.mrf.mxu1  ;;  %4766 = vmatpush3.bf16.msra.mxu1 %v5072_v10 }
 0x1f7   : > { %v2352_v22 = vmax.f32 %v1719_v0, 0.0  ;;  %v2354_v59 = vmax.f32 %v1912_v7, 0.0  ;;  %v1721_v34 = vadd.f32 %v1720_v14, %v6305_v41  ;;  %v1914_v28 = vadd.f32 %v1913_v4, %v6307_v55  ;;  %4767 = vmatprep.subr.bf16.mxu1 %v5073_v12 }
 0x1f8   : > { %v1724_v11 = vpop.f32.mrf.mxu0  ;;  %v1917_v23 = vpop.f32.mrf.mxu1  ;;  %3384 = vmatmul.mubr.bf16.gmra.mxu0 %v6164_v26  ;;  %3481 = vmatmul.mubr.bf16.gmra.mxu1 %v6398_v27 }
 0x1f9   : > { %v6679_v10 = vpack.c.bf16 %v2352_v22, %v2343_v47  ;;  %v6681_v53 = vpack.c.bf16 %v2354_v59, %v2345_v30  ;;  %v2353_v25 = vmax.f32 %v1721_v34, 0.0  ;;  %v2355_v0 = vmax.f32 %v1914_v28, 0.0  ;;  %3391 = vmatprep.mubr.bf16.mxu0 %v6215_v1  ;;  %3488 = vmatprep.mubr.bf16.mxu1 %v6444_v20 }
 0x1fa   : > { %v1725_v7 = vadd.f32 %v1724_v11, %v6296_v9  ;;  %v1918_v24 = vadd.f32 %v1917_v23, %v6298_v8  ;;  %v1726_v54 = vpop.f32.mrf.mxu0  ;;  %v1919_v14 = vpop.f32.mrf.mxu1  ;;  %4768 = vmatpush3.bf16.msra.mxu1 %v5073_v12 }
 0x1fb   : > { %v6687_v26 = vpack.c.bf16 %v2353_v25, %v2344_v44  ;;  %4769 = vmatprep.subr.bf16.mxu1 %v5074_v13  ;;  %v6689_v27 = vpack.c.bf16 %v2355_v0, %v2346_v51  ;;  %v1727_v30 = vadd.f32 %v1726_v54, %v6305_v41  ;;  %v1920_v47 = vadd.f32 %v1919_v14, %v6307_v55 }
 0x1fc   : > { %v1728_v4 = vpop.f32.mrf.mxu0  ;;  %v1921_v1 = vpop.f32.mrf.mxu1  ;;  %v2363_v22 = vmax.f32 %v1918_v24, 0.0  ;;  %v2361_v34 = vmax.f32 %v1725_v7, 0.0  ;;  %v6700_v24 = vld [vmem:[%s7352_s2 + $0x8] ss:$0 sm:$0xff] }
 0x1fd   : > { %v1729_v20 = vadd.f32 %v1728_v4, %v6296_v9  ;;  %v1922_v59 = vadd.f32 %v1921_v1, %v6298_v8  ;;  %v2362_v25 = vmax.f32 %v1727_v30, 0.0  ;;  %v2364_v0 = vmax.f32 %v1920_v47, 0.0 }
 0x1fe   : > { %v1730_v28 = vpop.f32.mrf.mxu0  ;;  %v1923_v11 = vpop.f32.mrf.mxu1  ;;  %4770 = vmatpush3.bf16.msra.mxu1 %v5074_v13 }
 0x1ff   : > { %v2370_v12 = vmax.f32 %v1729_v20, 0.0  ;;  %v2372_v44 = vmax.f32 %v1922_v59, 0.0  ;;  %v1731_v51 = vadd.f32 %v1730_v28, %v6305_v41  ;;  %v1924_v23 = vadd.f32 %v1923_v11, %v6307_v55 }
 0x200   : > { %v1960_v9 = vpop.f32.mrf.mxu0  ;;  %v2056_v54 = vpop.f32.mrf.mxu1  ;;  %3392 = vmatmul.mubr.bf16.gmra.mxu0 %v6200_v38  ;;  %3489 = vmatmul.mubr.bf16.gmra.mxu1 %v6430_v16 }
 0x201   : > { %v6704_v8 = vpack.c.bf16 %v2370_v12, %v2361_v34  ;;  %v6706_v13 = vpack.c.bf16 %v2372_v44, %v2363_v22  ;;  %v2371_v41 = vmax.f32 %v1731_v51, 0.0  ;;  %v2373_v7 = vmax.f32 %v1924_v23, 0.0  ;;  %3399 = vmatprep.mubr.bf16.mxu0 %v6248_v43  ;;  %3496 = vmatprep.mubr.bf16.mxu1 %v6476_v37 }
 0x202   : > { %v2057_v55 = vadd.f32 %v6700_v24, %v2056_v54  ;;  %v1962_v14 = vpop.f32.mrf.mxu0  ;;  %v2058_v30 = vpop.f32.mrf.mxu1  ;;  %v1961_v47 = vadd.f32 %v6700_v24, %v1960_v9 }
 0x203   : > { %7420 = vst [vmem:[#allocation18_spill] sm:$0xff] %v6706_v13  ;;  %v6712_v4 = vpack.c.bf16 %v2371_v41, %v2362_v25  ;;  %v6714_v38 = vpack.c.bf16 %v2373_v7, %v2364_v0  ;;  %v7421_v0 = vld [vmem:[#allocation23_spill] sm:$0xff] }
 0x204   : > { %v1963_v16 = vpop.f32.mrf.mxu0  ;;  %v2059_v1 = vpop.f32.mrf.mxu1  ;;  %v2311_v22 = vmax.f32 %v2057_v55, 0.0  ;;  %v2095_v37 = vmax.f32 %v1961_v47, 0.0 }
 0x205   : > { %v1964_v20 = vadd.f32 %v6700_v24, %v1963_v16  ;;  %v2060_v59 = vadd.f32 %v6700_v24, %v2059_v1 }
 0x206   : > { %v1965_v43 = vpop.f32.mrf.mxu0  ;;  %v2061_v34 = vpop.f32.mrf.mxu1 }
 0x207   : > { %v2104_v28 = vmax.f32 %v1964_v20, 0.0  ;;  %v2320_v11 = vmax.f32 %v2060_v59, 0.0  ;;  %v7422_v43 = vld [vmem:[#allocation22_spill] sm:$0xff] }
 0x208   : > { %v1968_v12 = vpop.f32.mrf.mxu0  ;;  %v2064_v44 = vpop.f32.mrf.mxu1  ;;  %3400 = vmatmul.mubr.bf16.gmra.mxu0 %v6233_v39  ;;  %3497 = vmatmul.mubr.bf16.gmra.mxu1 %v6462_v3 }
 0x209   : > { %v6720_v51 = vpack.c.bf16 %v2104_v28, %v2095_v37  ;;  %v6722_v23 = vpack.c.bf16 %v2320_v11, %v2311_v22  ;;  %v2065_v25 = vadd.f32 %v6700_v24, %v2064_v44  ;;  %3407 = vmatprep.mubr.bf16.mxu0 %v7421_v0  ;;  %3504 = vmatprep.mubr.bf16.mxu1 %v6505_v40 }
 0x20a   : > { %v1970_v9 = vpop.f32.mrf.mxu0  ;;  %v2066_v54 = vpop.f32.mrf.mxu1  ;;  %v1969_v41 = vadd.f32 %v6700_v24, %v1968_v12 }
 0x20b   : > { %v2329_v14 = vmax.f32 %v2065_v25, 0.0 }
 0x20c   : > { %v1971_v7 = vpop.f32.mrf.mxu0  ;;  %v2067_v55 = vpop.f32.mrf.mxu1  ;;  %v2113_v16 = vmax.f32 %v1969_v41, 0.0 }
 0x20d   : > { %v1972_v39 = vadd.f32 %v6700_v24, %v1971_v7  ;;  %v2068_v3 = vadd.f32 %v6700_v24, %v2067_v55 }
 0x20e   : > { %v1973_v30 = vpop.f32.mrf.mxu0  ;;  %v2069_v47 = vpop.f32.mrf.mxu1 }
 0x20f   : > { %v2122_v1 = vmax.f32 %v1972_v39, 0.0  ;;  %v2338_v22 = vmax.f32 %v2068_v3, 0.0  ;;  %v7423_v47 = vld [vmem:[#allocation17_spill] sm:$0xff] }
 0x210   : > { %v1976_v20 = vpop.f32.mrf.mxu0  ;;  %v2072_v59 = vpop.f32.mrf.mxu1  ;;  %3408 = vmatmul.mubr.bf16.gmra.mxu0 %v7422_v43  ;;  %3505 = vmatmul.mubr.bf16.gmra.mxu1 %v6494_v36 }
 0x211   : > { %v6732_v40 = vpack.c.bf16 %v2122_v1, %v2113_v16  ;;  %v6734_v34 = vpack.c.bf16 %v2338_v22, %v2329_v14  ;;  %v2073_v37 = vadd.f32 %v6700_v24, %v2072_v59  ;;  %3415 = vmatprep.mubr.bf16.mxu0 %v6320_v29  ;;  %3512 = vmatprep.mubr.bf16.mxu1 %v6525_v5 }
 0x212   : > { %v1978_v28 = vpop.f32.mrf.mxu0  ;;  %v2074_v11 = vpop.f32.mrf.mxu1  ;;  %v1977_v12 = vadd.f32 %v6700_v24, %v1976_v20 }
 0x213   : > { %v2347_v0 = vmax.f32 %v2073_v37, 0.0 }
 0x214   : > { %v1979_v44 = vpop.f32.mrf.mxu0  ;;  %v2075_v25 = vpop.f32.mrf.mxu1  ;;  %v2131_v7 = vmax.f32 %v1977_v12, 0.0 }
 0x215   : > { %v1980_v9 = vadd.f32 %v6700_v24, %v1979_v44  ;;  %v2076_v36 = vadd.f32 %v6700_v24, %v2075_v25 }
 0x216   : > { %v1981_v54 = vpop.f32.mrf.mxu0  ;;  %v2077_v41 = vpop.f32.mrf.mxu1 }
 0x217   : > { %v2140_v55 = vmax.f32 %v1980_v9, 0.0  ;;  %v2356_v14 = vmax.f32 %v2076_v36, 0.0  ;;  %v7426_v54 = vld [vmem:[#allocation4_spill] sm:$0xff] }
 0x218   : > { %v1984_v39 = vpop.f32.mrf.mxu0  ;;  %v2080_v29 = vpop.f32.mrf.mxu1  ;;  %3416 = vmatmul.mubr.bf16.gmra.mxu0 %v6311_v15  ;;  %3513 = vmatmul.mubr.bf16.gmra.mxu1 %v6517_v50 }
 0x219   : > { %v6744_v5 = vpack.c.bf16 %v2140_v55, %v2131_v7  ;;  %v6746_v3 = vpack.c.bf16 %v2356_v14, %v2347_v0  ;;  %v2081_v30 = vadd.f32 %v6700_v24, %v2080_v29  ;;  %3520 = vmatprep.mubr.bf16.mxu1 %v6545_v21  ;;  %3617 = vmatprep.mubr.bf16.mxu0 %v7423_v47  ;;  %v7424_v0 = vld [vmem:[#allocation2_spill] sm:$0xff] }
 0x21a   : > { %v1986_v16 = vpop.f32.mrf.mxu0  ;;  %v2082_v1 = vpop.f32.mrf.mxu1  ;;  %v1985_v22 = vadd.f32 %v6700_v24, %v1984_v39 }
 0x21b   : > { %v2365_v43 = vmax.f32 %v2081_v30, 0.0  ;;  %v7427_v1 = vld [vmem:[#allocation3_spill] sm:$0xff] }
 0x21c   : > { %v1987_v20 = vpop.f32.mrf.mxu0  ;;  %v2083_v59 = vpop.f32.mrf.mxu1  ;;  %v2149_v11 = vmax.f32 %v1985_v22, 0.0 }
 0x21d   : > { %v1988_v15 = vadd.f32 %v6700_v24, %v1987_v20  ;;  %v2084_v50 = vadd.f32 %v6700_v24, %v2083_v59 }
 0x21e   : > { %v1989_v37 = vpop.f32.mrf.mxu0  ;;  %v2085_v28 = vpop.f32.mrf.mxu1 }
 0x21f   : > { %v2158_v12 = vmax.f32 %v1988_v15, 0.0  ;;  %v2374_v44 = vmax.f32 %v2084_v50, 0.0 }
 0x220   : > { %v6754_v25 = vpop.f32.mrf.mxu0  ;;  %v4299_v21 = vpop.f32.mrf.mxu1  ;;  %3521 = vmatmul.mubr.bf16.gmra.mxu1 %v6537_v62  ;;  %3618 = vmatmul.mubr.bf16.vlgmr.msra.gmra.mxu0 %v7424_v0 }
 0x221   : > { %v6758_v9 = vpack.c.bf16 %v2158_v12, %v2149_v11  ;;  %v6760_v36 = vpack.c.bf16 %v2374_v44, %v2365_v43  ;;  %3528 = vmatprep.mubr.bf16.mxu1 %v6565_v6  ;;  %3625 = vmatprep.mubr.bf16.mxu0 %v7426_v54  ;;  %v7428_v6 = vld [vmem:[#allocation6_spill] sm:$0xff]  ;;  %v7429_v12 = vld [vmem:[#allocation5_spill] sm:$0xff] }
 0x222   : > { %v1994_v41 = vpop.f32.mrf.mxu0  ;;  %v4300_v7 = vpop.f32.mrf.mxu1 }
 0x223   : > { %7425 = vst [vmem:[#allocation21_spill] sm:$0xff] %v6760_v36  ;;  %v6764_v55 = vadd.f32 %v4300_v7, %v4299_v21 }
 0x224   : > { %v6766_v14 = vpop.f32.mrf.mxu0  ;;  %v4302_v39 = vpop.f32.mrf.mxu1 }
 0x226   : > { %v1997_v29 = vpop.f32.mrf.mxu0  ;;  %v4303_v30 = vpop.f32.mrf.mxu1 }
 0x227   : > { %v6768_v62 = vadd.f32 %v4303_v30, %v4302_v39 }
 0x228   : > { %v6770_v47 = vpop.f32.mrf.mxu0  ;;  %v4305_v16 = vpop.f32.mrf.mxu1  ;;  %3529 = vmatmul.mubr.bf16.gmra.mxu1 %v6557_v18  ;;  %3626 = vmatmul.mubr.bf16.gmra.mxu0 %v7427_v1 }
 0x229   : > { %3536 = vmatprep.mubr.bf16.mxu1 %v6585_v52  ;;  %3633 = vmatprep.mubr.bf16.mxu0 %v7428_v6  ;;  %v7430_v52 = vld [vmem:[#allocation7_spill] sm:$0xff] }
 0x22a   : > { %v2002_v22 = vpop.f32.mrf.mxu0  ;;  %v4306_v20 = vpop.f32.mrf.mxu1 }
 0x22b   : > { %v6776_v59 = vadd.f32 %v4306_v20, %v4305_v16  ;;  %v7431_v16 = vld [vmem:[#allocation8_spill] sm:$0xff] }
 0x22c   : > { %v6778_v43 = vpop.f32.mrf.mxu0  ;;  %v4308_v15 = vpop.f32.mrf.mxu1 }
 0x22e   : > { %v2005_v50 = vpop.f32.mrf.mxu0  ;;  %v4309_v37 = vpop.f32.mrf.mxu1 }
 0x22f   : > { %v6780_v28 = vadd.f32 %v4309_v37, %v4308_v15 }
 0x230   : > { %v6782_v11 = vpop.f32.mrf.mxu0  ;;  %v4311_v18 = vpop.f32.mrf.mxu1  ;;  %3537 = vmatmul.mubr.bf16.gmra.mxu1 %v6577_v60  ;;  %3634 = vmatmul.mubr.bf16.gmra.mxu0 %v7429_v12 }
 0x231   : > { %3544 = vmatprep.mubr.bf16.mxu1 %v6612_v58  ;;  %3641 = vmatprep.mubr.bf16.mxu0 %v7430_v52  ;;  %v7432_v58 = vld [vmem:[#allocation9_spill] sm:$0xff]  ;;  %v7433_v52 = vld [vmem:[#allocation10_spill] sm:$0xff] }
 0x232   : > { %v2010_v44 = vpop.f32.mrf.mxu0  ;;  %v4312_v21 = vpop.f32.mrf.mxu1 }
 0x233   : > { %v6788_v0 = vadd.f32 %v4312_v21, %v4311_v18 }
 0x234   : > { %v6790_v54 = vpop.f32.mrf.mxu0  ;;  %v4314_v41 = vpop.f32.mrf.mxu1 }
 0x236   : > { %v2013_v7 = vpop.f32.mrf.mxu0  ;;  %v4315_v39 = vpop.f32.mrf.mxu1 }
 0x237   : > { %v6792_v29 = vadd.f32 %v4315_v39, %v4314_v41 }
 0x238   : > { %v6794_v30 = vpop.f32.mrf.mxu0  ;;  %v4317_v60 = vpop.f32.mrf.mxu1  ;;  %3545 = vmatmul.mubr.bf16.gmra.mxu1 %v6600_v46  ;;  %3642 = vmatmul.mubr.bf16.gmra.mxu0 %v7431_v16 }
 0x239   : > { %3552 = vmatprep.mubr.bf16.mxu1 %v6638_v33  ;;  %3649 = vmatprep.mubr.bf16.mxu0 %v7432_v58  ;;  %v7434_v33 = vld [vmem:[#allocation11_spill] sm:$0xff] }
 0x23a   : > { %v2018_v1 = vpop.f32.mrf.mxu0  ;;  %v4318_v6 = vpop.f32.mrf.mxu1 }
 0x23b   : > { %v6800_v22 = vadd.f32 %v4318_v6, %v4317_v60  ;;  %v7435_v6 = vld [vmem:[#allocation12_spill] sm:$0xff] }
 0x23c   : > { %v6802_v20 = vpop.f32.mrf.mxu0  ;;  %v4320_v15 = vpop.f32.mrf.mxu1 }
 0x23e   : > { %v2021_v50 = vpop.f32.mrf.mxu0  ;;  %v4321_v37 = vpop.f32.mrf.mxu1 }
 0x23f   : > { %v6804_v18 = vadd.f32 %v4321_v37, %v4320_v15 }
 0x240   : > { %v6806_v12 = vpop.f32.mrf.mxu0  ;;  %v4323_v46 = vpop.f32.mrf.mxu1  ;;  %3553 = vmatmul.mubr.bf16.gmra.mxu1 %v6627_v63  ;;  %3650 = vmatmul.mubr.bf16.gmra.mxu0 %v7433_v52 }
 0x241   : > { %3560 = vmatprep.mubr.bf16.mxu1 %v6661_v17  ;;  %3657 = vmatprep.mubr.bf16.mxu0 %v7434_v33 }
 0x242   : > { %v2026_v44 = vpop.f32.mrf.mxu0  ;;  %v4324_v21 = vpop.f32.mrf.mxu1 }
 0x243   : > { %v6812_v41 = vadd.f32 %v4324_v21, %v4323_v46 }
 0x244   : > { %v6814_v7 = vpop.f32.mrf.mxu0  ;;  %v4326_v39 = vpop.f32.mrf.mxu1 }
 0x246   : > { %v2029_v60 = vpop.f32.mrf.mxu0  ;;  %v4327_v16 = vpop.f32.mrf.mxu1 }
 0x247   : > { %v6816_v58 = vadd.f32 %v4327_v16, %v4326_v39  ;;  %v7436_v39 = vld [vmem:[#allocation14_spill] sm:$0xff] }
 0x248   : > { %v6818_v1 = vpop.f32.mrf.mxu0  ;;  %v4329_v63 = vpop.f32.mrf.mxu1  ;;  %3561 = vmatmul.mubr.bf16.gmra.mxu1 %v6653_v31  ;;  %3658 = vmatmul.mubr.bf16.gmra.mxu0 %v7435_v6 }
 0x249   : > { %3568 = vmatprep.mubr.bf16.mxu1 %v6687_v26  ;;  %3665 = vmatprep.mubr.bf16.mxu0 %v6507_v56  ;;  %v7437_v56 = vld [vmem:[#allocation16_spill] sm:$0xff] }
 0x24a   : > { %v2034_v17 = vpop.f32.mrf.mxu0  ;;  %v4330_v15 = vpop.f32.mrf.mxu1 }
 0x24b   : > { %v6824_v50 = vadd.f32 %v4330_v15, %v4329_v63 }
 0x24c   : > { %v6826_v37 = vpop.f32.mrf.mxu0  ;;  %v4332_v46 = vpop.f32.mrf.mxu1 }
 0x24e   : > { %v2037_v52 = vpop.f32.mrf.mxu0  ;;  %v4333_v33 = vpop.f32.mrf.mxu1 }
 0x24f   : > { %v6828_v44 = vadd.f32 %v4333_v33, %v4332_v46  ;;  %v7438_v33 = vld [vmem:[#allocation13_spill] sm:$0xff] }
 0x250   : > { %v6830_v21 = vpop.f32.mrf.mxu0  ;;  %v4335_v31 = vpop.f32.mrf.mxu1  ;;  %3569 = vmatmul.mubr.bf16.gmra.mxu1 %v6679_v10  ;;  %3666 = vmatmul.mubr.bf16.gmra.mxu0 %v7436_v39 }
 0x251   : > { %3576 = vmatprep.mubr.bf16.mxu1 %v6712_v4  ;;  %3673 = vmatprep.mubr.bf16.mxu0 %v7437_v56  ;;  %v7439_v4 = vld [vmem:[#allocation19_spill] sm:$0xff] }
 0x252   : > { %v2042_v26 = vpop.f32.mrf.mxu0  ;;  %v4336_v60 = vpop.f32.mrf.mxu1 }
 0x253   : > { %v6836_v16 = vadd.f32 %v4336_v60, %v4335_v31 }
 0x254   : > { %v6838_v63 = vpop.f32.mrf.mxu0  ;;  %v4338_v6 = vpop.f32.mrf.mxu1 }
 0x256   : > { %v2045_v17 = vpop.f32.mrf.mxu0  ;;  %v4339_v15 = vpop.f32.mrf.mxu1 }
 0x257   : > { %v6840_v46 = vadd.f32 %v4339_v15, %v4338_v6  ;;  %v1996_v6 = vadd.f32 %v6700_v24, %v6766_v14 }
 0x258   : > { %v6842_v52 = vpop.f32.mrf.mxu0  ;;  %v4341_v10 = vpop.f32.mrf.mxu1  ;;  %3577 = vmatmul.mubr.bf16.gmra.mxu1 %v6704_v8  ;;  %3674 = vmatmul.mubr.bf16.gmra.mxu0 %v7438_v33  ;;  %v1993_v8 = vadd.f32 %v6700_v24, %v6754_v25 }
 0x259   : > { %3681 = vmatprep.mubr.bf16.mxu0 %v7439_v4  ;;  %4771 = vmatprep.mubr.bf16.mxu1 %v6720_v51  ;;  %v6861_v51 = vld [vmem:[%s7354_s4] ss:$0 sm:$0xff]  ;;  %v7442_v4 = vld [vmem:[#allocation15_spill] sm:$0xff]  ;;  %v2176_v14 = vmax.f32 %v1996_v6, 0.0 }
 0x25a   : > { %v2050_v31 = vpop.f32.mrf.mxu0  ;;  %v4342_v39 = vpop.f32.mrf.mxu1  ;;  %v3137_v25 = vadd.f32 %v6764_v55, %v6861_v51  ;;  %v3140_v6 = vadd.f32 %v6768_v62, %v6861_v51  ;;  %v2012_v55 = vadd.f32 %v6700_v24, %v6790_v54 }
 0x25b   : > { %v6848_v56 = vadd.f32 %v4342_v39, %v4341_v10 }
 0x25c   : > { %v6850_v26 = vpop.f32.mrf.mxu0  ;;  %v4344_v60 = vpop.f32.mrf.mxu1 }
 0x25d   : > { %7440 = vst [vmem:[#allocation20_spill] sm:$0xff] %v6848_v56 }
 0x25e   : > { %v2053_v17 = vpop.f32.mrf.mxu0  ;;  %v4345_v15 = vpop.f32.mrf.mxu1 }
 0x25f   : > { %v6854_v36 = vadd.f32 %v4345_v15, %v4344_v60  ;;  %v2167_v15 = vmax.f32 %v1993_v8, 0.0  ;;  %v2001_v8 = vadd.f32 %v6700_v24, %v6770_v47  ;;  %v3145_v47 = vadd.f32 %v6776_v59, %v6861_v51 }
 0x260   : > { %v4347_v10 = vpop.f32.mrf.mxu1  ;;  %v4411_v33 = vpop.f32.mrf.mxu0  ;;  %3682 = vmatmul.mubr.bf16.gmra.mxu0 %v7442_v4  ;;  %4772 = vmatmul.mubr.bf16.vlgmr.msra.gmra.mxu1 %v6732_v40 }
 0x261   : > { %7441 = vst [vmem:[#allocation23_spill] sm:$0xff] %v6854_v36  ;;  %3689 = vmatprep.mubr.bf16.mxu0 %v6567_v32  ;;  %4775 = vmatprep.mubr.bf16.mxu1 %v6744_v5  ;;  %v2419_v4 = vpack.c.bf16 %v2176_v14, %v2167_v15  ;;  %v2004_v32 = vadd.f32 %v6700_v24, %v6778_v43 }
 0x262   : > { %v4348_v31 = vpop.f32.mrf.mxu1  ;;  %v4412_v39 = vpop.f32.mrf.mxu0  ;;  %v2009_v43 = vadd.f32 %v6700_v24, %v6782_v11 }
 0x263   : > { %v6869_v60 = vadd.f32 %v4348_v31, %v4347_v10  ;;  %v4413_v17 = vadd.f32 %v4412_v39, %v4411_v33 }
 0x264   : > { %v4350_v36 = vpop.f32.mrf.mxu1  ;;  %v4414_v56 = vpop.f32.mrf.mxu0 }
 0x265   : > { %v6871_v13 = vadd.f32 %v4413_v17, %v3137_v25  ;;  %v2185_v17 = vmax.f32 %v2001_v8, 0.0 }
 0x266   : > { %v4351_v40 = vpop.f32.mrf.mxu1  ;;  %v4415_v5 = vpop.f32.mrf.mxu0 }
 0x267   : > { %v6879_v10 = vadd.f32 %v4351_v40, %v4350_v36  ;;  %v4416_v33 = vadd.f32 %v4415_v5, %v4414_v56  ;;  %v2194_v36 = vmax.f32 %v2004_v32, 0.0  ;;  %v2212_v56 = vmax.f32 %v2012_v55, 0.0 }
 0x268   : > { %v4353_v31 = vpop.f32.mrf.mxu1  ;;  %v4417_v39 = vpop.f32.mrf.mxu0  ;;  %3690 = vmatmul.mubr.bf16.gmra.mxu0 %v6559_v35  ;;  %4776 = vmatmul.mubr.bf16.gmra.mxu1 %v6758_v9  ;;  %v2203_v40 = vmax.f32 %v2009_v43, 0.0  ;;  %v2028_v55 = vadd.f32 %v6700_v24, %v6814_v7 }
 0x269   : > { %v6887_v14 = vadd.f32 %v4416_v33, %v3140_v6  ;;  %3697 = vmatprep.mubr.bf16.mxu0 %v6587_v57  ;;  %4779 = vmatprep.mubr.bf16.mxu1 %v2419_v4  ;;  %v2428_v5 = vpack.c.bf16 %v2194_v36, %v2185_v17  ;;  %v3148_v57 = vadd.f32 %v6780_v28, %v6861_v51 }
 0x26a   : > { %v4354_v62 = vpop.f32.mrf.mxu1  ;;  %v4418_v54 = vpop.f32.mrf.mxu0  ;;  %v2020_v4 = vadd.f32 %v6700_v24, %v6802_v20  ;;  %v2437_v59 = vpack.c.bf16 %v2212_v56, %v2203_v40  ;;  %v2025_v28 = vadd.f32 %v6700_v24, %v6806_v12  ;;  %v2036_v40 = vadd.f32 %v6700_v24, %v6826_v37 }
 0x26b   : > { %v6892_v25 = vadd.f32 %v4354_v62, %v4353_v31  ;;  %v4419_v35 = vadd.f32 %v4418_v54, %v4417_v39  ;;  %v2017_v31 = vadd.f32 %v6700_v24, %v6794_v30  ;;  %v3153_v54 = vadd.f32 %v6788_v0, %v6861_v51 }
 0x26c   : > { %v4356_v9 = vpop.f32.mrf.mxu1  ;;  %v4420_v15 = vpop.f32.mrf.mxu0  ;;  %v2230_v7 = vmax.f32 %v2020_v4, 0.0  ;;  %v2248_v30 = vmax.f32 %v2028_v55, 0.0  ;;  %v2044_v4 = vadd.f32 %v6700_v24, %v6838_v63  ;;  %v2266_v63 = vmax.f32 %v2036_v40, 0.0 }
 0x26d   : > { %v6894_v11 = vadd.f32 %v4419_v35, %v3145_v47 }
 0x26e   : > { %v4357_v32 = vpop.f32.mrf.mxu1  ;;  %v4421_v6 = vpop.f32.mrf.mxu0 }
 0x26f   : > { %v6902_v33 = vadd.f32 %v4357_v32, %v4356_v9  ;;  %v4422_v8 = vadd.f32 %v4421_v6, %v4420_v15  ;;  %v2239_v9 = vmax.f32 %v2025_v28, 0.0 }
 0x270   : > { %v4359_v39 = vpop.f32.mrf.mxu1  ;;  %v4423_v43 = vpop.f32.mrf.mxu0  ;;  %3698 = vmatmul.mubr.bf16.gmra.mxu0 %v6579_v2  ;;  %4780 = vmatmul.mubr.bf16.gmra.mxu1 %v2428_v5  ;;  %v2221_v2 = vmax.f32 %v2017_v31, 0.0 }
 0x271   : > { %v6909_v20 = vadd.f32 %v4422_v8, %v3148_v57  ;;  %3705 = vmatprep.mubr.bf16.mxu0 %v6614_v48  ;;  %4783 = vmatprep.mubr.bf16.mxu1 %v2437_v59  ;;  %v3156_v48 = vadd.f32 %v6792_v29, %v6861_v51  ;;  %v2455_v0 = vpack.c.bf16 %v2248_v30, %v2239_v9 }
 0x272   : > { %v4360_v36 = vpop.f32.mrf.mxu1  ;;  %v4424_v62 = vpop.f32.mrf.mxu0  ;;  %v2446_v15 = vpack.c.bf16 %v2230_v7, %v2221_v2  ;;  %v2033_v59 = vadd.f32 %v6700_v24, %v6818_v1  ;;  %v2041_v29 = vadd.f32 %v6700_v24, %v6830_v21  ;;  %v2284_v1 = vmax.f32 %v2044_v4, 0.0 }
 0x273   : > { %v6914_v47 = vadd.f32 %v4360_v36, %v4359_v39  ;;  %v4425_v56 = vadd.f32 %v4424_v62, %v4423_v43  ;;  %v3161_v43 = vadd.f32 %v6800_v22, %v6861_v51 }
 0x274   : > { %v4362_v35 = vpop.f32.mrf.mxu1  ;;  %v4426_v17 = vpop.f32.mrf.mxu0 }
 0x275   : > { %v6916_v12 = vadd.f32 %v4425_v56, %v3153_v54  ;;  %v2275_v54 = vmax.f32 %v2041_v29, 0.0 }
 0x276   : > { %v4363_v5 = vpop.f32.mrf.mxu1  ;;  %v4427_v57 = vpop.f32.mrf.mxu0 }
 0x277   : > { %v6924_v32 = vadd.f32 %v4363_v5, %v4362_v35  ;;  %v4428_v6 = vadd.f32 %v4427_v57, %v4426_v17  ;;  %v3164_v35 = vadd.f32 %v6804_v18, %v6861_v51  ;;  %v2473_v22 = vpack.c.bf16 %v2284_v1, %v2275_v54 }
 0x278   : > { %v4365_v55 = vpop.f32.mrf.mxu1  ;;  %v4429_v8 = vpop.f32.mrf.mxu0  ;;  %3706 = vmatmul.mubr.bf16.gmra.mxu0 %v6602_v49  ;;  %4784 = vmatmul.mubr.bf16.gmra.mxu1 %v2446_v15  ;;  %v2257_v49 = vmax.f32 %v2033_v59, 0.0 }
 0x279   : > { %v6931_v37 = vadd.f32 %v4428_v6, %v3156_v48  ;;  %3713 = vmatprep.mubr.bf16.mxu0 %v6640_v19  ;;  %4787 = vmatprep.mubr.bf16.mxu1 %v2455_v0  ;;  %v2052_v19 = vadd.f32 %v6700_v24, %v6850_v26  ;;  %v2049_v48 = vadd.f32 %v6700_v24, %v6842_v52 }
 0x27a   : > { %v4366_v31 = vpop.f32.mrf.mxu1  ;;  %v4430_v39 = vpop.f32.mrf.mxu0  ;;  %v2464_v30 = vpack.c.bf16 %v2266_v63, %v2257_v49  ;;  %v3169_v0 = vadd.f32 %v6812_v41, %v6861_v51  ;;  %v3177_v49 = vadd.f32 %v6824_v50, %v6861_v51 }
 0x27b   : > { %v6936_v28 = vadd.f32 %v4366_v31, %v4365_v55  ;;  %v4431_v7 = vadd.f32 %v4430_v39, %v4429_v8  ;;  %v2302_v26 = vmax.f32 %v2052_v19, 0.0  ;;  %v2293_v24 = vmax.f32 %v2049_v48, 0.0 }
 0x27c   : > { %v4368_v36 = vpop.f32.mrf.mxu1  ;;  %v4432_v62 = vpop.f32.mrf.mxu0 }
 0x27d   : > { %v6938_v21 = vadd.f32 %v4431_v7, %v3161_v43 }
 0x27e   : > { %v4369_v56 = vpop.f32.mrf.mxu1  ;;  %v4433_v2 = vpop.f32.mrf.mxu0 }
 0x27f   : > { %v6944_v17 = vadd.f32 %v4369_v56, %v4368_v36  ;;  %v4434_v9 = vadd.f32 %v4433_v2, %v4432_v62  ;;  %v3180_v56 = vadd.f32 %v6828_v44, %v6861_v51  ;;  %v3185_v44 = vadd.f32 %v6836_v16, %v6861_v51  ;;  %v7444_v16 = vld [vmem:[#allocation21_spill] sm:$0xff] }
 0x280   : > { %v4371_v15 = vpop.f32.mrf.mxu1  ;;  %v4435_v40 = vpop.f32.mrf.mxu0  ;;  %3714 = vmatmul.mubr.bf16.gmra.mxu0 %v6629_v45  ;;  %4788 = vmatmul.mubr.bf16.gmra.mxu1 %v2464_v30  ;;  %v2482_v45 = vpack.c.bf16 %v2302_v26, %v2293_v24  ;;  %v7443_v24 = vld [vmem:[#allocation18_spill] sm:$0xff] }
 0x281   : > { %v6949_v5 = vadd.f32 %v4434_v9, %v3164_v35  ;;  %3721 = vmatprep.mubr.bf16.mxu0 %v6666_v61  ;;  %4791 = vmatprep.mubr.bf16.mxu1 %v2473_v22  ;;  %v3172_v61 = vadd.f32 %v6816_v58, %v6861_v51 }
 0x282   : > { %v4372_v57 = vpop.f32.mrf.mxu1  ;;  %v4436_v18 = vpop.f32.mrf.mxu0 }
 0x283   : > { %v6954_v4 = vadd.f32 %v4372_v57, %v4371_v15  ;;  %v4437_v6 = vadd.f32 %v4436_v18, %v4435_v40  ;;  %v3188_v18 = vadd.f32 %v6840_v46, %v6861_v51 }
 0x284   : > { %v4374_v52 = vpop.f32.mrf.mxu1  ;;  %v4438_v59 = vpop.f32.mrf.mxu0 }
 0x285   : > { %v6956_v55 = vadd.f32 %v4437_v6, %v3169_v0 }
 0x286   : > { %v4375_v8 = vpop.f32.mrf.mxu1  ;;  %v4439_v29 = vpop.f32.mrf.mxu0 }
 0x287   : > { %v6960_v63 = vadd.f32 %v4375_v8, %v4374_v52  ;;  %v4440_v31 = vadd.f32 %v4439_v29, %v4438_v59  ;;  %v7445_v8 = vld [vmem:[#allocation20_spill] sm:$0xff] }
 0x288   : > { %v4377_v39 = vpop.f32.mrf.mxu1  ;;  %v4441_v43 = vpop.f32.mrf.mxu0  ;;  %3722 = vmatmul.mubr.bf16.gmra.mxu0 %v6655_v42  ;;  %4792 = vmatmul.mubr.bf16.gmra.mxu1 %v2482_v45  ;;  %v3193_v29 = vadd.f32 %v7445_v8, %v6861_v51 }
 0x289   : > { %v6963_v41 = vadd.f32 %v4440_v31, %v3172_v61  ;;  %3729 = vmatprep.mubr.bf16.mxu0 %v6689_v27  ;;  %4795 = vmatprep.mubr.bf16.mxu1 %v6722_v23 }
 0x28a   : > { %v4378_v1 = vpop.f32.mrf.mxu1  ;;  %v4442_v7 = vpop.f32.mrf.mxu0 }
 0x28b   : > { %v6969_v58 = vadd.f32 %v4378_v1, %v4377_v39  ;;  %v4443_v36 = vadd.f32 %v4442_v7, %v4441_v43 }
 0x28c   : > { %v4380_v62 = vpop.f32.mrf.mxu1  ;;  %v4444_v54 = vpop.f32.mrf.mxu0 }
 0x28d   : > { %v6971_v30 = vadd.f32 %v4443_v36, %v3177_v49  ;;  %v7446_v49 = vld [vmem:[#allocation23_spill] sm:$0xff] }
 0x28e   : > { %v4381_v42 = vpop.f32.mrf.mxu1  ;;  %v4445_v19 = vpop.f32.mrf.mxu0  ;;  %v3196_v36 = vadd.f32 %v7446_v49, %v6861_v51 }
 0x28f   : > { %v6975_v27 = vadd.f32 %v4381_v42, %v4380_v62  ;;  %v4446_v23 = vadd.f32 %v4445_v19, %v4444_v54 }
 0x290   : > { %v4383_v2 = vpop.f32.mrf.mxu1  ;;  %v4447_v35 = vpop.f32.mrf.mxu0  ;;  %3730 = vmatmul.mubr.bf16.gmra.mxu0 %v6681_v53  ;;  %4796 = vmatmul.mubr.bf16.gmra.mxu1 %v6734_v34 }
 0x291   : > { %v6979_v50 = vadd.f32 %v4446_v23, %v3180_v56  ;;  %3737 = vmatprep.mubr.bf16.mxu0 %v6714_v38  ;;  %4799 = vmatprep.mubr.bf16.mxu1 %v6746_v3 }
 0x292   : > { %v4384_v22 = vpop.f32.mrf.mxu1  ;;  %v4448_v9 = vpop.f32.mrf.mxu0 }
 0x293   : > { %v6985_v48 = vadd.f32 %v4384_v22, %v4383_v2  ;;  %v4449_v15 = vadd.f32 %v4448_v9, %v4447_v35  ;;  %v3201_v35 = vadd.f32 %v6869_v60, %v6861_v51 }
 0x294   : > { %v4386_v40 = vpop.f32.mrf.mxu1  ;;  %v4450_v26 = vpop.f32.mrf.mxu0 }
 0x295   : > { %v6987_v57 = vadd.f32 %v4449_v15, %v3185_v44 }
 0x296   : > { %v4387_v53 = vpop.f32.mrf.mxu1  ;;  %v4451_v34 = vpop.f32.mrf.mxu0 }
 0x297   : > { %v6991_v38 = vadd.f32 %v4387_v53, %v4386_v40  ;;  %v4452_v3 = vadd.f32 %v4451_v34, %v4450_v26 }
 0x298   : > { %v4389_v0 = vpop.f32.mrf.mxu1  ;;  %v4453_v6 = vpop.f32.mrf.mxu0  ;;  %3738 = vmatmul.mubr.bf16.gmra.mxu0 %v7443_v24  ;;  %4800 = vmatmul.mubr.bf16.gmra.mxu1 %v7444_v16 }
 0x299   : > { %v6995_v52 = vadd.f32 %v4452_v3, %v3188_v18  ;;  %v3204_v18 = vadd.f32 %v6879_v10, %v6861_v51 }
 0x29a   : > { %v4390_v59 = vpop.f32.mrf.mxu1  ;;  %v4454_v45 = vpop.f32.mrf.mxu0 }
 0x29b   : > { %v6999_v61 = vadd.f32 %v4390_v59, %v4389_v0  ;;  %v4455_v31 = vadd.f32 %v4454_v45, %v4453_v6 }
 0x29c   : > { %v4392_v46 = vpop.f32.mrf.mxu1  ;;  %v4456_v39 = vpop.f32.mrf.mxu0 }
 0x29d   : > { %v7001_v43 = vadd.f32 %v4455_v31, %v3193_v29 }
 0x29e   : > { %v4393_v1 = vpop.f32.mrf.mxu1  ;;  %v4457_v7 = vpop.f32.mrf.mxu0 }
 0x29f   : > { %v7005_v62 = vadd.f32 %v4393_v1, %v4392_v46  ;;  %v4458_v54 = vadd.f32 %v4457_v7, %v4456_v39 }
 0x2a0   : > { %v4459_v42 = vpop.f32.mrf.mxu0  ;;  %v4523_v19 = vpop.f32.mrf.mxu1 }
 0x2a1   : > { %v7007_v56 = vadd.f32 %v4458_v54, %v3196_v36 }
 0x2a2   : > { %v4460_v23 = vpop.f32.mrf.mxu0  ;;  %v4524_v2 = vpop.f32.mrf.mxu1 }
 0x2a3   : > { %v4461_v22 = vadd.f32 %v4460_v23, %v4459_v42  ;;  %v4525_v9 = vadd.f32 %v4524_v2, %v4523_v19 }
 0x2a4   : > { %v4462_v44 = vpop.f32.mrf.mxu0  ;;  %v4526_v15 = vpop.f32.mrf.mxu1 }
 0x2a5   : > { %v7011_v40 = vadd.f32 %v4461_v22, %v3201_v35  ;;  %v7014_v26 = vadd.f32 %v4525_v9, %v6871_v13  ;;  %v3209_v13 = vadd.f32 %v6892_v25, %v6861_v51 }
 0x2a6   : > { %v4463_v53 = vpop.f32.mrf.mxu0  ;;  %v4527_v34 = vpop.f32.mrf.mxu1 }
 0x2a7   : > { %v4464_v3 = vadd.f32 %v4463_v53, %v4462_v44  ;;  %v4528_v0 = vadd.f32 %v4527_v34, %v4526_v15 }
 0x2a8   : > { %v4465_v6 = vpop.f32.mrf.mxu0  ;;  %v4529_v24 = vpop.f32.mrf.mxu1 }
 0x2a9   : > { %v7018_v16 = vadd.f32 %v4464_v3, %v3204_v18  ;;  %v7021_v60 = vadd.f32 %v4528_v0, %v6887_v14  ;;  %v3212_v14 = vadd.f32 %v6902_v33, %v6861_v51 }
 0x2aa   : > { %v4466_v59 = vpop.f32.mrf.mxu0  ;;  %v4530_v45 = vpop.f32.mrf.mxu1 }
 0x2ab   : > { %v4467_v8 = vadd.f32 %v4466_v59, %v4465_v6  ;;  %v4531_v29 = vadd.f32 %v4530_v45, %v4529_v24 }
 0x2ac   : > { %v4468_v31 = vpop.f32.mrf.mxu0  ;;  %v4532_v46 = vpop.f32.mrf.mxu1 }
 0x2ad   : > { %v7025_v39 = vadd.f32 %v4467_v8, %v3209_v13  ;;  %v7028_v10 = vadd.f32 %v4531_v29, %v6894_v11  ;;  %v3217_v11 = vadd.f32 %v6914_v47, %v6861_v51 }
 0x2ae   : > { %v4469_v1 = vpop.f32.mrf.mxu0  ;;  %v4533_v7 = vpop.f32.mrf.mxu1 }
 0x2af   : > { %v4470_v49 = vadd.f32 %v4469_v1, %v4468_v31  ;;  %v4534_v36 = vadd.f32 %v4533_v7, %v4532_v46 }
 0x2b0   : > { %v4471_v54 = vpop.f32.mrf.mxu0  ;;  %v4535_v42 = vpop.f32.mrf.mxu1 }
 0x2b1   : > { %v7032_v19 = vadd.f32 %v4470_v49, %v3212_v14  ;;  %v7035_v25 = vadd.f32 %v4534_v36, %v6909_v20  ;;  %v3220_v20 = vadd.f32 %v6924_v32, %v6861_v51 }
 0x2b2   : > { %v4472_v23 = vpop.f32.mrf.mxu0  ;;  %v4536_v2 = vpop.f32.mrf.mxu1 }
 0x2b3   : > { %v4473_v35 = vadd.f32 %v4472_v23, %v4471_v54  ;;  %v4537_v22 = vadd.f32 %v4536_v2, %v4535_v42 }
 0x2b4   : > { %v4474_v9 = vpop.f32.mrf.mxu0  ;;  %v4538_v44 = vpop.f32.mrf.mxu1 }
 0x2b5   : > { %v7039_v15 = vadd.f32 %v4473_v35, %v3217_v11  ;;  %v7042_v33 = vadd.f32 %v4537_v22, %v6916_v12  ;;  %v3225_v12 = vadd.f32 %v6936_v28, %v6861_v51 }
 0x2b6   : > { %v4475_v53 = vpop.f32.mrf.mxu0  ;;  %v4539_v34 = vpop.f32.mrf.mxu1 }
 0x2b7   : > { %v4476_v18 = vadd.f32 %v4475_v53, %v4474_v9  ;;  %v4540_v3 = vadd.f32 %v4539_v34, %v4538_v44 }
 0x2b8   : > { %v4477_v0 = vpop.f32.mrf.mxu0  ;;  %v4541_v6 = vpop.f32.mrf.mxu1 }
 0x2b9   : > { %v7046_v24 = vadd.f32 %v4476_v18, %v3220_v20  ;;  %v7049_v47 = vadd.f32 %v4540_v3, %v6931_v37  ;;  %v3228_v37 = vadd.f32 %v6944_v17, %v6861_v51 }
 0x2ba   : > { %v4478_v59 = vpop.f32.mrf.mxu0  ;;  %v4542_v45 = vpop.f32.mrf.mxu1 }
 0x2bb   : > { %v4479_v13 = vadd.f32 %v4478_v59, %v4477_v0  ;;  %v4543_v8 = vadd.f32 %v4542_v45, %v4541_v6 }
 0x2bc   : > { %v4480_v29 = vpop.f32.mrf.mxu0  ;;  %v4544_v31 = vpop.f32.mrf.mxu1 }
 0x2bd   : > { %v7053_v46 = vadd.f32 %v4479_v13, %v3225_v12  ;;  %v7056_v32 = vadd.f32 %v4543_v8, %v6938_v21  ;;  %v3233_v21 = vadd.f32 %v6954_v4, %v6861_v51 }
 0x2be   : > { %v4481_v1 = vpop.f32.mrf.mxu0  ;;  %v4545_v7 = vpop.f32.mrf.mxu1 }
 0x2bf   : > { %v4482_v14 = vadd.f32 %v4481_v1, %v4480_v29  ;;  %v4546_v49 = vadd.f32 %v4545_v7, %v4544_v31 }
 0x2c0   : > { %v4483_v36 = vpop.f32.mrf.mxu0  ;;  %v4547_v54 = vpop.f32.mrf.mxu1 }
 0x2c1   : > { %v7060_v42 = vadd.f32 %v4482_v14, %v3228_v37  ;;  %v7063_v28 = vadd.f32 %v4546_v49, %v6949_v5  ;;  %v3236_v5 = vadd.f32 %v6960_v63, %v6861_v51 }
 0x2c2   : > { %v4484_v23 = vpop.f32.mrf.mxu0  ;;  %v4548_v2 = vpop.f32.mrf.mxu1 }
 0x2c3   : > { %v4485_v11 = vadd.f32 %v4484_v23, %v4483_v36  ;;  %v4549_v35 = vadd.f32 %v4548_v2, %v4547_v54 }
 0x2c4   : > { %v4486_v22 = vpop.f32.mrf.mxu0  ;;  %v4550_v9 = vpop.f32.mrf.mxu1 }
 0x2c5   : > { %v7067_v44 = vadd.f32 %v4485_v11, %v3233_v21  ;;  %v7070_v17 = vadd.f32 %v4549_v35, %v6956_v55  ;;  %v3241_v55 = vadd.f32 %v6969_v58, %v6861_v51 }
 0x2c6   : > { %v4487_v53 = vpop.f32.mrf.mxu0  ;;  %v4551_v34 = vpop.f32.mrf.mxu1 }
 0x2c7   : > { %v4488_v20 = vadd.f32 %v4487_v53, %v4486_v22  ;;  %v4552_v18 = vadd.f32 %v4551_v34, %v4550_v9 }
 0x2c8   : > { %v4489_v3 = vpop.f32.mrf.mxu0  ;;  %v4553_v0 = vpop.f32.mrf.mxu1 }
 0x2c9   : > { %v7074_v6 = vadd.f32 %v4488_v20, %v3236_v5  ;;  %v7077_v4 = vadd.f32 %v4552_v18, %v6963_v41  ;;  %v3244_v41 = vadd.f32 %v6975_v27, %v6861_v51 }
 0x2ca   : > { %v4490_v59 = vpop.f32.mrf.mxu0  ;;  %v4554_v45 = vpop.f32.mrf.mxu1 }
 0x2cb   : > { %v4491_v12 = vadd.f32 %v4490_v59, %v4489_v3  ;;  %v4555_v13 = vadd.f32 %v4554_v45, %v4553_v0 }
 0x2cc   : > { %v4492_v8 = vpop.f32.mrf.mxu0  ;;  %v4556_v29 = vpop.f32.mrf.mxu1 }
 0x2cd   : > { %v7081_v31 = vadd.f32 %v4491_v12, %v3241_v55  ;;  %v7084_v63 = vadd.f32 %v4555_v13, %v6971_v30  ;;  %v3249_v30 = vadd.f32 %v6985_v48, %v6861_v51 }
 0x2ce   : > { %v4493_v1 = vpop.f32.mrf.mxu0  ;;  %v4557_v7 = vpop.f32.mrf.mxu1 }
 0x2cf   : > { %v4494_v37 = vadd.f32 %v4493_v1, %v4492_v8  ;;  %v4558_v14 = vadd.f32 %v4557_v7, %v4556_v29 }
 0x2d0   : > { %v4495_v49 = vpop.f32.mrf.mxu0  ;;  %v4559_v36 = vpop.f32.mrf.mxu1 }
 0x2d1   : > { %v7088_v54 = vadd.f32 %v4494_v37, %v3244_v41  ;;  %v7091_v58 = vadd.f32 %v4558_v14, %v6979_v50  ;;  %v3252_v50 = vadd.f32 %v6991_v38, %v6861_v51 }
 0x2d2   : > { %v4496_v23 = vpop.f32.mrf.mxu0  ;;  %v4560_v2 = vpop.f32.mrf.mxu1 }
 0x2d3   : > { %v4497_v21 = vadd.f32 %v4496_v23, %v4495_v49  ;;  %v4561_v11 = vadd.f32 %v4560_v2, %v4559_v36 }
 0x2d4   : > { %v4498_v35 = vpop.f32.mrf.mxu0  ;;  %v4562_v22 = vpop.f32.mrf.mxu1 }
 0x2d5   : > { %v7095_v9 = vadd.f32 %v4497_v21, %v3249_v30  ;;  %v7098_v27 = vadd.f32 %v4561_v11, %v6987_v57  ;;  %v3257_v57 = vadd.f32 %v6999_v61, %v6861_v51 }
 0x2d6   : > { %v4499_v53 = vpop.f32.mrf.mxu0  ;;  %v4563_v34 = vpop.f32.mrf.mxu1 }
 0x2d7   : > { %v4500_v5 = vadd.f32 %v4499_v53, %v4498_v35  ;;  %v4564_v20 = vadd.f32 %v4563_v34, %v4562_v22 }
 0x2d8   : > { %v4501_v18 = vpop.f32.mrf.mxu0  ;;  %v4565_v3 = vpop.f32.mrf.mxu1 }
 0x2d9   : > { %v7102_v0 = vadd.f32 %v4500_v5, %v3252_v50  ;;  %v7105_v48 = vadd.f32 %v4564_v20, %v6995_v52  ;;  %v3260_v52 = vadd.f32 %v7005_v62, %v6861_v51 }
 0x2da   : > { %v4502_v59 = vpop.f32.mrf.mxu0  ;;  %v4566_v45 = vpop.f32.mrf.mxu1 }
 0x2db   : > { %v4503_v55 = vadd.f32 %v4502_v59, %v4501_v18  ;;  %v4567_v12 = vadd.f32 %v4566_v45, %v4565_v3 }
 0x2dc   : > { %v4504_v13 = vpop.f32.mrf.mxu0  ;;  %v4568_v8 = vpop.f32.mrf.mxu1 }
 0x2dd   : > { %v7109_v29 = vadd.f32 %v4503_v55, %v3257_v57  ;;  %v7112_v38 = vadd.f32 %v4567_v12, %v7001_v43 }
 0x2de   : > { %v4505_v1 = vpop.f32.mrf.mxu0  ;;  %v4569_v7 = vpop.f32.mrf.mxu1 }
 0x2df   : > { %v4506_v41 = vadd.f32 %v4505_v1, %v4504_v13  ;;  %v4570_v37 = vadd.f32 %v4569_v7, %v4568_v8 }
 0x2e0   : > { %v4571_v14 = vpop.f32.mrf.mxu1  ;;  %v7116_v49 = vpop.f32.mrf.mxu0 }
 0x2e1   : > { %v7118_v61 = vadd.f32 %v4506_v41, %v3260_v52  ;;  %v7121_v36 = vadd.f32 %v4570_v37, %v7007_v56 }
 0x2e2   : > { %v4572_v23 = vpop.f32.mrf.mxu1  ;;  %v7123_v2 = vpop.f32.mrf.mxu0 }
 0x2e3   : > { %v4573_v43 = vadd.f32 %v4572_v23, %v4571_v14 }
 0x2e4   : > { %v4574_v30 = vpop.f32.mrf.mxu1  ;;  %v7125_v21 = vpop.f32.mrf.mxu0 }
 0x2e5   : > { %v7128_v11 = vadd.f32 %v4573_v43, %v7011_v40 }
 0x2e6   : > { %v4575_v51 = vpop.f32.mrf.mxu1  ;;  %v7130_v62 = vpop.f32.mrf.mxu0 }
 0x2e7   : > { %v4576_v35 = vadd.f32 %v4575_v51, %v4574_v30 }
 0x2e8   : > { %v4577_v22 = vpop.f32.mrf.mxu1  ;;  %v7132_v53 = vpop.f32.mrf.mxu0 }
 0x2e9   : > { %v7135_v56 = vadd.f32 %v4576_v35, %v7018_v16 }
 0x2ea   : > { %v4578_v34 = vpop.f32.mrf.mxu1  ;;  %v7137_v50 = vpop.f32.mrf.mxu0 }
 0x2eb   : > { %7447 = vst [vmem:[#allocation22_spill] sm:$0xff] %v7135_v56  ;;  %v4579_v5 = vadd.f32 %v4578_v34, %v4577_v22 }
 0x2ec   : > { %v4580_v20 = vpop.f32.mrf.mxu1  ;;  %v7139_v18 = vpop.f32.mrf.mxu0 }
 0x2ed   : > { %v7142_v40 = vadd.f32 %v4579_v5, %v7025_v39 }
 0x2ee   : > { %v4581_v3 = vpop.f32.mrf.mxu1  ;;  %v7144_v59 = vpop.f32.mrf.mxu0 }
 0x2ef   : > { %v4582_v45 = vadd.f32 %v4581_v3, %v4580_v20 }
 0x2f0   : > { %v4583_v57 = vpop.f32.mrf.mxu1  ;;  %v7146_v55 = vpop.f32.mrf.mxu0 }
 0x2f1   : > { %v7149_v16 = vadd.f32 %v4582_v45, %v7032_v19 }
 0x2f2   : > { %v4584_v12 = vpop.f32.mrf.mxu1  ;;  %v7151_v13 = vpop.f32.mrf.mxu0 }
 0x2f3   : > { %v4585_v8 = vadd.f32 %v4584_v12, %v4583_v57 }
 0x2f4   : > { %v4586_v1 = vpop.f32.mrf.mxu1  ;;  %v7153_v7 = vpop.f32.mrf.mxu0 }
 0x2f5   : > { %v7156_v39 = vadd.f32 %v4585_v8, %v7039_v15 }
 0x2f6   : > { %v4587_v52 = vpop.f32.mrf.mxu1  ;;  %v7158_v41 = vpop.f32.mrf.mxu0 }
 0x2f7   : > { %7448 = vst [vmem:[#allocation17_spill] sm:$0xff] %v7156_v39  ;;  %v4588_v37 = vadd.f32 %v4587_v52, %v4586_v1 }
 0x2f8   : > { %v4589_v14 = vpop.f32.mrf.mxu1  ;;  %v7160_v23 = vpop.f32.mrf.mxu0 }
 0x2f9   : > { %v7163_v19 = vadd.f32 %v4588_v37, %v7046_v24 }
 0x2fa   : > { %v4590_v43 = vpop.f32.mrf.mxu1  ;;  %v7165_v30 = vpop.f32.mrf.mxu0 }
 0x2fb   : > { %7449 = vst [vmem:[#allocation2_spill] sm:$0xff] %v7163_v19  ;;  %v4591_v51 = vadd.f32 %v4590_v43, %v4589_v14 }
 0x2fc   : > { %v4592_v35 = vpop.f32.mrf.mxu1  ;;  %v7167_v22 = vpop.f32.mrf.mxu0 }
 0x2fd   : > { %v7170_v15 = vadd.f32 %v4591_v51, %v7053_v46 }
 0x2fe   : > { %v4593_v34 = vpop.f32.mrf.mxu1  ;;  %v7172_v5 = vpop.f32.mrf.mxu0 }
 0x2ff   : > { %7450 = vst [vmem:[#allocation4_spill] sm:$0xff] %v7170_v15  ;;  %v4594_v20 = vadd.f32 %v4593_v34, %v4592_v35 }
 0x300   : > { %v4595_v3 = vpop.f32.mrf.mxu1  ;;  %v7174_v45 = vpop.f32.mrf.mxu0 }
 0x301   : > { %v7177_v24 = vadd.f32 %v4594_v20, %v7060_v42 }
 0x302   : > { %v4596_v57 = vpop.f32.mrf.mxu1  ;;  %v7179_v12 = vpop.f32.mrf.mxu0 }
 0x303   : > { %7451 = vst [vmem:[#allocation3_spill] sm:$0xff] %v7177_v24  ;;  %v4597_v8 = vadd.f32 %v4596_v57, %v4595_v3 }
 0x304   : > { %v4598_v1 = vpop.f32.mrf.mxu1  ;;  %v7181_v52 = vpop.f32.mrf.mxu0 }
 0x305   : > { %v7184_v46 = vadd.f32 %v4597_v8, %v7067_v44 }
 0x306   : > { %v4599_v37 = vpop.f32.mrf.mxu1  ;;  %v7186_v14 = vpop.f32.mrf.mxu0 }
 0x307   : > { %7452 = vst [vmem:[#allocation6_spill] sm:$0xff] %v7184_v46  ;;  %v4600_v43 = vadd.f32 %v4599_v37, %v4598_v1 }
 0x308   : > { %v4601_v51 = vpop.f32.mrf.mxu1  ;;  %v7188_v35 = vpop.f32.mrf.mxu0 }
 0x309   : > { %v7191_v42 = vadd.f32 %v4600_v43, %v7074_v6 }
 0x30a   : > { %v4602_v34 = vpop.f32.mrf.mxu1  ;;  %v7193_v20 = vpop.f32.mrf.mxu0 }
 0x30b   : > { %7453 = vst [vmem:[#allocation5_spill] sm:$0xff] %v7191_v42  ;;  %v4603_v3 = vadd.f32 %v4602_v34, %v4601_v51 }
 0x30c   : > { %v4604_v57 = vpop.f32.mrf.mxu1  ;;  %v7195_v19 = vpop.f32.mrf.mxu0 }
 0x30d   : > { %v7198_v44 = vadd.f32 %v4603_v3, %v7081_v31 }
 0x30e   : > { %v4605_v8 = vpop.f32.mrf.mxu1  ;;  %v7200_v46 = vpop.f32.mrf.mxu0 }
 0x30f   : > { %7454 = vst [vmem:[#allocation7_spill] sm:$0xff] %v7198_v44  ;;  %v4606_v1 = vadd.f32 %v4605_v8, %v4604_v57 }
 0x310   : > { %v4607_v37 = vpop.f32.mrf.mxu1  ;;  %v7202_v24 = vpop.f32.mrf.mxu0 }
 0x311   : > { %v7205_v6 = vadd.f32 %v4606_v1, %v7088_v54 }
 0x312   : > { %v4608_v43 = vpop.f32.mrf.mxu1  ;;  %v7207_v42 = vpop.f32.mrf.mxu0 }
 0x313   : > { %7455 = vst [vmem:[#allocation8_spill] sm:$0xff] %v7205_v6  ;;  %v4609_v51 = vadd.f32 %v4608_v43, %v4607_v37  ;;  %v4643_v37 = vadd.f32 %v7137_v50, %v7132_v53 }
 0x314   : > { %v4610_v34 = vpop.f32.mrf.mxu1  ;;  %v7209_v39 = vpop.f32.mrf.mxu0 }
 0x315   : > { %v7212_v31 = vadd.f32 %v4609_v51, %v7095_v9  ;;  %v4637_v51 = vadd.f32 %v7123_v2, %v7116_v49  ;;  %v3628_v53 = vadd.f32 %v4643_v37, %v7028_v10  ;;  %v4640_v49 = vadd.f32 %v7130_v62, %v7125_v21 }
 0x316   : > { %v4611_v3 = vpop.f32.mrf.mxu1  ;;  %v7214_v44 = vpop.f32.mrf.mxu0 }
 0x317   : > { %v4612_v57 = vadd.f32 %v4611_v3, %v4610_v34  ;;  %v3623_v62 = vadd.f32 %v4640_v49, %v7021_v60 }
 0x318   : > { %v4613_v8 = vpop.f32.mrf.mxu1  ;;  %v7216_v15 = vpop.f32.mrf.mxu0 }
 0x319   : > { %v7219_v54 = vadd.f32 %v4612_v57, %v7102_v0  ;;  %v4646_v57 = vadd.f32 %v7144_v59, %v7139_v18 }
 0x31a   : > { %v4614_v1 = vpop.f32.mrf.mxu1  ;;  %v7221_v6 = vpop.f32.mrf.mxu0 }
 0x31b   : > { %7456 = vst [vmem:[#allocation9_spill] sm:$0xff] %v7219_v54  ;;  %v4615_v43 = vadd.f32 %v4614_v1, %v4613_v8  ;;  %v4655_v8 = vadd.f32 %v7165_v30, %v7160_v23  ;;  %v3631_v37 = vadd.f32 %v4646_v57, %v7035_v25  ;;  %v4658_v23 = vadd.f32 %v7172_v5, %v7167_v22 }
 0x31c   : > { %v4616_v56 = vpop.f32.mrf.mxu1  ;;  %v7225_v9 = vpop.f32.mrf.mxu0  ;;  %v4667_v22 = vadd.f32 %v7193_v20, %v7188_v35  ;;  %v4670_v35 = vadd.f32 %v7200_v46, %v7195_v19  ;;  %v4679_v19 = vadd.f32 %v7221_v6, %v7216_v15 }
 0x31d   : > { %v7230_v34 = vadd.f32 %v4615_v43, %v7109_v29  ;;  %v3644_v30 = vadd.f32 %v4655_v8, %v7056_v32  ;;  %v3647_v32 = vadd.f32 %v4658_v23, %v7063_v28 }
 0x31e   : > { %v4617_v3 = vpop.f32.mrf.mxu1  ;;  %v7233_v0 = vpop.f32.mrf.mxu0  ;;  %v3660_v28 = vadd.f32 %v4667_v22, %v7084_v63  ;;  %v3663_v63 = vadd.f32 %v4670_v35, %v7091_v58  ;;  %v3676_v58 = vadd.f32 %v4679_v19, %v7112_v38  ;;  %v7457_v35 = vld [vmem:[#allocation22_spill] sm:$0xff]  ;;  %v7459_v19 = vld [vmem:[#allocation17_spill] sm:$0xff] }
 0x31f   : > { %v4618_v54 = vadd.f32 %v4617_v3, %v4616_v56  ;;  %v3620_v56 = vadd.f32 %v4637_v51, %v7014_v26  ;;  %v4682_v15 = vadd.f32 %v7233_v0, %v7225_v9 }
 0x320   : > { %v7238_v50 = vpop.f32.mrf.mxu0  ;;  %v4773_v29 = vpop.f32.mrf.mxu1 }
 0x321   : > { %v7248_v2 = vadd.f32 %v4618_v54, %v7118_v61  ;;  %v3789_v18 = vadd.f32 %v4773_v29, %v3628_v53  ;;  %v4649_v61 = vadd.f32 %v7151_v13, %v7146_v55  ;;  %v4652_v55 = vadd.f32 %v7158_v41, %v7153_v7 }
 0x322   : > { %v7251_v10 = vpop.f32.mrf.mxu0  ;;  %v3780_v59 = vpop.f32.mrf.mxu1  ;;  %v4661_v7 = vadd.f32 %v7179_v12, %v7174_v45  ;;  %v4664_v45 = vadd.f32 %v7186_v14, %v7181_v52  ;;  %v4673_v52 = vadd.f32 %v7207_v42, %v7202_v24  ;;  %v4676_v24 = vadd.f32 %v7214_v44, %v7209_v39 }
 0x323   : > { %3909 = vst [vmem:[%s7243_s20 + $0x10] sm:$0xff] %v3789_v18  ;;  %v3781_v1 = vadd.f32 %v3780_v59, %v3620_v56  ;;  %v3636_v60 = vadd.f32 %v4649_v61, %v7042_v33  ;;  %v3639_v33 = vadd.f32 %v4652_v55, %v7049_v47  ;;  %v3679_v0 = vadd.f32 %v4682_v15, %v7121_v36 }
 0x324   : > { %v7257_v43 = vpop.f32.mrf.mxu0  ;;  %v4774_v21 = vpop.f32.mrf.mxu1  ;;  %v3652_v47 = vadd.f32 %v4661_v7, %v7070_v17  ;;  %v3655_v17 = vadd.f32 %v4664_v45, %v7077_v4  ;;  %v3668_v4 = vadd.f32 %v4673_v52, %v7098_v27  ;;  %v3671_v44 = vadd.f32 %v4676_v24, %v7105_v48  ;;  %v7460_v52 = vld [vmem:[#allocation3_spill] sm:$0xff] }
 0x325   : > { %3907 = vst [vmem:[%s7243_s20] sm:$0xff] %v3781_v1  ;;  %v3792_v26 = vadd.f32 %v4774_v21, %v3631_v37 }
 0x326   : > { %v7263_v54 = vpop.f32.mrf.mxu0  ;;  %v3783_v51 = vpop.f32.mrf.mxu1 }
 0x327   : > { %3910 = vst [vmem:[%s7243_s20 + $0x18] sm:$0xff] %v3792_v26  ;;  %v3784_v25 = vadd.f32 %v3783_v51, %v3623_v62 }
 0x328   : > { %v4689_v3 = vpop.f32.mrf.mxu0  ;;  %v4777_v57 = vpop.f32.mrf.mxu1 }
 0x329   : > { %3908 = vst [vmem:[%s7243_s20 + $0x8] sm:$0xff] %v3784_v25  ;;  %v3805_v13 = vadd.f32 %v4777_v57, %v3644_v30 }
 0x32a   : > { %v4690_v53 = vpop.f32.mrf.mxu0  ;;  %v3796_v29 = vpop.f32.mrf.mxu1 }
 0x32b   : > { %3913 = vst [vmem:[%s7243_s20 + $0x30] sm:$0xff] %v3805_v13  ;;  %v3797_v5 = vadd.f32 %v3796_v29, %v3636_v60  ;;  %v4691_v55 = vadd.f32 %v4690_v53, %v4689_v3  ;;  %v4685_v60 = vadd.f32 %v7251_v10, %v7238_v50 }
 0x32c   : > { %v4692_v49 = vpop.f32.mrf.mxu0  ;;  %v4778_v18 = vpop.f32.mrf.mxu1 }
 0x32d   : > { %3911 = vst [vmem:[%s7243_s20 + $0x20] sm:$0xff] %v3797_v5  ;;  %v3808_v41 = vadd.f32 %v4778_v18, %v3647_v32  ;;  %v3692_v53 = vadd.f32 %v4691_v55, %v7142_v40  ;;  %v4688_v32 = vadd.f32 %v7263_v54, %v7257_v43  ;;  %v3684_v10 = vadd.f32 %v4685_v60, %v7128_v11 }
 0x32e   : > { %v4693_v56 = vpop.f32.mrf.mxu0  ;;  %v3799_v59 = vpop.f32.mrf.mxu1 }
 0x32f   : > { %3914 = vst [vmem:[%s7243_s20 + $0x38] sm:$0xff] %v3808_v41  ;;  %v3800_v20 = vadd.f32 %v3799_v59, %v3639_v33  ;;  %v4694_v22 = vadd.f32 %v4693_v56, %v4692_v49  ;;  %v3687_v43 = vadd.f32 %v4688_v32, %v7457_v35 }
 0x330   : > { %v4695_v8 = vpop.f32.mrf.mxu0  ;;  %v4781_v1 = vpop.f32.mrf.mxu1 }
 0x331   : > { %3912 = vst [vmem:[%s7243_s20 + $0x28] sm:$0xff] %v3800_v20  ;;  %v3821_v12 = vadd.f32 %v4781_v1, %v3660_v28  ;;  %v3695_v41 = vadd.f32 %v4694_v22, %v7149_v16  ;;  %v7458_v1 = vld [vmem:[#allocation4_spill] sm:$0xff] }
 0x332   : > { %v4696_v37 = vpop.f32.mrf.mxu0  ;;  %v3812_v21 = vpop.f32.mrf.mxu1 }
 0x333   : > { %3917 = vst [vmem:[%s7243_s20 + $0x50] sm:$0xff] %v3821_v12  ;;  %v3813_v46 = vadd.f32 %v3812_v21, %v3652_v47  ;;  %v4697_v56 = vadd.f32 %v4696_v37, %v4695_v8 }
 0x334   : > { %v4698_v61 = vpop.f32.mrf.mxu0  ;;  %v4782_v26 = vpop.f32.mrf.mxu1 }
 0x335   : > { %3915 = vst [vmem:[%s7243_s20 + $0x40] sm:$0xff] %v3813_v46  ;;  %v3824_v14 = vadd.f32 %v4782_v26, %v3663_v63  ;;  %v3700_v8 = vadd.f32 %v4697_v56, %v7459_v19 }
 0x336   : > { %v4699_v62 = vpop.f32.mrf.mxu0  ;;  %v3815_v51 = vpop.f32.mrf.mxu1 }
 0x337   : > { %3918 = vst [vmem:[%s7243_s20 + $0x58] sm:$0xff] %v3824_v14  ;;  %v3816_v6 = vadd.f32 %v3815_v51, %v3655_v17  ;;  %v4700_v16 = vadd.f32 %v4699_v62, %v4698_v61 }
 0x338   : > { %v4701_v23 = vpop.f32.mrf.mxu0  ;;  %v4785_v25 = vpop.f32.mrf.mxu1 }
 0x339   : > { %3916 = vst [vmem:[%s7243_s20 + $0x48] sm:$0xff] %v3816_v6  ;;  %v3837_v42 = vadd.f32 %v4785_v25, %v3676_v58  ;;  %v7461_v58 = vld [vmem:[#allocation2_spill] sm:$0xff] }
 0x33a   : > { %v4702_v30 = vpop.f32.mrf.mxu0  ;;  %v3828_v57 = vpop.f32.mrf.mxu1  ;;  %v3703_v61 = vadd.f32 %v4700_v16, %v7461_v58 }
 0x33b   : > { %3921 = vst [vmem:[%s7243_s20 + $0x70] sm:$0xff] %v3837_v42  ;;  %v3829_v9 = vadd.f32 %v3828_v57, %v3668_v4  ;;  %v4703_v7 = vadd.f32 %v4702_v30, %v4701_v23  ;;  %v7462_v42 = vld [vmem:[#allocation7_spill] sm:$0xff] }
 0x33c   : > { %v4704_v38 = vpop.f32.mrf.mxu0  ;;  %v4786_v13 = vpop.f32.mrf.mxu1 }
 0x33d   : > { %3919 = vst [vmem:[%s7243_s20 + $0x60] sm:$0xff] %v3829_v9  ;;  %v3840_v39 = vadd.f32 %v4786_v13, %v3679_v0  ;;  %v3708_v45 = vadd.f32 %v4703_v7, %v7458_v1  ;;  %v7463_v0 = vld [vmem:[#allocation6_spill] sm:$0xff] }
 0x33e   : > { %v4705_v27 = vpop.f32.mrf.mxu0  ;;  %v3831_v29 = vpop.f32.mrf.mxu1 }
 0x33f   : > { %3922 = vst [vmem:[%s7243_s20 + $0x78] sm:$0xff] %v3840_v39  ;;  %v3832_v3 = vadd.f32 %v3831_v29, %v3671_v44  ;;  %v4706_v11 = vadd.f32 %v4705_v27, %v4704_v38  ;;  %v7464_v44 = vld [vmem:[#allocation8_spill] sm:$0xff] }
 0x340   : > { %v4707_v36 = vpop.f32.mrf.mxu0  ;;  %v4789_v5 = vpop.f32.mrf.mxu1 }
 0x341   : > { %3920 = vst [vmem:[%s7243_s20 + $0x68] sm:$0xff] %v3832_v3  ;;  %v3853_v50 = vadd.f32 %v4789_v5, %v3692_v53  ;;  %v3711_v14 = vadd.f32 %v4706_v11, %v7460_v52 }
 0x342   : > { %v4708_v48 = vpop.f32.mrf.mxu0  ;;  %v3844_v18 = vpop.f32.mrf.mxu1 }
 0x343   : > { %3925 = vst [vmem:[%s7243_s20 + $0x90] sm:$0xff] %v3853_v50  ;;  %v3845_v49 = vadd.f32 %v3844_v18, %v3684_v10  ;;  %v4709_v15 = vadd.f32 %v4708_v48, %v4707_v36  ;;  %v7465_v36 = vld [vmem:[#allocation5_spill] sm:$0xff] }
 0x344   : > { %v4710_v40 = vpop.f32.mrf.mxu0  ;;  %v4790_v33 = vpop.f32.mrf.mxu1 }
 0x345   : > { %3923 = vst [vmem:[%s7243_s20 + $0x80] sm:$0xff] %v3845_v49  ;;  %v3856_v59 = vadd.f32 %v4790_v33, %v3695_v41  ;;  %v3716_v38 = vadd.f32 %v4709_v15, %v7463_v0 }
 0x346   : > { %v4711_v54 = vpop.f32.mrf.mxu0  ;;  %v3847_v20 = vpop.f32.mrf.mxu1 }
 0x347   : > { %3926 = vst [vmem:[%s7243_s20 + $0x98] sm:$0xff] %v3856_v59  ;;  %v3848_v28 = vadd.f32 %v3847_v20, %v3687_v43  ;;  %v4712_v55 = vadd.f32 %v4711_v54, %v4710_v40  ;;  %v7466_v54 = vld [vmem:[#allocation9_spill] sm:$0xff] }
 0x348   : > { %v4713_v12 = vpop.f32.mrf.mxu0  ;;  %v4793_v47 = vpop.f32.mrf.mxu1 }
 0x349   : > { %3924 = vst [vmem:[%s7243_s20 + $0x88] sm:$0xff] %v3848_v28  ;;  %v3869_v21 = vadd.f32 %v4793_v47, %v3708_v45  ;;  %v3719_v5 = vadd.f32 %v4712_v55, %v7465_v36 }
 0x34a   : > { %v4714_v37 = vpop.f32.mrf.mxu0  ;;  %v3860_v46 = vpop.f32.mrf.mxu1 }
 0x34b   : > { %3929 = vst [vmem:[%s7243_s20 + $0xb0] sm:$0xff] %v3869_v21  ;;  %v4715_v63 = vadd.f32 %v4714_v37, %v4713_v12  ;;  %v3861_v26 = vadd.f32 %v3860_v46, %v3700_v8 }
 0x34c   : > { %v4716_v17 = vpop.f32.mrf.mxu0  ;;  %v4794_v51 = vpop.f32.mrf.mxu1 }
 0x34d   : > { %3927 = vst [vmem:[%s7243_s20 + $0xa0] sm:$0xff] %v3861_v26  ;;  %v3872_v6 = vadd.f32 %v4794_v51, %v3711_v14  ;;  %v3724_v4 = vadd.f32 %v4715_v63, %v7462_v42 }
 0x34e   : > { %v4717_v62 = vpop.f32.mrf.mxu0  ;;  %v3863_v23 = vpop.f32.mrf.mxu1 }
 0x34f   : > { %3930 = vst [vmem:[%s7243_s20 + $0xb8] sm:$0xff] %v3872_v6  ;;  %v4718_v25 = vadd.f32 %v4717_v62, %v4716_v17  ;;  %v3864_v24 = vadd.f32 %v3863_v23, %v3703_v61 }
 0x350   : > { %v4719_v30 = vpop.f32.mrf.mxu0  ;;  %v4797_v57 = vpop.f32.mrf.mxu1 }
 0x351   : > { %3928 = vst [vmem:[%s7243_s20 + $0xa8] sm:$0xff] %v3864_v24  ;;  %v3885_v9 = vadd.f32 %v4797_v57, %v3724_v4  ;;  %v3727_v27 = vadd.f32 %v4718_v25, %v7464_v44 }
 0x352   : > { %v4720_v13 = vpop.f32.mrf.mxu0  ;;  %v3876_v60 = vpop.f32.mrf.mxu1 }
 0x353   : > { %3933 = vst [vmem:[%s7243_s20 + $0xd0] sm:$0xff] %v3885_v9  ;;  %v3877_v39 = vadd.f32 %v3876_v60, %v3716_v38  ;;  %v4721_v3 = vadd.f32 %v4720_v13, %v4719_v30 }
 0x354   : > { %v4722_v29 = vpop.f32.mrf.mxu0  ;;  %v4798_v22 = vpop.f32.mrf.mxu1 }
 0x355   : > { %3931 = vst [vmem:[%s7243_s20 + $0xc0] sm:$0xff] %v3877_v39  ;;  %v3888_v53 = vadd.f32 %v4798_v22, %v3727_v27  ;;  %v3732_v49 = vadd.f32 %v4721_v3, %v7212_v31 }
 0x356   : > { %v4723_v32 = vpop.f32.mrf.mxu0  ;;  %v3879_v50 = vpop.f32.mrf.mxu1 }
 0x357   : > { %3934 = vst [vmem:[%s7243_s20 + $0xd8] sm:$0xff] %v3888_v53  ;;  %v3880_v10 = vadd.f32 %v3879_v50, %v3719_v5  ;;  %v4724_v7 = vadd.f32 %v4723_v32, %v4722_v29 }
 0x358   : > { %v4725_v48 = vpop.f32.mrf.mxu0  ;;  %v4801_v18 = vpop.f32.mrf.mxu1 }
 0x359   : > { %3932 = vst [vmem:[%s7243_s20 + $0xc8] sm:$0xff] %v3880_v10  ;;  %v3735_v20 = vadd.f32 %v4724_v7, %v7466_v54 }
 0x35a   : > { %v4726_v41 = vpop.f32.mrf.mxu0  ;;  %v3892_v40 = vpop.f32.mrf.mxu1 }
 0x35b   : > { %v4727_v33 = vadd.f32 %v4726_v41, %v4725_v48  ;;  %v3893_v56 = vadd.f32 %v3892_v40, %v3732_v49 }
 0x35c   : > { %v4728_v59 = vpop.f32.mrf.mxu0  ;;  %v4802_v35 = vpop.f32.mrf.mxu1 }
 0x35d   : > { %v3740_v43 = vadd.f32 %v4727_v33, %v7230_v34  ;;  %3935 = vst [vmem:[%s7243_s20 + $0xe0] sm:$0xff] %v3893_v56 }
 0x35e   : > { %v4729_v11 = vpop.f32.mrf.mxu0  ;;  %v3895_v28 = vpop.f32.mrf.mxu1 }
 0x35f   : > { %v3901_v1 = vadd.f32 %v4801_v18, %v3740_v43  ;;  %v4730_v45 = vadd.f32 %v4729_v11, %v4728_v59  ;;  %v3896_v12 = vadd.f32 %v3895_v28, %v3735_v20 }
 0x361   : > { %3937 = vst [vmem:[%s7243_s20 + $0xf0] sm:$0xff] %v3901_v1  ;;  %v3743_v31 = vadd.f32 %v4730_v45, %v7248_v2  ;;  %3936 = vst [vmem:[%s7243_s20 + $0xe8] sm:$0xff] %v3896_v12 }
 0x363   : > { %v3904_v47 = vadd.f32 %v4802_v35, %v3743_v31 }
 0x365   : > { %3938 = vst [vmem:[%s7243_s20 + $0xf8] sm:$0xff] %v3904_v47 }
 0x366 PF: > { %s15_s18 = sadd.s32 1, %s5082_s18  }
 0x367   : > { %p12_p4 = scmp.ge.s32.totalorder %s15_s18, 4  }
 0x369   :  { %14 = sbr.rel (!%p12_p4) target bundleno = 1 (0x1), region = 70 }

</bundles_post_ra>
